<compile_context>
chip_gen: v7x
topology: tpu7x:2x2x1
jax: 0.10.0
libtpu: 0.0.40
codegen_flags: <defaults>
</compile_context>

<pallas_src>
import functools

import numpy as np

import jax
import jax.numpy as jnp
from jax.experimental import pallas as pl
from jax.experimental.pallas import tpu as pltpu


# ------------------------------ fused kernel -------------------------------

def _fused_net_kernel(x_ref,
                      c1_ref, pe1_ref, po1_ref, ce1_ref, co1_ref,
                      c2_ref, pe2_ref, po2_ref, ce2_ref, co2_ref,
                      c3_ref, f1_ref, fc2_ref, fc3_ref,
                      b1_ref, b2_ref, b3_ref, bf1_ref, bf2_ref, bf3_ref,
                      out_ref, *, nb):
    """Whole ExampleNet forward for `nb` images; everything stays in VMEM.

    Activation layout is always a 2-D slab (rows = height, cols = width*chan),
    which keeps the lane dimension dense (208..416 wide) for every matmul.
    """
    bf16 = jnp.bfloat16

    def mm(a, w):
        return jnp.dot(a, w, preferred_element_type=jnp.float32)

    # Hoist all weight loads out of the per-image loop (VMEM-resident values).
    c1 = [c1_ref[i] for i in range(3)]          # 3 x (28, 416)   banded conv1
    c2 = [c2_ref[i] for i in range(3)]          # 3 x (208, 352)  banded conv2
    c3 = [c3_ref[i] for i in range(3)]          # 3 x (160, 96)   banded conv3
    f1 = [f1_ref[i] for i in range(3)]          # 3 x (96, 120)   fc1 (flatten folded in)
    pe1, po1 = pe1_ref[...], po1_ref[...]       # (13, 26) row selectors, pool1
    ce1, co1 = ce1_ref[...], co1_ref[...]       # (416, 208) col selectors, pool1
    pe2, po2 = pe2_ref[...], po2_ref[...]       # (5, 11) row selectors, pool2
    ce2, co2 = ce2_ref[...], co2_ref[...]       # (352, 160) col selectors, pool2
    fc2_w, fc3_w = fc2_ref[...], fc3_ref[...]   # (120, 84), (84, 128 padded)
    b1, b2, b3 = b1_ref[...], b2_ref[...], b3_ref[...]
    bf1, bf2, bf3 = bf1_ref[...], bf2_ref[...], bf3_ref[...]

    for img in range(nb):
        xi = x_ref[img].astype(bf16)                                 # (28, 28)

        # conv2d_4 (1->16, 3x3 VALID) + ReLU: 3 banded matmuls over row taps.
        y = mm(xi[0:26, :], c1[0]) + mm(xi[1:27, :], c1[1]) + mm(xi[2:28, :], c1[2])
        y = jnp.maximum(y + b1, 0.0).astype(bf16)                    # (26, 26*16)

        # maxPool2D_6 (2x2, stride 2): row-pair max via selection matmuls,
        # then column-pair max via selection matmuls (lanes stay dense).
        t = jnp.maximum(mm(pe1, y), mm(po1, y)).astype(bf16)         # (13, 416)
        p = jnp.maximum(mm(t, ce1), mm(t, co1)).astype(bf16)         # (13, 13*16)

        # conv2d_9 (16->32) + ReLU
        y = mm(p[0:11, :], c2[0]) + mm(p[1:12, :], c2[1]) + mm(p[2:13, :], c2[2])
        y = jnp.maximum(y + b2, 0.0).astype(bf16)                    # (11, 11*32)

        # maxPool2D_11
        t = jnp.maximum(mm(pe2, y), mm(po2, y)).astype(bf16)         # (5, 352)
        p = jnp.maximum(mm(t, ce2), mm(t, co2)).astype(bf16)         # (5, 5*32)

        # conv2d_12 (32->32) + ReLU
        y = mm(p[0:3, :], c3[0]) + mm(p[1:4, :], c3[1]) + mm(p[2:5, :], c3[2])
        y = jnp.maximum(y + b3, 0.0).astype(bf16)                    # (3, 3*32)

        # linear_7 + ReLU  (PyTorch (C,H,W) flatten order folded into f1 taps)
        h = mm(y[0:1, :], f1[0]) + mm(y[1:2, :], f1[1]) + mm(y[2:3, :], f1[2])
        h = jnp.maximum(h + bf1, 0.0).astype(bf16)                   # (1, 120)

        # linear_17 + ReLU
        h = jnp.maximum(mm(h, fc2_w) + bf2, 0.0).astype(bf16)        # (1, 84)

        # linear_18 (output padded to 128 lanes for dense stores)
        logits = mm(h, fc3_w) + bf3                                  # (1, 128) f32
        out_ref[img:img + 1, :] = logits


# --------------------------- weight pre-packing ----------------------------

def init_params(key):
    """Model parameters in the PyTorch layouts of ExampleNet."""
    ks = jax.random.split(key, 12)

    def w(k, shape, fan_in):
        return jax.random.normal(k, shape, jnp.float32) / jnp.sqrt(fan_in)

    return {
        "conv1_w": w(ks[0], (16, 1, 3, 3), 1 * 9),
        "conv1_b": 0.01 * jax.random.normal(ks[1], (16,), jnp.float32),
        "conv2_w": w(ks[2], (32, 16, 3, 3), 16 * 9),
        "conv2_b": 0.01 * jax.random.normal(ks[3], (32,), jnp.float32),
        "conv3_w": w(ks[4], (32, 32, 3, 3), 32 * 9),
        "conv3_b": 0.01 * jax.random.normal(ks[5], (32,), jnp.float32),
        "fc1_w": w(ks[6], (120, 288), 288),
        "fc1_b": 0.01 * jax.random.normal(ks[7], (120,), jnp.float32),
        "fc2_w": w(ks[8], (84, 120), 120),
        "fc2_b": 0.01 * jax.random.normal(ks[9], (84,), jnp.float32),
        "fc3_w": w(ks[10], (10, 84), 84),
        "fc3_b": 0.01 * jax.random.normal(ks[11], (10,), jnp.float32),
    }


def prepare_params(params):
    """One-time packing of PyTorch-layout weights into kernel-ready matrices.

    * conv{k}m[i]: banded matrix so conv = sum_i slab[i:i+Ho, :] @ conv{k}m[i]
        conv{k}m[i][w_in*Cin + ci, wo*Cout + co] = W[co, ci, i, w_in - wo]
    * pe/po (rows) and ce/co (cols): 0/1 selectors implementing 2x2 max-pool
      together with an elementwise max.
    * fc1m[h]: fc1 weight rows permuted so the PyTorch (C,H,W) flatten order
      matches the kernel's (H, W*C) activation slab.
    """
    f32 = lambda a: np.asarray(a, dtype=np.float32)

    def conv_band(w_oihw, i, w_in_size, wo_size):
        co_n, ci_n, _, kw = w_oihw.shape
        B = np.zeros((w_in_size * ci_n, wo_size * co_n), np.float32)
        for wo in range(wo_size):
            for j in range(kw):
                wi = wo + j
                B[wi * ci_n:(wi + 1) * ci_n, wo * co_n:(wo + 1) * co_n] = \
                    w_oihw[:, :, i, j].T
        return B

    def row_select(out_rows, in_rows, offset):
        S = np.zeros((out_rows, in_rows), np.float32)
        for r in range(out_rows):
            S[r, 2 * r + offset] = 1.0
        return S

    def col_select(in_groups, out_groups, group, offset):
        S = np.zeros((in_groups * group, out_groups * group), np.float32)
        for g in range(out_groups):
            src = 2 * g + offset
            S[src * group:(src + 1) * group, g * group:(g + 1) * group] = np.eye(group)
        return S

    w1, b1 = f32(params["conv1_w"]), f32(params["conv1_b"])
    w2, b2 = f32(params["conv2_w"]), f32(params["conv2_b"])
    w3, b3 = f32(params["conv3_w"]), f32(params["conv3_b"])
    fw1, fb1 = f32(params["fc1_w"]), f32(params["fc1_b"])
    fw2, fb2 = f32(params["fc2_w"]), f32(params["fc2_b"])
    fw3, fb3 = f32(params["fc3_w"]), f32(params["fc3_b"])

    conv1m = np.stack([conv_band(w1, i, 28, 26) for i in range(3)])  # (3, 28, 416)
    conv2m = np.stack([conv_band(w2, i, 13, 11) for i in range(3)])  # (3, 208, 352)
    conv3m = np.stack([conv_band(w3, i, 5, 3) for i in range(3)])    # (3, 160, 96)

    pe1, po1 = row_select(13, 26, 0), row_select(13, 26, 1)
    ce1, co1 = col_select(26, 13, 16, 0), col_select(26, 13, 16, 1)
    pe2, po2 = row_select(5, 11, 0), row_select(5, 11, 1)
    ce2, co2 = col_select(11, 5, 32, 0), col_select(11, 5, 32, 1)

    # fc1: feature index in PyTorch flatten is c*9 + h*3 + w; kernel activation
    # column for row h is w*32 + c.
    fc1m = np.zeros((3, 96, 120), np.float32)
    for h in range(3):
        for w in range(3):
            for c in range(32):
                fc1m[h, w * 32 + c, :] = fw1[:, c * 9 + h * 3 + w]

    fc2w = fw2.T                                                     # (120, 84)
    fc3w = np.zeros((84, 128), np.float32)
    fc3w[:, :10] = fw3.T
    bf3 = np.zeros((128,), np.float32)
    bf3[:10] = fb3

    bf16 = jnp.bfloat16
    return {
        "conv1m": jnp.asarray(conv1m, bf16),
        "pe1": jnp.asarray(pe1, bf16), "po1": jnp.asarray(po1, bf16),
        "ce1": jnp.asarray(ce1, bf16), "co1": jnp.asarray(co1, bf16),
        "conv2m": jnp.asarray(conv2m, bf16),
        "pe2": jnp.asarray(pe2, bf16), "po2": jnp.asarray(po2, bf16),
        "ce2": jnp.asarray(ce2, bf16), "co2": jnp.asarray(co2, bf16),
        "conv3m": jnp.asarray(conv3m, bf16),
        "fc1m": jnp.asarray(fc1m, bf16),
        "fc2w": jnp.asarray(fc2w, bf16),
        "fc3w": jnp.asarray(fc3w, bf16),
        "b1": jnp.asarray(np.tile(b1, 26).reshape(1, 416), jnp.float32),
        "b2": jnp.asarray(np.tile(b2, 11).reshape(1, 352), jnp.float32),
        "b3": jnp.asarray(np.tile(b3, 3).reshape(1, 96), jnp.float32),
        "bf1": jnp.asarray(fb1.reshape(1, 120), jnp.float32),
        "bf2": jnp.asarray(fb2.reshape(1, 84), jnp.float32),
        "bf3": jnp.asarray(bf3.reshape(1, 128), jnp.float32),
    }


_WEIGHT_ORDER = ("conv1m", "pe1", "po1", "ce1", "co1",
                 "conv2m", "pe2", "po2", "ce2", "co2",
                 "conv3m", "fc1m", "fc2w", "fc3w",
                 "b1", "b2", "b3", "bf1", "bf2", "bf3")


def _const_zero_map(ndim):
    return lambda b: (0,) * ndim


# ------------------------------ forward pass -------------------------------

def example_net_forward(packed, x_nchw, *, images_per_step=8):
    """x_nchw: (N, 1, 28, 28) float32 -> logits (N, 10)."""
    n = x_nchw.shape[0]
    assert x_nchw.shape[1:] == (1, 28, 28), x_nchw.shape
    x = x_nchw.reshape(n, 28, 28).astype(jnp.float32)     # Cin == 1

    nb = min(images_per_step, n)
    num_blocks = pl.cdiv(n, nb)
    n_pad = num_blocks * nb
    if n_pad != n:
        x = jnp.pad(x, ((0, n_pad - n), (0, 0), (0, 0)))

    weights = [packed[k] for k in _WEIGHT_ORDER]

    in_specs = [pl.BlockSpec((nb, 28, 28), lambda b: (b, 0, 0))]
    in_specs += [pl.BlockSpec(w.shape, _const_zero_map(w.ndim)) for w in weights]

    out = pl.pallas_call(
        functools.partial(_fused_net_kernel, nb=nb),
        out_shape=jax.ShapeDtypeStruct((n_pad, 128), jnp.float32),
        grid=(num_blocks,),
        in_specs=in_specs,
        out_specs=pl.BlockSpec((nb, 128), lambda b: (b, 0)),
        compiler_params=pltpu.CompilerParams(
            dimension_semantics=("parallel",),
            vmem_limit_bytes=32 * 1024 * 1024,
        ),
    )(x, *weights)

    return out[:n, :10]


# ---------------------------------- main -----------------------------------

if __name__ == "__main__":
    key = jax.random.PRNGKey(0)
    k_param, k_x = jax.random.split(key)
    params = init_params(k_param)
    packed = prepare_params(params)

    # batch=2, single-channel 28x28 (MNIST-style), NCHW like the PyTorch module
    x = jax.random.normal(k_x, (2, 1, 28, 28), jnp.float32)

    fwd = jax.jit(example_net_forward)
    logits = fwd(packed, x)
    jax.block_until_ready(logits)
    assert logits.shape == (2, 10), logits.shape
    print("KERNEL_OK")
</pallas_src>

<mosaic_0001>
module attributes {stable_mosaic.version = 11 : i64} {
  func.func @_fused_net_kernel(%arg0: i32, %arg1: memref<2x28x28xf32, #tpu.memory_space<vmem>>, %arg2: memref<3x28x416xbf16, #tpu.memory_space<vmem>>, %arg3: memref<13x26xbf16, #tpu.memory_space<vmem>>, %arg4: memref<13x26xbf16, #tpu.memory_space<vmem>>, %arg5: memref<416x208xbf16, #tpu.memory_space<vmem>>, %arg6: memref<416x208xbf16, #tpu.memory_space<vmem>>, %arg7: memref<3x208x352xbf16, #tpu.memory_space<vmem>>, %arg8: memref<5x11xbf16, #tpu.memory_space<vmem>>, %arg9: memref<5x11xbf16, #tpu.memory_space<vmem>>, %arg10: memref<352x160xbf16, #tpu.memory_space<vmem>>, %arg11: memref<352x160xbf16, #tpu.memory_space<vmem>>, %arg12: memref<3x160x96xbf16, #tpu.memory_space<vmem>>, %arg13: memref<3x96x120xbf16, #tpu.memory_space<vmem>>, %arg14: memref<120x84xbf16, #tpu.memory_space<vmem>>, %arg15: memref<84x128xbf16, #tpu.memory_space<vmem>>, %arg16: memref<1x416xf32, #tpu.memory_space<vmem>>, %arg17: memref<1x352xf32, #tpu.memory_space<vmem>>, %arg18: memref<1x96xf32, #tpu.memory_space<vmem>>, %arg19: memref<1x120xf32, #tpu.memory_space<vmem>>, %arg20: memref<1x84xf32, #tpu.memory_space<vmem>>, %arg21: memref<1x128xf32, #tpu.memory_space<vmem>>, %arg22: memref<2x128xf32, #tpu.memory_space<vmem>>) attributes {dimension_semantics = [#tpu.dimension_semantics<parallel>], iteration_bounds = array<i64: 1>, scalar_prefetch = 0 : i64, scratch_operands = 0 : i64, tpu.core_type = #tpu.core_type<tc>, window_params = [{transform_indices = @transform_0, window_bounds = array<i64: 2, 28, 28>}, {pipeline_mode = #tpu.pipeline_mode<synchronous>, transform_indices = @transform_1, window_bounds = array<i64: 3, 28, 416>}, {pipeline_mode = #tpu.pipeline_mode<synchronous>, transform_indices = @transform_2, window_bounds = array<i64: 13, 26>}, {pipeline_mode = #tpu.pipeline_mode<synchronous>, transform_indices = @transform_3, window_bounds = array<i64: 13, 26>}, {pipeline_mode = #tpu.pipeline_mode<synchronous>, transform_indices = @transform_4, window_bounds = array<i64: 416, 208>}, {pipeline_mode = #tpu.pipeline_mode<synchronous>, transform_indices = @transform_5, window_bounds = array<i64: 416, 208>}, {pipeline_mode = #tpu.pipeline_mode<synchronous>, transform_indices = @transform_6, window_bounds = array<i64: 3, 208, 352>}, {pipeline_mode = #tpu.pipeline_mode<synchronous>, transform_indices = @transform_7, window_bounds = array<i64: 5, 11>}, {pipeline_mode = #tpu.pipeline_mode<synchronous>, transform_indices = @transform_8, window_bounds = array<i64: 5, 11>}, {pipeline_mode = #tpu.pipeline_mode<synchronous>, transform_indices = @transform_9, window_bounds = array<i64: 352, 160>}, {pipeline_mode = #tpu.pipeline_mode<synchronous>, transform_indices = @transform_10, window_bounds = array<i64: 352, 160>}, {pipeline_mode = #tpu.pipeline_mode<synchronous>, transform_indices = @transform_11, window_bounds = array<i64: 3, 160, 96>}, {pipeline_mode = #tpu.pipeline_mode<synchronous>, transform_indices = @transform_12, window_bounds = array<i64: 3, 96, 120>}, {pipeline_mode = #tpu.pipeline_mode<synchronous>, transform_indices = @transform_13, window_bounds = array<i64: 120, 84>}, {pipeline_mode = #tpu.pipeline_mode<synchronous>, transform_indices = @transform_14, window_bounds = array<i64: 84, 128>}, {pipeline_mode = #tpu.pipeline_mode<synchronous>, transform_indices = @transform_15, window_bounds = array<i64: 1, 416>}, {pipeline_mode = #tpu.pipeline_mode<synchronous>, transform_indices = @transform_16, window_bounds = array<i64: 1, 352>}, {pipeline_mode = #tpu.pipeline_mode<synchronous>, transform_indices = @transform_17, window_bounds = array<i64: 1, 96>}, {pipeline_mode = #tpu.pipeline_mode<synchronous>, transform_indices = @transform_18, window_bounds = array<i64: 1, 120>}, {pipeline_mode = #tpu.pipeline_mode<synchronous>, transform_indices = @transform_19, window_bounds = array<i64: 1, 84>}, {pipeline_mode = #tpu.pipeline_mode<synchronous>, transform_indices = @transform_20, window_bounds = array<i64: 1, 128>}, {transform_indices = @transform_21, window_bounds = array<i64: 2, 128>}]} {
    %c0 = arith.constant 0 : index
    %c0_0 = arith.constant 0 : index
    %c0_1 = arith.constant 0 : index
    %0 = vector.load %arg2[%c0, %c0_0, %c0_1] : memref<3x28x416xbf16, #tpu.memory_space<vmem>>, vector<1x28x416xbf16>
    %1 = vector.shape_cast %0 : vector<1x28x416xbf16> to vector<28x416xbf16>
    %c1 = arith.constant 1 : index
    %c0_2 = arith.constant 0 : index
    %c0_3 = arith.constant 0 : index
    %2 = vector.load %arg2[%c1, %c0_2, %c0_3] : memref<3x28x416xbf16, #tpu.memory_space<vmem>>, vector<1x28x416xbf16>
    %3 = vector.shape_cast %2 : vector<1x28x416xbf16> to vector<28x416xbf16>
    %c2 = arith.constant 2 : index
    %c0_4 = arith.constant 0 : index
    %c0_5 = arith.constant 0 : index
    %4 = vector.load %arg2[%c2, %c0_4, %c0_5] : memref<3x28x416xbf16, #tpu.memory_space<vmem>>, vector<1x28x416xbf16>
    %5 = vector.shape_cast %4 : vector<1x28x416xbf16> to vector<28x416xbf16>
    %c0_6 = arith.constant 0 : index
    %c0_7 = arith.constant 0 : index
    %c0_8 = arith.constant 0 : index
    %6 = vector.load %arg7[%c0_6, %c0_7, %c0_8] : memref<3x208x352xbf16, #tpu.memory_space<vmem>>, vector<1x208x352xbf16>
    %7 = vector.shape_cast %6 : vector<1x208x352xbf16> to vector<208x352xbf16>
    %c1_9 = arith.constant 1 : index
    %c0_10 = arith.constant 0 : index
    %c0_11 = arith.constant 0 : index
    %8 = vector.load %arg7[%c1_9, %c0_10, %c0_11] : memref<3x208x352xbf16, #tpu.memory_space<vmem>>, vector<1x208x352xbf16>
    %9 = vector.shape_cast %8 : vector<1x208x352xbf16> to vector<208x352xbf16>
    %c2_12 = arith.constant 2 : index
    %c0_13 = arith.constant 0 : index
    %c0_14 = arith.constant 0 : index
    %10 = vector.load %arg7[%c2_12, %c0_13, %c0_14] : memref<3x208x352xbf16, #tpu.memory_space<vmem>>, vector<1x208x352xbf16>
    %11 = vector.shape_cast %10 : vector<1x208x352xbf16> to vector<208x352xbf16>
    %c0_15 = arith.constant 0 : index
    %c0_16 = arith.constant 0 : index
    %c0_17 = arith.constant 0 : index
    %12 = vector.load %arg12[%c0_15, %c0_16, %c0_17] : memref<3x160x96xbf16, #tpu.memory_space<vmem>>, vector<1x160x96xbf16>
    %13 = vector.shape_cast %12 : vector<1x160x96xbf16> to vector<160x96xbf16>
    %c1_18 = arith.constant 1 : index
    %c0_19 = arith.constant 0 : index
    %c0_20 = arith.constant 0 : index
    %14 = vector.load %arg12[%c1_18, %c0_19, %c0_20] : memref<3x160x96xbf16, #tpu.memory_space<vmem>>, vector<1x160x96xbf16>
    %15 = vector.shape_cast %14 : vector<1x160x96xbf16> to vector<160x96xbf16>
    %c2_21 = arith.constant 2 : index
    %c0_22 = arith.constant 0 : index
    %c0_23 = arith.constant 0 : index
    %16 = vector.load %arg12[%c2_21, %c0_22, %c0_23] : memref<3x160x96xbf16, #tpu.memory_space<vmem>>, vector<1x160x96xbf16>
    %17 = vector.shape_cast %16 : vector<1x160x96xbf16> to vector<160x96xbf16>
    %c0_24 = arith.constant 0 : index
    %c0_25 = arith.constant 0 : index
    %c0_26 = arith.constant 0 : index
    %18 = vector.load %arg13[%c0_24, %c0_25, %c0_26] : memref<3x96x120xbf16, #tpu.memory_space<vmem>>, vector<1x96x120xbf16>
    %19 = vector.shape_cast %18 : vector<1x96x120xbf16> to vector<96x120xbf16>
    %c1_27 = arith.constant 1 : index
    %c0_28 = arith.constant 0 : index
    %c0_29 = arith.constant 0 : index
    %20 = vector.load %arg13[%c1_27, %c0_28, %c0_29] : memref<3x96x120xbf16, #tpu.memory_space<vmem>>, vector<1x96x120xbf16>
    %21 = vector.shape_cast %20 : vector<1x96x120xbf16> to vector<96x120xbf16>
    %c2_30 = arith.constant 2 : index
    %c0_31 = arith.constant 0 : index
    %c0_32 = arith.constant 0 : index
    %22 = vector.load %arg13[%c2_30, %c0_31, %c0_32] : memref<3x96x120xbf16, #tpu.memory_space<vmem>>, vector<1x96x120xbf16>
    %23 = vector.shape_cast %22 : vector<1x96x120xbf16> to vector<96x120xbf16>
    %c0_33 = arith.constant 0 : index
    %c0_34 = arith.constant 0 : index
    %24 = vector.load %arg3[%c0_33, %c0_34] : memref<13x26xbf16, #tpu.memory_space<vmem>>, vector<13x26xbf16>
    %c0_35 = arith.constant 0 : index
    %c0_36 = arith.constant 0 : index
    %25 = vector.load %arg4[%c0_35, %c0_36] : memref<13x26xbf16, #tpu.memory_space<vmem>>, vector<13x26xbf16>
    %c0_37 = arith.constant 0 : index
    %c0_38 = arith.constant 0 : index
    %26 = vector.load %arg5[%c0_37, %c0_38] : memref<416x208xbf16, #tpu.memory_space<vmem>>, vector<416x208xbf16>
    %c0_39 = arith.constant 0 : index
    %c0_40 = arith.constant 0 : index
    %27 = vector.load %arg6[%c0_39, %c0_40] : memref<416x208xbf16, #tpu.memory_space<vmem>>, vector<416x208xbf16>
    %c0_41 = arith.constant 0 : index
    %c0_42 = arith.constant 0 : index
    %28 = vector.load %arg8[%c0_41, %c0_42] : memref<5x11xbf16, #tpu.memory_space<vmem>>, vector<5x11xbf16>
    %c0_43 = arith.constant 0 : index
    %c0_44 = arith.constant 0 : index
    %29 = vector.load %arg9[%c0_43, %c0_44] : memref<5x11xbf16, #tpu.memory_space<vmem>>, vector<5x11xbf16>
    %c0_45 = arith.constant 0 : index
    %c0_46 = arith.constant 0 : index
    %30 = vector.load %arg10[%c0_45, %c0_46] : memref<352x160xbf16, #tpu.memory_space<vmem>>, vector<352x160xbf16>
    %c0_47 = arith.constant 0 : index
    %c0_48 = arith.constant 0 : index
    %31 = vector.load %arg11[%c0_47, %c0_48] : memref<352x160xbf16, #tpu.memory_space<vmem>>, vector<352x160xbf16>
    %c0_49 = arith.constant 0 : index
    %c0_50 = arith.constant 0 : index
    %32 = vector.load %arg14[%c0_49, %c0_50] : memref<120x84xbf16, #tpu.memory_space<vmem>>, vector<120x84xbf16>
    %c0_51 = arith.constant 0 : index
    %c0_52 = arith.constant 0 : index
    %33 = vector.load %arg15[%c0_51, %c0_52] : memref<84x128xbf16, #tpu.memory_space<vmem>>, vector<84x128xbf16>
    %c0_53 = arith.constant 0 : index
    %c0_54 = arith.constant 0 : index
    %34 = vector.load %arg16[%c0_53, %c0_54] : memref<1x416xf32, #tpu.memory_space<vmem>>, vector<1x416xf32>
    %c0_55 = arith.constant 0 : index
    %c0_56 = arith.constant 0 : index
    %35 = vector.load %arg17[%c0_55, %c0_56] : memref<1x352xf32, #tpu.memory_space<vmem>>, vector<1x352xf32>
    %c0_57 = arith.constant 0 : index
    %c0_58 = arith.constant 0 : index
    %36 = vector.load %arg18[%c0_57, %c0_58] : memref<1x96xf32, #tpu.memory_space<vmem>>, vector<1x96xf32>
    %c0_59 = arith.constant 0 : index
    %c0_60 = arith.constant 0 : index
    %37 = vector.load %arg19[%c0_59, %c0_60] : memref<1x120xf32, #tpu.memory_space<vmem>>, vector<1x120xf32>
    %c0_61 = arith.constant 0 : index
    %c0_62 = arith.constant 0 : index
    %38 = vector.load %arg20[%c0_61, %c0_62] : memref<1x84xf32, #tpu.memory_space<vmem>>, vector<1x84xf32>
    %c0_63 = arith.constant 0 : index
    %c0_64 = arith.constant 0 : index
    %39 = vector.load %arg21[%c0_63, %c0_64] : memref<1x128xf32, #tpu.memory_space<vmem>>, vector<1x128xf32>
    %c0_65 = arith.constant 0 : index
    %c0_66 = arith.constant 0 : index
    %c0_67 = arith.constant 0 : index
    %40 = vector.load %arg1[%c0_65, %c0_66, %c0_67] : memref<2x28x28xf32, #tpu.memory_space<vmem>>, vector<1x28x28xf32>
    %41 = vector.shape_cast %40 : vector<1x28x28xf32> to vector<28x28xf32>
    %42 = arith.truncf %41 : vector<28x28xf32> to vector<28x28xbf16>
    %43 = vector.extract_strided_slice %42 {offsets = [0, 0], sizes = [26, 28], strides = [1, 1]} : vector<28x28xbf16> to vector<26x28xbf16>
    %cst = arith.constant dense<0.000000e+00> : vector<26x416xf32>
    %44 = tpu.matmul %43, %1, %cst {dimension_numbers = #tpu.dot_dimension_numbers<[1], [0], [0], [1], [0, 0, 1, 1], [], []>} : vector<26x28xbf16>, vector<28x416xbf16>, vector<26x416xf32> -> vector<26x416xf32>
    %45 = vector.extract_strided_slice %42 {offsets = [1, 0], sizes = [26, 28], strides = [1, 1]} : vector<28x28xbf16> to vector<26x28xbf16>
    %cst_68 = arith.constant dense<0.000000e+00> : vector<26x416xf32>
    %46 = tpu.matmul %45, %3, %cst_68 {dimension_numbers = #tpu.dot_dimension_numbers<[1], [0], [0], [1], [0, 0, 1, 1], [], []>} : vector<26x28xbf16>, vector<28x416xbf16>, vector<26x416xf32> -> vector<26x416xf32>
    %47 = arith.addf %44, %46 : vector<26x416xf32>
    %48 = vector.extract_strided_slice %42 {offsets = [2, 0], sizes = [26, 28], strides = [1, 1]} : vector<28x28xbf16> to vector<26x28xbf16>
    %cst_69 = arith.constant dense<0.000000e+00> : vector<26x416xf32>
    %49 = tpu.matmul %48, %5, %cst_69 {dimension_numbers = #tpu.dot_dimension_numbers<[1], [0], [0], [1], [0, 0, 1, 1], [], []>} : vector<26x28xbf16>, vector<28x416xbf16>, vector<26x416xf32> -> vector<26x416xf32>
    %50 = arith.addf %47, %49 : vector<26x416xf32>
    %51 = vector.broadcast %34 : vector<1x416xf32> to vector<26x416xf32>
    %52 = arith.addf %50, %51 : vector<26x416xf32>
    %cst_70 = arith.constant 0.000000e+00 : f32
    %53 = vector.broadcast %cst_70 : f32 to vector<26x416xf32>
    %54 = arith.maximumf %52, %53 : vector<26x416xf32>
    %55 = arith.truncf %54 : vector<26x416xf32> to vector<26x416xbf16>
    %cst_71 = arith.constant dense<0.000000e+00> : vector<13x416xf32>
    %56 = tpu.matmul %24, %55, %cst_71 {dimension_numbers = #tpu.dot_dimension_numbers<[1], [0], [0], [1], [0, 0, 1, 1], [], []>} : vector<13x26xbf16>, vector<26x416xbf16>, vector<13x416xf32> -> vector<13x416xf32>
    %cst_72 = arith.constant dense<0.000000e+00> : vector<13x416xf32>
    %57 = tpu.matmul %25, %55, %cst_72 {dimension_numbers = #tpu.dot_dimension_numbers<[1], [0], [0], [1], [0, 0, 1, 1], [], []>} : vector<13x26xbf16>, vector<26x416xbf16>, vector<13x416xf32> -> vector<13x416xf32>
    %58 = arith.maximumf %56, %57 : vector<13x416xf32>
    %59 = arith.truncf %58 : vector<13x416xf32> to vector<13x416xbf16>
    %cst_73 = arith.constant dense<0.000000e+00> : vector<13x208xf32>
    %60 = tpu.matmul %59, %26, %cst_73 {dimension_numbers = #tpu.dot_dimension_numbers<[1], [0], [0], [1], [0, 0, 1, 1], [], []>} : vector<13x416xbf16>, vector<416x208xbf16>, vector<13x208xf32> -> vector<13x208xf32>
    %cst_74 = arith.constant dense<0.000000e+00> : vector<13x208xf32>
    %61 = tpu.matmul %59, %27, %cst_74 {dimension_numbers = #tpu.dot_dimension_numbers<[1], [0], [0], [1], [0, 0, 1, 1], [], []>} : vector<13x416xbf16>, vector<416x208xbf16>, vector<13x208xf32> -> vector<13x208xf32>
    %62 = arith.maximumf %60, %61 : vector<13x208xf32>
    %63 = arith.truncf %62 : vector<13x208xf32> to vector<13x208xbf16>
    %64 = vector.extract_strided_slice %63 {offsets = [0, 0], sizes = [11, 208], strides = [1, 1]} : vector<13x208xbf16> to vector<11x208xbf16>
    %cst_75 = arith.constant dense<0.000000e+00> : vector<11x352xf32>
    %65 = tpu.matmul %64, %7, %cst_75 {dimension_numbers = #tpu.dot_dimension_numbers<[1], [0], [0], [1], [0, 0, 1, 1], [], []>} : vector<11x208xbf16>, vector<208x352xbf16>, vector<11x352xf32> -> vector<11x352xf32>
    %66 = vector.extract_strided_slice %63 {offsets = [1, 0], sizes = [11, 208], strides = [1, 1]} : vector<13x208xbf16> to vector<11x208xbf16>
    %cst_76 = arith.constant dense<0.000000e+00> : vector<11x352xf32>
    %67 = tpu.matmul %66, %9, %cst_76 {dimension_numbers = #tpu.dot_dimension_numbers<[1], [0], [0], [1], [0, 0, 1, 1], [], []>} : vector<11x208xbf16>, vector<208x352xbf16>, vector<11x352xf32> -> vector<11x352xf32>
    %68 = arith.addf %65, %67 : vector<11x352xf32>
    %69 = vector.extract_strided_slice %63 {offsets = [2, 0], sizes = [11, 208], strides = [1, 1]} : vector<13x208xbf16> to vector<11x208xbf16>
    %cst_77 = arith.constant dense<0.000000e+00> : vector<11x352xf32>
    %70 = tpu.matmul %69, %11, %cst_77 {dimension_numbers = #tpu.dot_dimension_numbers<[1], [0], [0], [1], [0, 0, 1, 1], [], []>} : vector<11x208xbf16>, vector<208x352xbf16>, vector<11x352xf32> -> vector<11x352xf32>
    %71 = arith.addf %68, %70 : vector<11x352xf32>
    %72 = vector.broadcast %35 : vector<1x352xf32> to vector<11x352xf32>
    %73 = arith.addf %71, %72 : vector<11x352xf32>
    %cst_78 = arith.constant 0.000000e+00 : f32
    %74 = vector.broadcast %cst_78 : f32 to vector<11x352xf32>
    %75 = arith.maximumf %73, %74 : vector<11x352xf32>
    %76 = arith.truncf %75 : vector<11x352xf32> to vector<11x352xbf16>
    %cst_79 = arith.constant dense<0.000000e+00> : vector<5x352xf32>
    %77 = tpu.matmul %28, %76, %cst_79 {dimension_numbers = #tpu.dot_dimension_numbers<[1], [0], [0], [1], [0, 0, 1, 1], [], []>} : vector<5x11xbf16>, vector<11x352xbf16>, vector<5x352xf32> -> vector<5x352xf32>
    %cst_80 = arith.constant dense<0.000000e+00> : vector<5x352xf32>
    %78 = tpu.matmul %29, %76, %cst_80 {dimension_numbers = #tpu.dot_dimension_numbers<[1], [0], [0], [1], [0, 0, 1, 1], [], []>} : vector<5x11xbf16>, vector<11x352xbf16>, vector<5x352xf32> -> vector<5x352xf32>
    %79 = arith.maximumf %77, %78 : vector<5x352xf32>
    %80 = arith.truncf %79 : vector<5x352xf32> to vector<5x352xbf16>
    %cst_81 = arith.constant dense<0.000000e+00> : vector<5x160xf32>
    %81 = tpu.matmul %80, %30, %cst_81 {dimension_numbers = #tpu.dot_dimension_numbers<[1], [0], [0], [1], [0, 0, 1, 1], [], []>} : vector<5x352xbf16>, vector<352x160xbf16>, vector<5x160xf32> -> vector<5x160xf32>
    %cst_82 = arith.constant dense<0.000000e+00> : vector<5x160xf32>
    %82 = tpu.matmul %80, %31, %cst_82 {dimension_numbers = #tpu.dot_dimension_numbers<[1], [0], [0], [1], [0, 0, 1, 1], [], []>} : vector<5x352xbf16>, vector<352x160xbf16>, vector<5x160xf32> -> vector<5x160xf32>
    %83 = arith.maximumf %81, %82 : vector<5x160xf32>
    %84 = arith.truncf %83 : vector<5x160xf32> to vector<5x160xbf16>
    %85 = vector.extract_strided_slice %84 {offsets = [0, 0], sizes = [3, 160], strides = [1, 1]} : vector<5x160xbf16> to vector<3x160xbf16>
    %cst_83 = arith.constant dense<0.000000e+00> : vector<3x96xf32>
    %86 = tpu.matmul %85, %13, %cst_83 {dimension_numbers = #tpu.dot_dimension_numbers<[1], [0], [0], [1], [0, 0, 1, 1], [], []>} : vector<3x160xbf16>, vector<160x96xbf16>, vector<3x96xf32> -> vector<3x96xf32>
    %87 = vector.extract_strided_slice %84 {offsets = [1, 0], sizes = [3, 160], strides = [1, 1]} : vector<5x160xbf16> to vector<3x160xbf16>
    %cst_84 = arith.constant dense<0.000000e+00> : vector<3x96xf32>
    %88 = tpu.matmul %87, %15, %cst_84 {dimension_numbers = #tpu.dot_dimension_numbers<[1], [0], [0], [1], [0, 0, 1, 1], [], []>} : vector<3x160xbf16>, vector<160x96xbf16>, vector<3x96xf32> -> vector<3x96xf32>
    %89 = arith.addf %86, %88 : vector<3x96xf32>
    %90 = vector.extract_strided_slice %84 {offsets = [2, 0], sizes = [3, 160], strides = [1, 1]} : vector<5x160xbf16> to vector<3x160xbf16>
    %cst_85 = arith.constant dense<0.000000e+00> : vector<3x96xf32>
    %91 = tpu.matmul %90, %17, %cst_85 {dimension_numbers = #tpu.dot_dimension_numbers<[1], [0], [0], [1], [0, 0, 1, 1], [], []>} : vector<3x160xbf16>, vector<160x96xbf16>, vector<3x96xf32> -> vector<3x96xf32>
    %92 = arith.addf %89, %91 : vector<3x96xf32>
    %93 = vector.broadcast %36 : vector<1x96xf32> to vector<3x96xf32>
    %94 = arith.addf %92, %93 : vector<3x96xf32>
    %cst_86 = arith.constant 0.000000e+00 : f32
    %95 = vector.broadcast %cst_86 : f32 to vector<3x96xf32>
    %96 = arith.maximumf %94, %95 : vector<3x96xf32>
    %97 = arith.truncf %96 : vector<3x96xf32> to vector<3x96xbf16>
    %98 = vector.extract_strided_slice %97 {offsets = [0, 0], sizes = [1, 96], strides = [1, 1]} : vector<3x96xbf16> to vector<1x96xbf16>
    %cst_87 = arith.constant dense<0.000000e+00> : vector<1x120xf32>
    %99 = tpu.matmul %98, %19, %cst_87 {dimension_numbers = #tpu.dot_dimension_numbers<[1], [0], [0], [1], [0, 0, 1, 1], [], []>} : vector<1x96xbf16>, vector<96x120xbf16>, vector<1x120xf32> -> vector<1x120xf32>
    %100 = vector.extract_strided_slice %97 {offsets = [1, 0], sizes = [1, 96], strides = [1, 1]} : vector<3x96xbf16> to vector<1x96xbf16>
    %cst_88 = arith.constant dense<0.000000e+00> : vector<1x120xf32>
    %101 = tpu.matmul %100, %21, %cst_88 {dimension_numbers = #tpu.dot_dimension_numbers<[1], [0], [0], [1], [0, 0, 1, 1], [], []>} : vector<1x96xbf16>, vector<96x120xbf16>, vector<1x120xf32> -> vector<1x120xf32>
    %102 = arith.addf %99, %101 : vector<1x120xf32>
    %103 = vector.extract_strided_slice %97 {offsets = [2, 0], sizes = [1, 96], strides = [1, 1]} : vector<3x96xbf16> to vector<1x96xbf16>
    %cst_89 = arith.constant dense<0.000000e+00> : vector<1x120xf32>
    %104 = tpu.matmul %103, %23, %cst_89 {dimension_numbers = #tpu.dot_dimension_numbers<[1], [0], [0], [1], [0, 0, 1, 1], [], []>} : vector<1x96xbf16>, vector<96x120xbf16>, vector<1x120xf32> -> vector<1x120xf32>
    %105 = arith.addf %102, %104 : vector<1x120xf32>
    %106 = arith.addf %105, %37 : vector<1x120xf32>
    %cst_90 = arith.constant 0.000000e+00 : f32
    %107 = vector.broadcast %cst_90 : f32 to vector<1x120xf32>
    %108 = arith.maximumf %106, %107 : vector<1x120xf32>
    %109 = arith.truncf %108 : vector<1x120xf32> to vector<1x120xbf16>
    %cst_91 = arith.constant dense<0.000000e+00> : vector<1x84xf32>
    %110 = tpu.matmul %109, %32, %cst_91 {dimension_numbers = #tpu.dot_dimension_numbers<[1], [0], [0], [1], [0, 0, 1, 1], [], []>} : vector<1x120xbf16>, vector<120x84xbf16>, vector<1x84xf32> -> vector<1x84xf32>
    %111 = arith.addf %110, %38 : vector<1x84xf32>
    %cst_92 = arith.constant 0.000000e+00 : f32
    %112 = vector.broadcast %cst_92 : f32 to vector<1x84xf32>
    %113 = arith.maximumf %111, %112 : vector<1x84xf32>
    %114 = arith.truncf %113 : vector<1x84xf32> to vector<1x84xbf16>
    %cst_93 = arith.constant dense<0.000000e+00> : vector<1x128xf32>
    %115 = tpu.matmul %114, %33, %cst_93 {dimension_numbers = #tpu.dot_dimension_numbers<[1], [0], [0], [1], [0, 0, 1, 1], [], []>} : vector<1x84xbf16>, vector<84x128xbf16>, vector<1x128xf32> -> vector<1x128xf32>
    %116 = arith.addf %115, %39 : vector<1x128xf32>
    %c0_94 = arith.constant 0 : index
    %c0_95 = arith.constant 0 : index
    %117 = vector.load %arg22[%c0_94, %c0_95] : memref<2x128xf32, #tpu.memory_space<vmem>>, vector<1x128xf32>
    tpu.vector_store %arg22[%c0_94, %c0_95], %116 {strides = array<i32>} : memref<2x128xf32, #tpu.memory_space<vmem>>, vector<1x128xf32>,
    %c1_96 = arith.constant 1 : index
    %c0_97 = arith.constant 0 : index
    %c0_98 = arith.constant 0 : index
    %118 = vector.load %arg1[%c1_96, %c0_97, %c0_98] : memref<2x28x28xf32, #tpu.memory_space<vmem>>, vector<1x28x28xf32>
    %119 = vector.shape_cast %118 : vector<1x28x28xf32> to vector<28x28xf32>
    %120 = arith.truncf %119 : vector<28x28xf32> to vector<28x28xbf16>
    %121 = vector.extract_strided_slice %120 {offsets = [0, 0], sizes = [26, 28], strides = [1, 1]} : vector<28x28xbf16> to vector<26x28xbf16>
    %cst_99 = arith.constant dense<0.000000e+00> : vector<26x416xf32>
    %122 = tpu.matmul %121, %1, %cst_99 {dimension_numbers = #tpu.dot_dimension_numbers<[1], [0], [0], [1], [0, 0, 1, 1], [], []>} : vector<26x28xbf16>, vector<28x416xbf16>, vector<26x416xf32> -> vector<26x416xf32>
    %123 = vector.extract_strided_slice %120 {offsets = [1, 0], sizes = [26, 28], strides = [1, 1]} : vector<28x28xbf16> to vector<26x28xbf16>
    %cst_100 = arith.constant dense<0.000000e+00> : vector<26x416xf32>
    %124 = tpu.matmul %123, %3, %cst_100 {dimension_numbers = #tpu.dot_dimension_numbers<[1], [0], [0], [1], [0, 0, 1, 1], [], []>} : vector<26x28xbf16>, vector<28x416xbf16>, vector<26x416xf32> -> vector<26x416xf32>
    %125 = arith.addf %122, %124 : vector<26x416xf32>
    %126 = vector.extract_strided_slice %120 {offsets = [2, 0], sizes = [26, 28], strides = [1, 1]} : vector<28x28xbf16> to vector<26x28xbf16>
    %cst_101 = arith.constant dense<0.000000e+00> : vector<26x416xf32>
    %127 = tpu.matmul %126, %5, %cst_101 {dimension_numbers = #tpu.dot_dimension_numbers<[1], [0], [0], [1], [0, 0, 1, 1], [], []>} : vector<26x28xbf16>, vector<28x416xbf16>, vector<26x416xf32> -> vector<26x416xf32>
    %128 = arith.addf %125, %127 : vector<26x416xf32>
    %129 = vector.broadcast %34 : vector<1x416xf32> to vector<26x416xf32>
    %130 = arith.addf %128, %129 : vector<26x416xf32>
    %cst_102 = arith.constant 0.000000e+00 : f32
    %131 = vector.broadcast %cst_102 : f32 to vector<26x416xf32>
    %132 = arith.maximumf %130, %131 : vector<26x416xf32>
    %133 = arith.truncf %132 : vector<26x416xf32> to vector<26x416xbf16>
    %cst_103 = arith.constant dense<0.000000e+00> : vector<13x416xf32>
    %134 = tpu.matmul %24, %133, %cst_103 {dimension_numbers = #tpu.dot_dimension_numbers<[1], [0], [0], [1], [0, 0, 1, 1], [], []>} : vector<13x26xbf16>, vector<26x416xbf16>, vector<13x416xf32> -> vector<13x416xf32>
    %cst_104 = arith.constant dense<0.000000e+00> : vector<13x416xf32>
    %135 = tpu.matmul %25, %133, %cst_104 {dimension_numbers = #tpu.dot_dimension_numbers<[1], [0], [0], [1], [0, 0, 1, 1], [], []>} : vector<13x26xbf16>, vector<26x416xbf16>, vector<13x416xf32> -> vector<13x416xf32>
    %136 = arith.maximumf %134, %135 : vector<13x416xf32>
    %137 = arith.truncf %136 : vector<13x416xf32> to vector<13x416xbf16>
    %cst_105 = arith.constant dense<0.000000e+00> : vector<13x208xf32>
    %138 = tpu.matmul %137, %26, %cst_105 {dimension_numbers = #tpu.dot_dimension_numbers<[1], [0], [0], [1], [0, 0, 1, 1], [], []>} : vector<13x416xbf16>, vector<416x208xbf16>, vector<13x208xf32> -> vector<13x208xf32>
    %cst_106 = arith.constant dense<0.000000e+00> : vector<13x208xf32>
    %139 = tpu.matmul %137, %27, %cst_106 {dimension_numbers = #tpu.dot_dimension_numbers<[1], [0], [0], [1], [0, 0, 1, 1], [], []>} : vector<13x416xbf16>, vector<416x208xbf16>, vector<13x208xf32> -> vector<13x208xf32>
    %140 = arith.maximumf %138, %139 : vector<13x208xf32>
    %141 = arith.truncf %140 : vector<13x208xf32> to vector<13x208xbf16>
    %142 = vector.extract_strided_slice %141 {offsets = [0, 0], sizes = [11, 208], strides = [1, 1]} : vector<13x208xbf16> to vector<11x208xbf16>
    %cst_107 = arith.constant dense<0.000000e+00> : vector<11x352xf32>
    %143 = tpu.matmul %142, %7, %cst_107 {dimension_numbers = #tpu.dot_dimension_numbers<[1], [0], [0], [1], [0, 0, 1, 1], [], []>} : vector<11x208xbf16>, vector<208x352xbf16>, vector<11x352xf32> -> vector<11x352xf32>
    %144 = vector.extract_strided_slice %141 {offsets = [1, 0], sizes = [11, 208], strides = [1, 1]} : vector<13x208xbf16> to vector<11x208xbf16>
    %cst_108 = arith.constant dense<0.000000e+00> : vector<11x352xf32>
    %145 = tpu.matmul %144, %9, %cst_108 {dimension_numbers = #tpu.dot_dimension_numbers<[1], [0], [0], [1], [0, 0, 1, 1], [], []>} : vector<11x208xbf16>, vector<208x352xbf16>, vector<11x352xf32> -> vector<11x352xf32>
    %146 = arith.addf %143, %145 : vector<11x352xf32>
    %147 = vector.extract_strided_slice %141 {offsets = [2, 0], sizes = [11, 208], strides = [1, 1]} : vector<13x208xbf16> to vector<11x208xbf16>
    %cst_109 = arith.constant dense<0.000000e+00> : vector<11x352xf32>
    %148 = tpu.matmul %147, %11, %cst_109 {dimension_numbers = #tpu.dot_dimension_numbers<[1], [0], [0], [1], [0, 0, 1, 1], [], []>} : vector<11x208xbf16>, vector<208x352xbf16>, vector<11x352xf32> -> vector<11x352xf32>
    %149 = arith.addf %146, %148 : vector<11x352xf32>
    %150 = vector.broadcast %35 : vector<1x352xf32> to vector<11x352xf32>
    %151 = arith.addf %149, %150 : vector<11x352xf32>
    %cst_110 = arith.constant 0.000000e+00 : f32
    %152 = vector.broadcast %cst_110 : f32 to vector<11x352xf32>
    %153 = arith.maximumf %151, %152 : vector<11x352xf32>
    %154 = arith.truncf %153 : vector<11x352xf32> to vector<11x352xbf16>
    %cst_111 = arith.constant dense<0.000000e+00> : vector<5x352xf32>
    %155 = tpu.matmul %28, %154, %cst_111 {dimension_numbers = #tpu.dot_dimension_numbers<[1], [0], [0], [1], [0, 0, 1, 1], [], []>} : vector<5x11xbf16>, vector<11x352xbf16>, vector<5x352xf32> -> vector<5x352xf32>
    %cst_112 = arith.constant dense<0.000000e+00> : vector<5x352xf32>
    %156 = tpu.matmul %29, %154, %cst_112 {dimension_numbers = #tpu.dot_dimension_numbers<[1], [0], [0], [1], [0, 0, 1, 1], [], []>} : vector<5x11xbf16>, vector<11x352xbf16>, vector<5x352xf32> -> vector<5x352xf32>
    %157 = arith.maximumf %155, %156 : vector<5x352xf32>
    %158 = arith.truncf %157 : vector<5x352xf32> to vector<5x352xbf16>
    %cst_113 = arith.constant dense<0.000000e+00> : vector<5x160xf32>
    %159 = tpu.matmul %158, %30, %cst_113 {dimension_numbers = #tpu.dot_dimension_numbers<[1], [0], [0], [1], [0, 0, 1, 1], [], []>} : vector<5x352xbf16>, vector<352x160xbf16>, vector<5x160xf32> -> vector<5x160xf32>
    %cst_114 = arith.constant dense<0.000000e+00> : vector<5x160xf32>
    %160 = tpu.matmul %158, %31, %cst_114 {dimension_numbers = #tpu.dot_dimension_numbers<[1], [0], [0], [1], [0, 0, 1, 1], [], []>} : vector<5x352xbf16>, vector<352x160xbf16>, vector<5x160xf32> -> vector<5x160xf32>
    %161 = arith.maximumf %159, %160 : vector<5x160xf32>
    %162 = arith.truncf %161 : vector<5x160xf32> to vector<5x160xbf16>
    %163 = vector.extract_strided_slice %162 {offsets = [0, 0], sizes = [3, 160], strides = [1, 1]} : vector<5x160xbf16> to vector<3x160xbf16>
    %cst_115 = arith.constant dense<0.000000e+00> : vector<3x96xf32>
    %164 = tpu.matmul %163, %13, %cst_115 {dimension_numbers = #tpu.dot_dimension_numbers<[1], [0], [0], [1], [0, 0, 1, 1], [], []>} : vector<3x160xbf16>, vector<160x96xbf16>, vector<3x96xf32> -> vector<3x96xf32>
    %165 = vector.extract_strided_slice %162 {offsets = [1, 0], sizes = [3, 160], strides = [1, 1]} : vector<5x160xbf16> to vector<3x160xbf16>
    %cst_116 = arith.constant dense<0.000000e+00> : vector<3x96xf32>
    %166 = tpu.matmul %165, %15, %cst_116 {dimension_numbers = #tpu.dot_dimension_numbers<[1], [0], [0], [1], [0, 0, 1, 1], [], []>} : vector<3x160xbf16>, vector<160x96xbf16>, vector<3x96xf32> -> vector<3x96xf32>
    %167 = arith.addf %164, %166 : vector<3x96xf32>
    %168 = vector.extract_strided_slice %162 {offsets = [2, 0], sizes = [3, 160], strides = [1, 1]} : vector<5x160xbf16> to vector<3x160xbf16>
    %cst_117 = arith.constant dense<0.000000e+00> : vector<3x96xf32>
    %169 = tpu.matmul %168, %17, %cst_117 {dimension_numbers = #tpu.dot_dimension_numbers<[1], [0], [0], [1], [0, 0, 1, 1], [], []>} : vector<3x160xbf16>, vector<160x96xbf16>, vector<3x96xf32> -> vector<3x96xf32>
    %170 = arith.addf %167, %169 : vector<3x96xf32>
    %171 = vector.broadcast %36 : vector<1x96xf32> to vector<3x96xf32>
    %172 = arith.addf %170, %171 : vector<3x96xf32>
    %cst_118 = arith.constant 0.000000e+00 : f32
    %173 = vector.broadcast %cst_118 : f32 to vector<3x96xf32>
    %174 = arith.maximumf %172, %173 : vector<3x96xf32>
    %175 = arith.truncf %174 : vector<3x96xf32> to vector<3x96xbf16>
    %176 = vector.extract_strided_slice %175 {offsets = [0, 0], sizes = [1, 96], strides = [1, 1]} : vector<3x96xbf16> to vector<1x96xbf16>
    %cst_119 = arith.constant dense<0.000000e+00> : vector<1x120xf32>
    %177 = tpu.matmul %176, %19, %cst_119 {dimension_numbers = #tpu.dot_dimension_numbers<[1], [0], [0], [1], [0, 0, 1, 1], [], []>} : vector<1x96xbf16>, vector<96x120xbf16>, vector<1x120xf32> -> vector<1x120xf32>
    %178 = vector.extract_strided_slice %175 {offsets = [1, 0], sizes = [1, 96], strides = [1, 1]} : vector<3x96xbf16> to vector<1x96xbf16>
    %cst_120 = arith.constant dense<0.000000e+00> : vector<1x120xf32>
    %179 = tpu.matmul %178, %21, %cst_120 {dimension_numbers = #tpu.dot_dimension_numbers<[1], [0], [0], [1], [0, 0, 1, 1], [], []>} : vector<1x96xbf16>, vector<96x120xbf16>, vector<1x120xf32> -> vector<1x120xf32>
    %180 = arith.addf %177, %179 : vector<1x120xf32>
    %181 = vector.extract_strided_slice %175 {offsets = [2, 0], sizes = [1, 96], strides = [1, 1]} : vector<3x96xbf16> to vector<1x96xbf16>
    %cst_121 = arith.constant dense<0.000000e+00> : vector<1x120xf32>
    %182 = tpu.matmul %181, %23, %cst_121 {dimension_numbers = #tpu.dot_dimension_numbers<[1], [0], [0], [1], [0, 0, 1, 1], [], []>} : vector<1x96xbf16>, vector<96x120xbf16>, vector<1x120xf32> -> vector<1x120xf32>
    %183 = arith.addf %180, %182 : vector<1x120xf32>
    %184 = arith.addf %183, %37 : vector<1x120xf32>
    %cst_122 = arith.constant 0.000000e+00 : f32
    %185 = vector.broadcast %cst_122 : f32 to vector<1x120xf32>
    %186 = arith.maximumf %184, %185 : vector<1x120xf32>
    %187 = arith.truncf %186 : vector<1x120xf32> to vector<1x120xbf16>
    %cst_123 = arith.constant dense<0.000000e+00> : vector<1x84xf32>
    %188 = tpu.matmul %187, %32, %cst_123 {dimension_numbers = #tpu.dot_dimension_numbers<[1], [0], [0], [1], [0, 0, 1, 1], [], []>} : vector<1x120xbf16>, vector<120x84xbf16>, vector<1x84xf32> -> vector<1x84xf32>
    %189 = arith.addf %188, %38 : vector<1x84xf32>
    %cst_124 = arith.constant 0.000000e+00 : f32
    %190 = vector.broadcast %cst_124 : f32 to vector<1x84xf32>
    %191 = arith.maximumf %189, %190 : vector<1x84xf32>
    %192 = arith.truncf %191 : vector<1x84xf32> to vector<1x84xbf16>
    %cst_125 = arith.constant dense<0.000000e+00> : vector<1x128xf32>
    %193 = tpu.matmul %192, %33, %cst_125 {dimension_numbers = #tpu.dot_dimension_numbers<[1], [0], [0], [1], [0, 0, 1, 1], [], []>} : vector<1x84xbf16>, vector<84x128xbf16>, vector<1x128xf32> -> vector<1x128xf32>
    %194 = arith.addf %193, %39 : vector<1x128xf32>
    %c1_126 = arith.constant 1 : index
    %c0_127 = arith.constant 0 : index
    %195 = vector.load %arg22[%c1_126, %c0_127] : memref<2x128xf32, #tpu.memory_space<vmem>>, vector<1x128xf32>
    tpu.vector_store %arg22[%c1_126, %c0_127], %194 {strides = array<i32>} : memref<2x128xf32, #tpu.memory_space<vmem>>, vector<1x128xf32>,
    return
  }
  func.func @transform_0(%arg0: i32) -> (i32, i32, i32) {
    %c0_i32 = arith.constant 0 : i32
    %c0_i32_0 = arith.constant 0 : i32
    %c0_i32_1 = arith.constant 0 : i32
    return %arg0, %c0_i32, %c0_i32_0 : i32, i32, i32
  }
  func.func @transform_1(%arg0: i32) -> (i32, i32, i32) {
    %c0_i32 = arith.constant 0 : i32
    %c0_i32_0 = arith.constant 0 : i32
    %c0_i32_1 = arith.constant 0 : i32
    %c0_i32_2 = arith.constant 0 : i32
    return %c0_i32, %c0_i32_0, %c0_i32_1 : i32, i32, i32
  }
  func.func @transform_2(%arg0: i32) -> (i32, i32) {
    %c0_i32 = arith.constant 0 : i32
    %c0_i32_0 = arith.constant 0 : i32
    %c0_i32_1 = arith.constant 0 : i32
    return %c0_i32, %c0_i32_0 : i32, i32
  }
  func.func @transform_3(%arg0: i32) -> (i32, i32) {
    %c0_i32 = arith.constant 0 : i32
    %c0_i32_0 = arith.constant 0 : i32
    %c0_i32_1 = arith.constant 0 : i32
    return %c0_i32, %c0_i32_0 : i32, i32
  }
  func.func @transform_4(%arg0: i32) -> (i32, i32) {
    %c0_i32 = arith.constant 0 : i32
    %c0_i32_0 = arith.constant 0 : i32
    %c0_i32_1 = arith.constant 0 : i32
    return %c0_i32, %c0_i32_0 : i32, i32
  }
  func.func @transform_5(%arg0: i32) -> (i32, i32) {
    %c0_i32 = arith.constant 0 : i32
    %c0_i32_0 = arith.constant 0 : i32
    %c0_i32_1 = arith.constant 0 : i32
    return %c0_i32, %c0_i32_0 : i32, i32
  }
  func.func @transform_6(%arg0: i32) -> (i32, i32, i32) {
    %c0_i32 = arith.constant 0 : i32
    %c0_i32_0 = arith.constant 0 : i32
    %c0_i32_1 = arith.constant 0 : i32
    %c0_i32_2 = arith.constant 0 : i32
    return %c0_i32, %c0_i32_0, %c0_i32_1 : i32, i32, i32
  }
  func.func @transform_7(%arg0: i32) -> (i32, i32) {
    %c0_i32 = arith.constant 0 : i32
    %c0_i32_0 = arith.constant 0 : i32
    %c0_i32_1 = arith.constant 0 : i32
    return %c0_i32, %c0_i32_0 : i32, i32
  }
  func.func @transform_8(%arg0: i32) -> (i32, i32) {
    %c0_i32 = arith.constant 0 : i32
    %c0_i32_0 = arith.constant 0 : i32
    %c0_i32_1 = arith.constant 0 : i32
    return %c0_i32, %c0_i32_0 : i32, i32
  }
  func.func @transform_9(%arg0: i32) -> (i32, i32) {
    %c0_i32 = arith.constant 0 : i32
    %c0_i32_0 = arith.constant 0 : i32
    %c0_i32_1 = arith.constant 0 : i32
    return %c0_i32, %c0_i32_0 : i32, i32
  }
  func.func @transform_10(%arg0: i32) -> (i32, i32) {
    %c0_i32 = arith.constant 0 : i32
    %c0_i32_0 = arith.constant 0 : i32
    %c0_i32_1 = arith.constant 0 : i32
    return %c0_i32, %c0_i32_0 : i32, i32
  }
  func.func @transform_11(%arg0: i32) -> (i32, i32, i32) {
    %c0_i32 = arith.constant 0 : i32
    %c0_i32_0 = arith.constant 0 : i32
    %c0_i32_1 = arith.constant 0 : i32
    %c0_i32_2 = arith.constant 0 : i32
    return %c0_i32, %c0_i32_0, %c0_i32_1 : i32, i32, i32
  }
  func.func @transform_12(%arg0: i32) -> (i32, i32, i32) {
    %c0_i32 = arith.constant 0 : i32
    %c0_i32_0 = arith.constant 0 : i32
    %c0_i32_1 = arith.constant 0 : i32
    %c0_i32_2 = arith.constant 0 : i32
    return %c0_i32, %c0_i32_0, %c0_i32_1 : i32, i32, i32
  }
  func.func @transform_13(%arg0: i32) -> (i32, i32) {
    %c0_i32 = arith.constant 0 : i32
    %c0_i32_0 = arith.constant 0 : i32
    %c0_i32_1 = arith.constant 0 : i32
    return %c0_i32, %c0_i32_0 : i32, i32
  }
  func.func @transform_14(%arg0: i32) -> (i32, i32) {
    %c0_i32 = arith.constant 0 : i32
    %c0_i32_0 = arith.constant 0 : i32
    %c0_i32_1 = arith.constant 0 : i32
    return %c0_i32, %c0_i32_0 : i32, i32
  }
  func.func @transform_15(%arg0: i32) -> (i32, i32) {
    %c0_i32 = arith.constant 0 : i32
    %c0_i32_0 = arith.constant 0 : i32
    %c0_i32_1 = arith.constant 0 : i32
    return %c0_i32, %c0_i32_0 : i32, i32
  }
  func.func @transform_16(%arg0: i32) -> (i32, i32) {
    %c0_i32 = arith.constant 0 : i32
    %c0_i32_0 = arith.constant 0 : i32
    %c0_i32_1 = arith.constant 0 : i32
    return %c0_i32, %c0_i32_0 : i32, i32
  }
  func.func @transform_17(%arg0: i32) -> (i32, i32) {
    %c0_i32 = arith.constant 0 : i32
    %c0_i32_0 = arith.constant 0 : i32
    %c0_i32_1 = arith.constant 0 : i32
    return %c0_i32, %c0_i32_0 : i32, i32
  }
  func.func @transform_18(%arg0: i32) -> (i32, i32) {
    %c0_i32 = arith.constant 0 : i32
    %c0_i32_0 = arith.constant 0 : i32
    %c0_i32_1 = arith.constant 0 : i32
    return %c0_i32, %c0_i32_0 : i32, i32
  }
  func.func @transform_19(%arg0: i32) -> (i32, i32) {
    %c0_i32 = arith.constant 0 : i32
    %c0_i32_0 = arith.constant 0 : i32
    %c0_i32_1 = arith.constant 0 : i32
    return %c0_i32, %c0_i32_0 : i32, i32
  }
  func.func @transform_20(%arg0: i32) -> (i32, i32) {
    %c0_i32 = arith.constant 0 : i32
    %c0_i32_0 = arith.constant 0 : i32
    %c0_i32_1 = arith.constant 0 : i32
    return %c0_i32, %c0_i32_0 : i32, i32
  }
  func.func @transform_21(%arg0: i32) -> (i32, i32) {
    %c0_i32 = arith.constant 0 : i32
    %c0_i32_0 = arith.constant 0 : i32
    return %arg0, %c0_i32 : i32, i32
  }
}

</mosaic_0001>

<bundles_post_ra>
// kernel: example_net_forward.1
= control target key start
LH: loop header
LB: loop body
LE: loop exit
PB: predicated region body
PF: predicated region fallthrough
CT: control target
= control target key end

     0   :  { %s11343_s0 = inlined_call_operand.vmem [shape: f32[2,28,28], index: 0, kind: input, shape index: {}]   ;;  %s11344_s1 = inlined_call_operand.vmem [shape: bf16[3,28,416], index: 1, kind: input, shape index: {}]   ;;  %s11345_s2 = inlined_call_operand.vmem [shape: bf16[13,26], index: 2, kind: input, shape index: {}]   ;;  %s11346_s3 = inlined_call_operand.vmem [shape: bf16[13,26], index: 3, kind: input, shape index: {}]   ;;  %s11347_s4 = inlined_call_operand.vmem [shape: bf16[416,208], index: 4, kind: input, shape index: {}]   ;;  %s11348_s5 = inlined_call_operand.hbm [shape: bf16[416,208], index: 5, kind: input, shape index: {}]   ;;  %s11349_s6 = inlined_call_operand.vmem [shape: bf16[3,208,352], index: 6, kind: input, shape index: {}]   ;;  %s11350_s7 = inlined_call_operand.vmem [shape: bf16[5,11], index: 7, kind: input, shape index: {}]   ;;  %s11351_s8 = inlined_call_operand.vmem [shape: bf16[5,11], index: 8, kind: input, shape index: {}]   ;;  %s11352_s9 = inlined_call_operand.vmem [shape: bf16[352,160], index: 9, kind: input, shape index: {}]   ;;  %s11353_s10 = inlined_call_operand.vmem [shape: bf16[352,160], index: 10, kind: input, shape index: {}]   ;;  %s11354_s11 = inlined_call_operand.hbm [shape: bf16[3,160,96], index: 11, kind: input, shape index: {}]   ;;  %s11355_s12 = inlined_call_operand.hbm [shape: bf16[3,96,120], index: 12, kind: input, shape index: {}]   ;;  %s11356_s13 = inlined_call_operand.vmem [shape: bf16[120,84], index: 13, kind: input, shape index: {}]   ;;  %s11357_s14 = inlined_call_operand.hbm [shape: bf16[84,128], index: 14, kind: input, shape index: {}]   ;;  %s11358_s15 = inlined_call_operand.hbm [shape: f32[1,416], index: 15, kind: input, shape index: {}]   ;;  %s11359_s16 = inlined_call_operand.hbm [shape: f32[1,352], index: 16, kind: input, shape index: {}]   ;;  %s11360_s17 = inlined_call_operand.vmem [shape: f32[1,96], index: 17, kind: input, shape index: {}]   ;;  %s11361_s18 = inlined_call_operand.hbm [shape: f32[1,120], index: 18, kind: input, shape index: {}]   ;;  %s11362_s19 = inlined_call_operand.hbm [shape: f32[1,84], index: 19, kind: input, shape index: {}]   ;;  %s11363_s20 = inlined_call_operand.hbm [shape: f32[1,128], index: 20, kind: input, shape index: {}]   ;;  %s11364_s21 = inlined_call_operand.hbm [shape: f32[2,128], index: 21, kind: output, shape index: {}]  }
   0x1   :  { %11372 = sst [smem:[#allocation24_spill]] %s11343_s0 }
   0x2   :  { %11373 = sst [smem:[#allocation25_spill]] %s11344_s1 }
   0x3   :  { %11374 = sst [smem:[#allocation26_spill]] %s11345_s2 }
   0x4   :  { %11375 = sst [smem:[#allocation27_spill]] %s11346_s3 }
   0x5   :  { %11376 = sst [smem:[#allocation28_spill]] %s11347_s4 }
   0x6   :  { %11377 = sst [smem:[#allocation29_spill]] %s11348_s5 }
   0x7   :  { %11378 = sst [smem:[#allocation30_spill]] %s11364_s21 }
   0x8   :  { %26 = vsyncpa [#allocation3], 0 }
   0x9   :  { %27 = vsyncpa [#allocation6], 0 }
   0xa   :  { %28 = vsyncpa [#allocation9], 0 }
   0xb   :  { %29 = vsyncpa [#allocation12], 0 }
   0xc   :  { %30 = vsyncpa [#allocation15], 0 }
   0xd   :  { %31 = vsyncpa [#allocation4], 0  ;;  %s8730_s2 = smov [#allocation5]   ;;  %s8498_s3 = scalar_lea.hbm %s11354_s11, 3840 }
   0xe   :  { %s69_s25 = sshll.u32 %s8730_s2, 4  ;;  %p8499_p0 = scmp.ne.s32.totalorder %s11354_s11, %s8498_s3  ;;  %s70_s25 = int_to_ptr.vmem [resolvable:$true] %s69_s25 }
   0xf   :  { %p8502_p1 = scmp.lt.u32.totalorder %s8498_s3, %s11354_s11 }
  0x11   :  { %p8504_p2 = pnand %p8502_p1, %p8499_p0 }
  0x13   :  { %8507 = shalt.err (!%p8504_p2)
}
  0x14   :  { %s8508_s30 = scalar_lea.vmem %s70_s25, 3840  ;;  %p8513_p4 = scmp.lt.s32.totalorder %s70_s25, %s70_s25 }
  0x15   :  { %p8509_p3 = scmp.ne.s32.totalorder %s70_s25, %s8508_s30  ;;  %p8514_p5 = scmp.lt.s32.totalorder %s8508_s30, %s8508_s30 }
  0x17   :  { %p8515_p6 = por %p8514_p5, %p8513_p4 }
  0x19   :  { %p8516_p7 = pnand %p8515_p6, %p8509_p3 }
  0x1b   :  { %8519 = shalt.err (!%p8516_p7)
}
  0x1c   :  { %s8731_s5 = smov 64   ;;  %s8732_s22 = smov 4  }
  0x1d   :  { %75 = dma.hbm_to_vmem [thread:$0]  %s11354_s11, 3840, %s70_s25, [#allocation6], %s8731_s5, %s8731_s5, %s8732_s22  }
  0x1e   :  { %s8733_s24 = smov [#allocation8]   ;;  %s8734_s26 = smov [#allocation11]  }
  0x1f   :  { %s95_s2 = sshll.u32 %s8733_s24, 4  ;;  %s118_s27 = sshll.u32 %s8734_s26, 4  ;;  %s96_s2 = int_to_ptr.vmem [resolvable:$true] %s95_s2  ;;  %s119_s27 = int_to_ptr.vmem [resolvable:$true] %s118_s27 }
  0x20   :  { %s8520_s29 = scalar_lea.hbm %s11357_s14, 704 }
  0x21   :  { %p8521_p8 = scmp.ne.s32.totalorder %s11357_s14, %s8520_s29  ;;  %p8524_p9 = scmp.lt.u32.totalorder %s8520_s29, %s11357_s14 }
  0x23   :  { %p8526_p10 = pnand %p8524_p9, %p8521_p8 }
  0x25   :  { %8529 = shalt.err (!%p8526_p10)
}
  0x26   :  { %s8530_s11 = scalar_lea.vmem %s96_s2, 704  ;;  %p8535_p12 = scmp.lt.s32.totalorder %s96_s2, %s96_s2 }
  0x27   :  { %p8531_p11 = scmp.ne.s32.totalorder %s96_s2, %s8530_s11  ;;  %p8536_p13 = scmp.lt.s32.totalorder %s8530_s11, %s8530_s11 }
  0x29   :  { %p8537_p0 = por %p8536_p13, %p8535_p12 }
  0x2b   :  { %p8538_p1 = pnand %p8537_p0, %p8531_p11 }
  0x2d   :  { %8541 = shalt.err (!%p8538_p1)
}
  0x2e   :  { %101 = dma.hbm_to_vmem [thread:$0]  %s11357_s14, 704, %s96_s2, [#allocation9], %s8731_s5, %s8731_s5, %s8732_s22  }
  0x2f   :  { %s8542_s24 = scalar_lea.hbm %s11359_s16, 48 }
  0x30   :  { %p8543_p2 = scmp.ne.s32.totalorder %s11359_s16, %s8542_s24  ;;  %p8546_p3 = scmp.lt.u32.totalorder %s8542_s24, %s11359_s16 }
  0x32   :  { %p8548_p4 = pnand %p8546_p3, %p8543_p2 }
  0x34   :  { %8551 = shalt.err (!%p8548_p4)
}
  0x35   :  { %s8552_s0 = scalar_lea.vmem %s119_s27, 48  ;;  %s8556_s4 = scalar_lea.vmem %s119_s27, 64 }
  0x36   :  { %p8553_p5 = scmp.ne.s32.totalorder %s119_s27, %s8552_s0  ;;  %p8557_p6 = scmp.lt.s32.totalorder %s119_s27, %s119_s27 }
  0x37   :  { %p8558_p7 = scmp.lt.s32.totalorder %s8556_s4, %s8552_s0 }
  0x39   :  { %p8559_p8 = por %p8558_p7, %p8557_p6 }
  0x3b   :  { %p8560_p9 = pnand %p8559_p8, %p8553_p5 }
  0x3d   :  { %8563 = shalt.err (!%p8560_p9)
}
  0x3e   :  { %121 = dma.hbm_to_vmem [thread:$0]  %s11359_s16, 48, %s119_s27, [#allocation12]  }
  0x3f   :  { %s8735_s30 = smov [#allocation14]   ;;  %s8736_s25 = smov [#allocation2]  }
  0x40   :  { %s140_s11 = sshll.u32 %s8735_s30, 4  ;;  %s47_s23 = sshll.u32 %s8736_s25, 4  ;;  %s141_s11 = int_to_ptr.vmem [resolvable:$true] %s140_s11  ;;  %s48_s23 = int_to_ptr.vmem [resolvable:$true] %s47_s23 }
  0x41   :  { %s8564_s24 = scalar_lea.hbm %s11362_s19, 16 }
  0x42   :  { %p8565_p10 = scmp.ne.s32.totalorder %s11362_s19, %s8564_s24  ;;  %p8568_p11 = scmp.lt.u32.totalorder %s8564_s24, %s11362_s19 }
  0x44   :  { %p8570_p12 = pnand %p8568_p11, %p8565_p10 }
  0x46   :  { %8573 = shalt.err (!%p8570_p12)
}
  0x47   :  { %s8574_s16 = scalar_lea.vmem %s141_s11, 16  ;;  %s8578_s27 = scalar_lea.vmem %s141_s11, 32 }
  0x48   :  { %p8575_p13 = scmp.ne.s32.totalorder %s141_s11, %s8574_s16  ;;  %p8579_p0 = scmp.lt.s32.totalorder %s141_s11, %s141_s11 }
  0x49   :  { %p8580_p1 = scmp.lt.s32.totalorder %s8578_s27, %s8574_s16 }
  0x4b   :  { %p8581_p2 = por %p8580_p1, %p8579_p0 }
  0x4d   :  { %p8582_p3 = pnand %p8581_p2, %p8575_p13 }
  0x4f   :  { %8585 = shalt.err (!%p8582_p3)
}
  0x50   :  { %143 = dma.hbm_to_vmem [thread:$0]  %s11362_s19, 16, %s141_s11, [#allocation15]  }
  0x51   :  { %s11379_s30 = sld [smem:[#allocation29_spill]] }
  0x57   :  { %s8586_s25 = scalar_lea.hbm %s11379_s30, 6656 }
  0x58   :  { %p8587_p4 = scmp.ne.s32.totalorder %s11379_s30, %s8586_s25  ;;  %p8590_p5 = scmp.lt.u32.totalorder %s8586_s25, %s11379_s30 }
  0x5a   :  { %p8592_p6 = pnand %p8590_p5, %p8587_p4 }
  0x5c   :  { %8595 = shalt.err (!%p8592_p6)
}
  0x5d   :  { %s8596_s3 = scalar_lea.vmem %s48_s23, 6656  ;;  %p8601_p8 = scmp.lt.s32.totalorder %s48_s23, %s48_s23 }
  0x5e   :  { %p8597_p7 = scmp.ne.s32.totalorder %s48_s23, %s8596_s3  ;;  %p8602_p9 = scmp.lt.s32.totalorder %s8596_s3, %s8596_s3 }
  0x60   :  { %p8603_p10 = por %p8602_p9, %p8601_p8 }
  0x62   :  { %p8604_p11 = pnand %p8603_p10, %p8597_p7 }
  0x64   :  { %8607 = shalt.err (!%p8604_p11)
}
  0x65   :  { %s8737_s19 = smov 128   ;;  %s8738_s11 = smov 8  }
  0x66   :  { %53 = dma.hbm_to_vmem [thread:$0]  %s11379_s30, 6656, %s48_s23, [#allocation3], %s8737_s19, %s8737_s19, %s8738_s11  }
  0x67   :  { %s8739_s16 = smov [#allocation7]   ;;  %s8740_s0 = smov [#allocation10]  }
  0x68   :  { %s81_s27 = sshll.u32 %s8739_s16, 4  ;;  %s108_s4 = sshll.u32 %s8740_s0, 4  ;;  %s82_s27 = int_to_ptr.vmem [resolvable:$true] %s81_s27  ;;  %s109_s4 = int_to_ptr.vmem [resolvable:$true] %s108_s4 }
  0x69   :  { %s8608_s25 = scalar_lea.hbm %s11355_s12, 2304 }
  0x6a   :  { %p8609_p12 = scmp.ne.s32.totalorder %s11355_s12, %s8608_s25  ;;  %p8612_p13 = scmp.lt.u32.totalorder %s8608_s25, %s11355_s12 }
  0x6c   :  { %p8614_p0 = pnand %p8612_p13, %p8609_p12 }
  0x6e   :  { %8617 = shalt.err (!%p8614_p0)
}
  0x6f   :  { %s8618_s23 = scalar_lea.vmem %s82_s27, 2304  ;;  %p8623_p2 = scmp.lt.s32.totalorder %s82_s27, %s82_s27 }
  0x70   :  { %p8619_p1 = scmp.ne.s32.totalorder %s82_s27, %s8618_s23  ;;  %p8624_p3 = scmp.lt.s32.totalorder %s8618_s23, %s8618_s23 }
  0x72   :  { %p8625_p4 = por %p8624_p3, %p8623_p2 }
  0x74   :  { %p8626_p5 = pnand %p8625_p4, %p8619_p1 }
  0x76   :  { %8629 = shalt.err (!%p8626_p5)
}
  0x77   :  { %87 = dma.hbm_to_vmem [thread:$0]  %s11355_s12, 2304, %s82_s27, [#allocation6], %s8731_s5, %s8731_s5, %s8732_s22  }
  0x78   :  { %s8630_s28 = scalar_lea.hbm %s11358_s15, 64 }
  0x79   :  { %p8631_p6 = scmp.ne.s32.totalorder %s11358_s15, %s8630_s28  ;;  %p8634_p7 = scmp.lt.u32.totalorder %s8630_s28, %s11358_s15 }
  0x7b   :  { %p8636_p8 = pnand %p8634_p7, %p8631_p6 }
  0x7d   :  { %8639 = shalt.err (!%p8636_p8)
}
  0x7e   :  { %s8640_s2 = scalar_lea.vmem %s109_s4, 64  ;;  %p8645_p10 = scmp.lt.s32.totalorder %s109_s4, %s109_s4 }
  0x7f   :  { %p8641_p9 = scmp.ne.s32.totalorder %s109_s4, %s8640_s2  ;;  %p8646_p11 = scmp.lt.s32.totalorder %s8640_s2, %s8640_s2 }
  0x81   :  { %p8647_p12 = por %p8646_p11, %p8645_p10 }
  0x83   :  { %p8648_p13 = pnand %p8647_p12, %p8641_p9 }
  0x85   :  { %8651 = shalt.err (!%p8648_p13)
}
  0x86   :  { %111 = dma.hbm_to_vmem [thread:$0]  %s11358_s15, 64, %s109_s4, [#allocation9]  }
  0x87   :  { %s8741_s22 = smov [#allocation13]   ;;  %s8742_s25 = smov [#allocation16]  }
  0x88   :  { %s130_s27 = sshll.u32 %s8741_s22, 4  ;;  %s150_s1 = sshll.u32 %s8742_s25, 4  ;;  %s131_s27 = int_to_ptr.vmem [resolvable:$true] %s130_s27  ;;  %s151_s1 = int_to_ptr.vmem [resolvable:$true] %s150_s1 }
  0x89   :  { %s8652_s26 = scalar_lea.hbm %s11361_s18, 16 }
  0x8a   :  { %p8653_p0 = scmp.ne.s32.totalorder %s11361_s18, %s8652_s26  ;;  %p8656_p1 = scmp.lt.u32.totalorder %s8652_s26, %s11361_s18 }
  0x8c   :  { %p8658_p2 = pnand %p8656_p1, %p8653_p0 }
  0x8e   :  { %8661 = shalt.err (!%p8658_p2)
}
  0x8f   :  { %s8662_s15 = scalar_lea.vmem %s131_s27, 16  ;;  %s8666_s4 = scalar_lea.vmem %s131_s27, 32 }
  0x90   :  { %p8663_p3 = scmp.ne.s32.totalorder %s131_s27, %s8662_s15  ;;  %p8667_p4 = scmp.lt.s32.totalorder %s131_s27, %s131_s27 }
  0x91   :  { %p8668_p5 = scmp.lt.s32.totalorder %s8666_s4, %s8662_s15 }
  0x93   :  { %p8669_p6 = por %p8668_p5, %p8667_p4 }
  0x95   :  { %p8670_p7 = pnand %p8669_p6, %p8663_p3 }
  0x97   :  { %8673 = shalt.err (!%p8670_p7)
}
  0x98   :  { %133 = dma.hbm_to_vmem [thread:$0]  %s11361_s18, 16, %s131_s27, [#allocation12]  }
  0x99   :  { %s8674_s0 = scalar_lea.hbm %s11363_s20, 16 }
  0x9a   :  { %p8675_p8 = scmp.ne.s32.totalorder %s11363_s20, %s8674_s0  ;;  %p8678_p9 = scmp.lt.u32.totalorder %s8674_s0, %s11363_s20 }
  0x9c   :  { %p8680_p10 = pnand %p8678_p9, %p8675_p8 }
  0x9e   :  { %8683 = shalt.err (!%p8680_p10)
}
  0x9f   :  { %s8684_s22 = scalar_lea.vmem %s151_s1, 16  ;;  %s8688_s25 = scalar_lea.vmem %s151_s1, 32 }
  0xa0   :  { %p8685_p11 = scmp.ne.s32.totalorder %s151_s1, %s8684_s22  ;;  %p8689_p12 = scmp.lt.s32.totalorder %s151_s1, %s151_s1 }
  0xa1   :  { %p8690_p13 = scmp.lt.s32.totalorder %s8688_s25, %s8684_s22 }
  0xa3   :  { %p8691_p0 = por %p8690_p13, %p8689_p12 }
  0xa5   :  { %p8692_p1 = pnand %p8691_p0, %p8685_p11 }
  0xa7   :  { %8695 = shalt.err (!%p8692_p1)
}
  0xa8   :  { %153 = dma.hbm_to_vmem [thread:$0]  %s11363_s20, 16, %s151_s1, [#allocation15]  }
  0xa9   :  { %8718 = dma.done.wait [#allocation3], 6656  }
  0xaa   :  { %8719 = vsyncadd [#allocation3], 4294960640 }
  0xab   :  { %8720 = dma.done.wait [#allocation6], 6144  }
  0xac   :  { %8721 = vsyncadd [#allocation6], 4294961152 }
  0xad   :  { %8722 = dma.done.wait [#allocation9], 768  }
  0xae   :  { %8723 = vsyncadd [#allocation9], 4294966528 }
  0xaf   :  { %8724 = dma.done.wait [#allocation12], 64  }
  0xb0   :  { %8725 = vsyncadd [#allocation12], 4294967232 }
  0xb1   :  { %8726 = dma.done.wait [#allocation15], 32  }
  0xb2   :  { %8727 = vsyncadd [#allocation15], 4294967264  ;;  %v8743_v0 = vmov 0   ;;  %s11380_s26 = sld [smem:[#allocation25_spill]]  ;;  %vm761_vm0 = vcmask 1045504   ;;  %s11381_s0 = sld [smem:[#allocation24_spill]]  ;;  %v1221_v49 = vlaneseq }
  0xb3   :  { %806 = vmatprep.mubr.bf16.mxu0 %v8743_v0  ;;  %859 = vmatprep.mubr.bf16.mxu1 %v8743_v0  ;;  %vm702_vm1 = vsmask.f32 7424  ;;  %vm754_vm2 = vcmask 228352   ;;  %vm1040_vm3 = vcmask 1046528   ;;  %v690_v53 = vld [vmem:[#allocation10] sm:$0xf] }
  0xb4   :  { %v9131_v50 = vshrl.u32 %v1221_v49, 7  ;;  %vm1290_vm4 = vcmask 1044480   ;;  %s11382_s14 = sld [smem:[#allocation26_spill]]  ;;  %vm1286_vm5 = vcmask 211968   ;;  %s11383_s5 = sld [smem:[#allocation28_spill]]  ;;  %vm1755_vm6 = vcmask 261120  }
  0xb5   :  { %s11384_s18 = sld [smem:[#allocation27_spill]]  ;;  %vm2420_vm7 = vcmask 654336   ;;  %vm8745_vm8 = vmmov 0   ;;  %vm3139_vm9 = vcmask 89088   ;;  %vm3545_vm10 = vcmask 785408  }
  0xb6   :  { %v1223_v51 = vsub.s32 0, %v9131_v50  ;;  %v1231_v52 = vsub.s32 2, %v9131_v50  ;;  %v1227_v54 = vsub.s32 1, %v9131_v50  ;;  %v1235_v55 = vsub.s32 3, %v9131_v50 }
  0xb7   :  { %vm4569_vm11 = vcmask 1043456   ;;  %vm4565_vm12 = vcmask 982016   ;;  %vm4652_vm13 = vcmask 1041408   ;;  %vm4648_vm14 = vcmask 687104  }
  0xb8   :  { %v7559_v1 = vld [vmem:[%s11380_s26 + $0x44] ss:$16 sps:$4 sm:$0xff]   ;;  %v7561_v2 = vld [vmem:[%s11380_s26 + $0x4c] ss:$16 sps:$4 sm:$0xff]   ;;  %v7563_v3 = vld [vmem:[%s11380_s26 + $0x40] ss:$16 sps:$4 sm:$0xff]   ;;  %v9139_v56 = vrot.slane %v690_v53, %v1223_v51  ;;  %v9143_v57 = vrot.slane %v690_v53, %v1231_v52  ;;  %v9147_v58 = vrot.slane %v690_v53, %v1227_v54  ;;  %v9149_v59 = vrot.slane %v690_v53, %v1235_v55 }
  0xb9   :  { %774 = vmatprep.subr.bf16.mxu0 %v7559_v1  ;;  %v7564_v4 = vld [vmem:[%s11380_s26 + $0x48] ss:$16 sps:$4 sm:$0xff]   ;;  %827 = vmatprep.subr.bf16.mxu1 %v7561_v2  ;;  %v7565_v5 = vld [vmem:[%s11380_s26 + $0x64] ss:$16 sps:$4 sm:$0x3f]  }
  0xba   :  { %775 = vmatpush1.bf16.msra.mxu0 %v7563_v3  ;;  %828 = vmatpush1.bf16.msra.mxu1 %v7564_v4  ;;  %v7567_v6 = vld [vmem:[%s11380_s26 + $0x6c] ss:$16 sps:$4 sm:$0x3f]   ;;  %v696_v7 = vld [vmem:[%s11381_s0] sm:$0xff]  ;;  %v698_v11 = vld [vmem:[%s11381_s0 + $0x10] sm:$0xff] }
  0xbb   :  { %6665 = vmatprep.subr.msk.bf16.mxu0 %vm761_vm0, %v7565_v5  ;;  %v7569_v8 = vld [vmem:[%s11380_s26 + $0x60] ss:$16 sps:$4 sm:$0x3f]   ;;  %v7570_v9 = vld [vmem:[%s11380_s26 + $0x68] ss:$16 sps:$4 sm:$0x3f]   ;;  %6668 = vmatprep.subr.msk.bf16.mxu1 %vm761_vm0, %v7567_v6 }
  0xbc   :  { %v697_v10 = vld [vmem:[%s11381_s0 + $0x8] sm:$0xff]  ;;  %v699_v12 = vld [vmem:[%s11381_s0 + $0x18] sm:$0xf]  ;;  %v9016_v13 = vsel %vm761_vm0, %v7569_v8, 0  ;;  %v9019_v14 = vsel %vm761_vm0, %v7570_v9, 0 }
  0xbd   :  { %v9021_v15 = vpack.c.bf16 %v697_v10, %v696_v7  ;;  %v9023_v16 = vpack.c.bf16 %v699_v12, %v698_v11  ;;  %v7573_v17 = vld [vmem:[%s11380_s26 + $0x4] ss:$16 sps:$4 sm:$0xff]   ;;  %v7576_v21 = vld [vmem:[%s11380_s26 + $0xc] ss:$16 sps:$4 sm:$0xff]   ;;  %v7571_v24 = vld [vmem:[%s11380_s26] ss:$16 sps:$4 sm:$0xff]  }
  0xbe   :  { %777 = vmatpush1.bf16.msra.mxu0 %v9016_v13  ;;  %830 = vmatpush1.bf16.msra.mxu1 %v9019_v14  ;;  %v7577_v26 = vld [vmem:[%s11380_s26 + $0x24] ss:$16 sps:$4 sm:$0x3f]   ;;  %v7579_v27 = vld [vmem:[%s11380_s26 + $0x2c] ss:$16 sps:$4 sm:$0x3f]  }
  0xbf   :  { %v704_v18 = vshrl.u32 %v9021_v15, 16  ;;  %v706_v19 = vshll.u32 %v9021_v15, 16  ;;  %v711_v20 = vshll.u32 %v9023_v16, 16  ;;  %932 = vmatprep.subr.bf16.mxu0 %v7573_v17  ;;  %985 = vmatprep.subr.bf16.mxu1 %v7576_v21  ;;  %v7574_v28 = vld [vmem:[%s11380_s26 + $0x8] ss:$16 sps:$4 sm:$0xff]   ;;  %v715_v32 = vshrl.u32 %v9023_v16, 16 }
  0xc0   :  { %v7581_v29 = vld [vmem:[%s11380_s26 + $0x20] ss:$16 sps:$4 sm:$0x3f]   ;;  %v7582_v31 = vld [vmem:[%s11380_s26 + $0x28] ss:$16 sps:$4 sm:$0x3f]  }
  0xc1   :  { %v708_v22 = vrot.slane %v706_v19, 1  ;;  %v713_v23 = vrot.slane %v711_v20, 1  ;;  %v9061_v33 = vsel %vm761_vm0, %v7581_v29, 0  ;;  %v7585_v34 = vld [vmem:[%s11380_s26 + $0x84] ss:$16 sps:$4 sm:$0xff]   ;;  %v9069_v35 = vsel %vm761_vm0, %v7582_v31, 0 }
  0xc2   :  { %v7588_v36 = vld [vmem:[%s11380_s26 + $0x8c] ss:$16 sps:$4 sm:$0xff]   ;;  %v7583_v38 = vld [vmem:[%s11380_s26 + $0x80] ss:$16 sps:$4 sm:$0xff]   ;;  %v7586_v39 = vld [vmem:[%s11380_s26 + $0x88] ss:$16 sps:$4 sm:$0xff]  }
  0xc3   :  { %v709_v25 = vor.u32 %v708_v22, %v704_v18  ;;  %v717_v37 = vor.u32 %v715_v32, %v713_v23  ;;  %v7593_v40 = vld [vmem:[%s11380_s26 + $0xa0] ss:$16 sps:$4 sm:$0x3f]   ;;  %v7589_v41 = vld [vmem:[%s11380_s26 + $0xa4] ss:$16 sps:$4 sm:$0x3f]  }
  0xc4   :  { %v7591_v42 = vld [vmem:[%s11380_s26 + $0xac] ss:$16 sps:$4 sm:$0x3f]   ;;  %v7594_v43 = vld [vmem:[%s11380_s26 + $0xa8] ss:$16 sps:$4 sm:$0x3f]  }
  0xc5   :  { %v714_v30 = vsel %vm702_vm1, %v709_v25, %v713_v23  ;;  %v9105_v44 = vsel %vm761_vm0, %v7593_v40, 0  ;;  %v9110_v45 = vsel %vm761_vm0, %v7594_v43, 0  ;;  %v1041_v46 = vrot.slane %v9021_v15, 1 }
  0xc6   :  { %6666 = vmatmul.mubr.msk.bf16.vlgmr.msra.gmra.mrb[0].mxu0 %vm754_vm2, %v714_v30  ;;  %6669 = vmatmul.mubr.msk.bf16.vlgmr.msra.gmra.mrb[0].mxu1 %vm754_vm2, %v714_v30  ;;  %v1042_v47 = vrot.slane %v9023_v16, 1 }
  0xc7   :  { %933 = vmatpush1.bf16.msra.mxu0 %v7571_v24  ;;  %816 = vmatprep.mubr.bf16.mxu0 %v8743_v0 }
  0xc8   :  { %869 = vmatprep.mubr.bf16.mxu1 %v8743_v0  ;;  %986 = vmatpush1.bf16.msra.mxu1 %v7574_v28  ;;  %v1043_v48 = vsel %vm1040_vm3, %v1041_v46, %v1042_v47 }
  0xc9   :  { %6679 = vmatprep.subr.msk.bf16.mxu0 %vm761_vm0, %v7577_v26  ;;  %6682 = vmatprep.subr.msk.bf16.mxu1 %vm761_vm0, %v7579_v27 }
  0xcb   :  { %935 = vmatpush1.bf16.msra.mxu0 %v9061_v33 }
  0xcc   :  { %988 = vmatpush1.bf16.msra.mxu1 %v9069_v35  ;;  %1098 = vmatprep.subr.bf16.mxu0 %v7585_v34 }
  0xcd   :  { %1151 = vmatprep.subr.bf16.mxu1 %v7588_v36 }
  0xce   :  { %6667 = vmatmul.mubr.msk.bf16.gmra.mrb[4].mxu0 %vm754_vm2, %v717_v37  ;;  %6670 = vmatmul.mubr.msk.bf16.gmra.mrb[4].mxu1 %vm754_vm2, %v717_v37 }
  0xcf   :  { %964 = vmatprep.mubr.bf16.mxu0 %v8743_v0  ;;  %1017 = vmatprep.mubr.bf16.mxu1 %v8743_v0 }
  0xd6   :  { %6680 = vmatmul.mubr.msk.bf16.vlgmr.msra.gmra.mrb[0].mxu0 %vm754_vm2, %v9021_v15  ;;  %6683 = vmatmul.mubr.msk.bf16.vlgmr.msra.gmra.mrb[0].mxu1 %vm754_vm2, %v9021_v15 }
  0xd7   :  { %1099 = vmatpush1.bf16.msra.mxu0 %v7583_v38  ;;  %974 = vmatprep.mubr.bf16.mxu0 %v8743_v0 }
  0xd8   :  { %1027 = vmatprep.mubr.bf16.mxu1 %v8743_v0  ;;  %1152 = vmatpush1.bf16.msra.mxu1 %v7586_v39 }
  0xd9   :  { %6693 = vmatprep.subr.msk.bf16.mxu0 %vm761_vm0, %v7589_v41  ;;  %6696 = vmatprep.subr.msk.bf16.mxu1 %vm761_vm0, %v7591_v42 }
  0xdb   :  { %1101 = vmatpush1.bf16.msra.mxu0 %v9105_v44 }
  0xdc   :  { %1154 = vmatpush1.bf16.msra.mxu1 %v9110_v45 }
  0xde   :  { %6681 = vmatmul.mubr.msk.bf16.gmra.mrb[4].mxu0 %vm754_vm2, %v9023_v16  ;;  %6684 = vmatmul.mubr.msk.bf16.gmra.mrb[4].mxu1 %vm754_vm2, %v9023_v16 }
  0xdf   :  { %1130 = vmatprep.mubr.bf16.mxu0 %v8743_v0  ;;  %1183 = vmatprep.mubr.bf16.mxu1 %v8743_v0 }
  0xe6   :  { %6694 = vmatmul.mubr.msk.bf16.vlgmr.msra.gmra.mrb[0].mxu0 %vm754_vm2, %v1043_v48  ;;  %6697 = vmatmul.mubr.msk.bf16.vlgmr.msra.gmra.mrb[0].mxu1 %vm754_vm2, %v1043_v48 }
  0xe7   :  { %1140 = vmatprep.mubr.bf16.mxu0 %v8743_v0  ;;  %1193 = vmatprep.mubr.bf16.mxu1 %v8743_v0 }
  0xee   :  { %6695 = vmatmul.mubr.msk.bf16.gmra.mrb[4].mxu0 %vm754_vm2, %v1042_v47  ;;  %6698 = vmatmul.mubr.msk.bf16.gmra.mrb[4].mxu1 %vm754_vm2, %v1042_v47 }
  0xef   :  { %1335 = vmatprep.mubr.bf16.mxu0 %v8743_v0  ;;  %1378 = vmatprep.mubr.bf16.mxu1 %v8743_v0 }
 0x1b9   :  { %v1132_v60 = vpop.f32.mrb[0].mxu0  ;;  %v1185_v61 = vpop.f32.mrb[0].mxu1 }
 0x1ba   :  { %v1241_v62 = vadd.f32 %v9139_v56, %v1132_v60  ;;  %v1134_v63 = vpop.f32.mrb[1].mxu0  ;;  %v1243_v1 = vadd.f32 %v9143_v57, %v1185_v61  ;;  %v1187_v2 = vpop.f32.mrb[1].mxu1 }
 0x1bb   :  { %v1242_v3 = vadd.f32 %v9147_v58, %v1134_v63  ;;  %v1136_v4 = vpop.f32.mrb[2].mxu0  ;;  %v1244_v5 = vadd.f32 %v9149_v59, %v1187_v2  ;;  %v1189_v6 = vpop.f32.mrb[2].mxu1 }
 0x1bc   :  { %v1245_v7 = vadd.f32 %v9139_v56, %v1136_v4  ;;  %v1138_v8 = vpop.f32.mrb[3].mxu0  ;;  %v1259_v9 = vmax.f32 %v1243_v1, 0.0  ;;  %v1247_v10 = vadd.f32 %v9143_v57, %v1189_v6  ;;  %v1191_v11 = vpop.f32.mrb[3].mxu1  ;;  %v1257_v17 = vmax.f32 %v1241_v62, 0.0  ;;  %v7595_v6 = vld [vmem:[%s11382_s14] sm:$0x7f]  }
 0x1bd   :  { %v1246_v12 = vadd.f32 %v9147_v58, %v1138_v8  ;;  %v1260_v15 = vmax.f32 %v1244_v5, 0.0  ;;  %v1248_v16 = vadd.f32 %v9149_v59, %v1191_v11  ;;  %v1258_v20 = vmax.f32 %v1242_v3, 0.0  ;;  %v7602_v8 = vld [vmem:[#allocation2 + $0x4] ss:$8 sps:$4 sm:$0xff]   ;;  %v7600_v11 = vld [vmem:[#allocation2] ss:$8 sps:$4 sm:$0xff]  }
 0x1be   :  { %v1261_v18 = vmax.f32 %v1245_v7, 0.0  ;;  %v1263_v19 = vmax.f32 %v1247_v10, 0.0  ;;  %v7599_v7 = vld [vmem:[%s11383_s5 + $0x4] ss:$8 sps:$4 sm:$0xff]   ;;  %v7597_v10 = vld [vmem:[%s11383_s5] ss:$8 sps:$4 sm:$0xff]  }
 0x1bf   :  { %v1262_v21 = vmax.f32 %v1246_v12, 0.0  ;;  %v1264_v22 = vmax.f32 %v1248_v16, 0.0  ;;  %v7605_v12 = vld [vmem:[%s11383_s5 + $0x14] ss:$8 sps:$4 sm:$0xff]   ;;  %v7603_v16 = vld [vmem:[%s11383_s5 + $0x10] ss:$8 sps:$4 sm:$0xff]  }
 0x1c0   :  { %v1273_v23 = vpack.c.bf16 %v1261_v18, %v1257_v17  ;;  %v1275_v24 = vpack.c.bf16 %v1263_v19, %v1259_v9  ;;  %v7596_v9 = vld [vmem:[%s11384_s18] sm:$0x7f]   ;;  %v7606_v17 = vld [vmem:[#allocation2 + $0x10] ss:$8 sps:$4 sm:$0xff]  }
 0x1c1   :  { %v1274_v25 = vpack.c.bf16 %v1262_v21, %v1258_v20  ;;  %v1276_v26 = vpack.c.bf16 %v1264_v22, %v1260_v15  ;;  %v1142_v27 = vpop.f32.mrb[4].mxu0  ;;  %v1195_v28 = vpop.f32.mrb[4].mxu1  ;;  %v7608_v15 = vld [vmem:[#allocation2 + $0x14] ss:$8 sps:$4 sm:$0xff]   ;;  %v7611_v18 = vld [vmem:[%s11383_s5 + $0x24] ss:$8 sps:$4 sm:$0xff]  }
 0x1c2   :  { %v1249_v29 = vadd.f32 %v9139_v56, %v1142_v27  ;;  %v1251_v30 = vadd.f32 %v9143_v57, %v1195_v28  ;;  %v1144_v31 = vpop.f32.mrb[5].mxu0  ;;  %v1197_v32 = vpop.f32.mrb[5].mxu1  ;;  %v7614_v19 = vld [vmem:[#allocation2 + $0x24] ss:$8 sps:$4 sm:$0xff]   ;;  %v7609_v20 = vld [vmem:[%s11383_s5 + $0x20] ss:$8 sps:$4 sm:$0xff]  }
 0x1c3   :  { %v1250_v34 = vadd.f32 %v9147_v58, %v1144_v31  ;;  %v1252_v36 = vadd.f32 %v9149_v59, %v1197_v32  ;;  %v1146_v37 = vpop.f32.mrb[6].mxu0  ;;  %v1199_v38 = vpop.f32.mrb[6].mxu1  ;;  %1303 = vmatprep.subr.bf16.mxu0 %v1274_v25  ;;  %1346 = vmatprep.subr.bf16.mxu1 %v1276_v26  ;;  %v7612_v21 = vld [vmem:[#allocation2 + $0x20] ss:$8 sps:$4 sm:$0xff]   ;;  %v7617_v22 = vld [vmem:[%s11383_s5 + $0x34] ss:$8 sps:$4 sm:$0xff]  }
 0x1c4   :  { %v1267_v39 = vmax.f32 %v1251_v30, 0.0  ;;  %v1253_v40 = vadd.f32 %v9139_v56, %v1146_v37  ;;  %v1255_v41 = vadd.f32 %v9143_v57, %v1199_v38  ;;  %v1148_v42 = vpop.f32.mrb[7].mxu0  ;;  %v1201_v43 = vpop.f32.mrb[7].mxu1  ;;  %1304 = vmatpush1.bf16.msra.mxu0 %v1273_v23  ;;  %1347 = vmatpush1.bf16.msra.mxu1 %v1275_v24  ;;  %v1265_v49 = vmax.f32 %v1249_v29, 0.0  ;;  %v7626_v27 = vld [vmem:[#allocation2 + $0x44] ss:$8 sps:$4 sm:$0xff]  }
 0x1c5   :  { %v1268_v46 = vmax.f32 %v1252_v36, 0.0  ;;  %v1254_v47 = vadd.f32 %v9147_v58, %v1148_v42  ;;  %v1256_v48 = vadd.f32 %v9149_v59, %v1201_v43  ;;  %v1266_v60 = vmax.f32 %v1250_v34, 0.0  ;;  %v7621_v28 = vld [vmem:[%s11383_s5 + $0x40] ss:$8 sps:$4 sm:$0xff]   ;;  %v7629_v30 = vld [vmem:[%s11383_s5 + $0x54] ss:$8 sps:$4 sm:$0xff]  }
 0x1c6   :  { %v1269_v53 = vmax.f32 %v1253_v40, 0.0  ;;  %v1271_v55 = vmax.f32 %v1255_v41, 0.0  ;;  %v7624_v29 = vld [vmem:[#allocation2 + $0x40] ss:$8 sps:$4 sm:$0xff]   ;;  %v7632_v31 = vld [vmem:[#allocation2 + $0x54] ss:$8 sps:$4 sm:$0xff]  }
 0x1c7   :  { %v1270_v61 = vmax.f32 %v1254_v47, 0.0  ;;  %v1272_v62 = vmax.f32 %v1256_v48, 0.0  ;;  %v7627_v32 = vld [vmem:[%s11383_s5 + $0x50] ss:$8 sps:$4 sm:$0xff]   ;;  %v7635_v36 = vld [vmem:[%s11383_s5 + $0x64] ss:$8 sps:$4 sm:$0xff]  }
 0x1c8   :  { %v1277_v63 = vpack.c.bf16 %v1269_v53, %v1265_v49  ;;  %v1279_v1 = vpack.c.bf16 %v1271_v55, %v1267_v39  ;;  %v7630_v34 = vld [vmem:[#allocation2 + $0x50] ss:$8 sps:$4 sm:$0xff]   ;;  %v7638_v37 = vld [vmem:[#allocation2 + $0x64] ss:$8 sps:$4 sm:$0xff]   ;;  %v7633_v38 = vld [vmem:[%s11383_s5 + $0x60] ss:$8 sps:$4 sm:$0xff]  }
 0x1c9   :  { %v1278_v2 = vpack.c.bf16 %v1270_v61, %v1266_v60  ;;  %v1280_v3 = vpack.c.bf16 %v1272_v62, %v1268_v46  ;;  %v7636_v39 = vld [vmem:[#allocation2 + $0x60] ss:$8 sps:$4 sm:$0xff]   ;;  %v7641_v40 = vld [vmem:[%s11383_s5 + $0x74] ss:$8 sps:$4 sm:$0xff]   ;;  %v7639_v42 = vld [vmem:[%s11383_s5 + $0x70] ss:$8 sps:$4 sm:$0xff]  }
 0x1ca   :  { %v1292_v4 = vsel %vm1290_vm4, %v1277_v63, 0  ;;  %v1298_v5 = vsel %vm1290_vm4, %v1279_v1, 0  ;;  %v7644_v41 = vld [vmem:[#allocation2 + $0x74] ss:$8 sps:$4 sm:$0xff]   ;;  %v7642_v43 = vld [vmem:[#allocation2 + $0x70] ss:$8 sps:$4 sm:$0xff]  }
 0x1cb   :  { %6700 = vmatprep.subr.msk.bf16.mxu0 %vm1290_vm4, %v1278_v2  ;;  %6702 = vmatprep.subr.msk.bf16.mxu1 %vm1290_vm4, %v1280_v3  ;;  %v7647_v46 = vld [vmem:[%s11383_s5 + $0x84] ss:$8 sps:$4 sm:$0xff]   ;;  %v7645_v48 = vld [vmem:[%s11383_s5 + $0x80] ss:$8 sps:$4 sm:$0xff]   ;;  %v7653_v53 = vld [vmem:[%s11383_s5 + $0x94] ss:$8 sps:$4 sm:$0xff]  }
 0x1cc   :  { %1306 = vmatpush1.bf16.msra.mxu0 %v1292_v4  ;;  %1349 = vmatpush1.bf16.msra.mxu1 %v1298_v5  ;;  %v7650_v47 = vld [vmem:[#allocation2 + $0x84] ss:$8 sps:$4 sm:$0xff]   ;;  %v7648_v49 = vld [vmem:[#allocation2 + $0x80] ss:$8 sps:$4 sm:$0xff]   ;;  %v7656_v55 = vld [vmem:[#allocation2 + $0x94] ss:$8 sps:$4 sm:$0xff]  }
 0x1cd   :  { %1397 = vmatprep.subr.bf16.mxu0 %v1274_v25  ;;  %1440 = vmatprep.subr.bf16.mxu1 %v1276_v26  ;;  %v7618_v25 = vld [vmem:[#allocation2 + $0x30] ss:$8 sps:$4 sm:$0xff]   ;;  %v7623_v26 = vld [vmem:[%s11383_s5 + $0x44] ss:$8 sps:$4 sm:$0xff]   ;;  %v7657_v1 = vld [vmem:[%s11383_s5 + $0xa0] ss:$8 sps:$4 sm:$0xff]  }
 0x1ce   :  { %v7651_v60 = vld [vmem:[%s11383_s5 + $0x90] ss:$8 sps:$4 sm:$0xff]   ;;  %v7659_v62 = vld [vmem:[%s11383_s5 + $0xa4] ss:$8 sps:$4 sm:$0xff]  }
 0x1cf   :  { %6701 = vmatmul.mubr.msk.bf16.vlgmr.msra.gmra.mrb[8].mxu0 %vm1286_vm5, %v7595_v6  ;;  %6703 = vmatmul.mubr.msk.bf16.vlgmr.msra.gmra.mrb[8].mxu1 %vm1286_vm5, %v7595_v6  ;;  %v7654_v61 = vld [vmem:[#allocation2 + $0x90] ss:$8 sps:$4 sm:$0xff]   ;;  %v7662_v63 = vld [vmem:[#allocation2 + $0xa4] ss:$8 sps:$4 sm:$0xff]  }
 0x1d0   :  { %1398 = vmatpush1.bf16.msra.mxu0 %v1273_v23  ;;  %1441 = vmatpush1.bf16.msra.mxu1 %v1275_v24  ;;  %v7620_v23 = vld [vmem:[#allocation2 + $0x34] ss:$8 sps:$4 sm:$0xff]   ;;  %v7615_v24 = vld [vmem:[%s11383_s5 + $0x30] ss:$8 sps:$4 sm:$0xff]  }
 0x1d1   :  { %6705 = vmatprep.subr.msk.bf16.mxu0 %vm1290_vm4, %v1278_v2  ;;  %6707 = vmatprep.subr.msk.bf16.mxu1 %vm1290_vm4, %v1280_v3  ;;  %v7660_v2 = vld [vmem:[#allocation2 + $0xa0] ss:$8 sps:$4 sm:$0xff]   ;;  %v7665_v3 = vld [vmem:[%s11383_s5 + $0xb4] ss:$8 sps:$4 sm:$0xff]   ;;  %v7666_v6 = vld [vmem:[#allocation2 + $0xb0] ss:$8 sps:$4 sm:$0xff]  }
 0x1d2   :  { %1429 = vmatprep.mubr.bf16.mxu0 %v8743_v0  ;;  %1472 = vmatprep.mubr.bf16.mxu1 %v8743_v0 }
 0x1d4   :  { %1400 = vmatpush1.bf16.msra.mxu0 %v1292_v4  ;;  %1443 = vmatpush1.bf16.msra.mxu1 %v1298_v5  ;;  %v7668_v4 = vld [vmem:[#allocation2 + $0xb4] ss:$8 sps:$4 sm:$0xff]   ;;  %v7663_v5 = vld [vmem:[%s11383_s5 + $0xb0] ss:$8 sps:$4 sm:$0xff]  }
 0x1d5   :  { %1759 = vmatprep.subr.bf16.mxu0 %v7599_v7  ;;  %2105 = vmatprep.subr.bf16.mxu1 %v7602_v8  ;;  %v7671_v7 = vld [vmem:[%s11383_s5 + $0xc4] ss:$8 sps:$4 sm:$0xff]  }
 0x1d6   :  { %v7674_v8 = vld [vmem:[#allocation2 + $0xc4] ss:$8 sps:$4 sm:$0xff]  }
 0x1d7   :  { %6706 = vmatmul.mubr.msk.bf16.vlgmr.msra.gmra.mrb[12].mxu0 %vm1286_vm5, %v7596_v9  ;;  %6708 = vmatmul.mubr.msk.bf16.vlgmr.msra.gmra.mrb[12].mxu1 %vm1286_vm5, %v7596_v9  ;;  %v7669_v9 = vld [vmem:[%s11383_s5 + $0xc0] ss:$8 sps:$4 sm:$0xff]  }
 0x1d8   :  { %1760 = vmatpush1.bf16.msra.mxu0 %v7597_v10  ;;  %2106 = vmatpush1.bf16.msra.mxu1 %v7600_v11  ;;  %v7672_v10 = vld [vmem:[#allocation2 + $0xc0] ss:$8 sps:$4 sm:$0xff]   ;;  %v7677_v11 = vld [vmem:[%s11383_s5 + $0xd4] ss:$8 sps:$4 sm:$0xff]  }
 0x1d9   :  { %1761 = vmatprep.subr.bf16.mxu0 %v7605_v12  ;;  %2107 = vmatprep.subr.bf16.mxu1 %v7608_v15  ;;  %v7680_v12 = vld [vmem:[#allocation2 + $0xd4] ss:$8 sps:$4 sm:$0xff]   ;;  %v7675_v15 = vld [vmem:[%s11383_s5 + $0xd0] ss:$8 sps:$4 sm:$0xff]  }
 0x1dc   :  { %1762 = vmatpush1.bf16.msra.mxu0 %v7603_v16  ;;  %2108 = vmatpush1.bf16.msra.mxu1 %v7606_v17  ;;  %v7678_v16 = vld [vmem:[#allocation2 + $0xd0] ss:$8 sps:$4 sm:$0xff]   ;;  %v7683_v17 = vld [vmem:[%s11383_s5 + $0xe4] ss:$8 sps:$4 sm:$0xff]  }
 0x1dd   :  { %1763 = vmatprep.subr.bf16.mxu0 %v7611_v18  ;;  %2109 = vmatprep.subr.bf16.mxu1 %v7614_v19  ;;  %v7686_v18 = vld [vmem:[#allocation2 + $0xe4] ss:$8 sps:$4 sm:$0xff]   ;;  %v7681_v19 = vld [vmem:[%s11383_s5 + $0xe0] ss:$8 sps:$4 sm:$0xff]  }
 0x1e0   :  { %1764 = vmatpush1.bf16.msra.mxu0 %v7609_v20  ;;  %2110 = vmatpush1.bf16.msra.mxu1 %v7612_v21  ;;  %v7684_v20 = vld [vmem:[#allocation2 + $0xe0] ss:$8 sps:$4 sm:$0xff]   ;;  %v7689_v21 = vld [vmem:[%s11383_s5 + $0xf4] ss:$8 sps:$4 sm:$0xff]  }
 0x1e1   :  { %1765 = vmatprep.subr.bf16.mxu0 %v7617_v22  ;;  %2111 = vmatprep.subr.bf16.mxu1 %v7620_v23  ;;  %v7692_v22 = vld [vmem:[#allocation2 + $0xf4] ss:$8 sps:$4 sm:$0xff]   ;;  %v7687_v23 = vld [vmem:[%s11383_s5 + $0xf0] ss:$8 sps:$4 sm:$0xff]  }
 0x1e4   :  { %1766 = vmatpush1.bf16.msra.mxu0 %v7615_v24  ;;  %2112 = vmatpush1.bf16.msra.mxu1 %v7618_v25  ;;  %v7690_v24 = vld [vmem:[#allocation2 + $0xf0] ss:$8 sps:$4 sm:$0xff]   ;;  %v7695_v25 = vld [vmem:[%s11383_s5 + $0x104] ss:$8 sps:$4 sm:$0xff]  }
 0x1e5   :  { %1767 = vmatprep.subr.bf16.mxu0 %v7623_v26  ;;  %2113 = vmatprep.subr.bf16.mxu1 %v7626_v27  ;;  %v7698_v26 = vld [vmem:[#allocation2 + $0x104] ss:$8 sps:$4 sm:$0xff]  }
 0x1e8   :  { %1768 = vmatpush1.bf16.msra.mxu0 %v7621_v28  ;;  %2114 = vmatpush1.bf16.msra.mxu1 %v7624_v29 }
 0x1e9   :  { %1769 = vmatprep.subr.bf16.mxu0 %v7629_v30  ;;  %2115 = vmatprep.subr.bf16.mxu1 %v7632_v31 }
 0x1ec   :  { %1770 = vmatpush1.bf16.msra.mxu0 %v7627_v32  ;;  %2116 = vmatpush1.bf16.msra.mxu1 %v7630_v34 }
 0x1ed   :  { %1771 = vmatprep.subr.bf16.mxu0 %v7635_v36  ;;  %2117 = vmatprep.subr.bf16.mxu1 %v7638_v37 }
 0x1f0   :  { %1772 = vmatpush1.bf16.msra.mxu0 %v7633_v38  ;;  %2118 = vmatpush1.bf16.msra.mxu1 %v7636_v39 }
 0x1f1   :  { %1773 = vmatprep.subr.bf16.mxu0 %v7641_v40  ;;  %2119 = vmatprep.subr.bf16.mxu1 %v7644_v41 }
 0x1f4   :  { %1774 = vmatpush1.bf16.msra.mxu0 %v7639_v42  ;;  %2120 = vmatpush1.bf16.msra.mxu1 %v7642_v43 }
 0x1f5   :  { %1775 = vmatprep.subr.bf16.mxu0 %v7647_v46  ;;  %2121 = vmatprep.subr.bf16.mxu1 %v7650_v47 }
 0x1f8   :  { %1776 = vmatpush1.bf16.msra.mxu0 %v7645_v48  ;;  %2122 = vmatpush1.bf16.msra.mxu1 %v7648_v49 }
 0x1f9   :  { %1777 = vmatprep.subr.bf16.mxu0 %v7653_v53  ;;  %2123 = vmatprep.subr.bf16.mxu1 %v7656_v55 }
 0x1fc   :  { %1778 = vmatpush1.bf16.msra.mxu0 %v7651_v60  ;;  %2124 = vmatpush1.bf16.msra.mxu1 %v7654_v61 }
 0x1fd   :  { %1779 = vmatprep.subr.bf16.mxu0 %v7659_v62  ;;  %2125 = vmatprep.subr.bf16.mxu1 %v7662_v63 }
 0x200   :  { %1780 = vmatpush1.bf16.msra.mxu0 %v7657_v1  ;;  %2126 = vmatpush1.bf16.msra.mxu1 %v7660_v2 }
 0x201   :  { %1781 = vmatprep.subr.bf16.mxu0 %v7665_v3  ;;  %2127 = vmatprep.subr.bf16.mxu1 %v7668_v4  ;;  %v7693_v3 = vld [vmem:[%s11383_s5 + $0x100] ss:$8 sps:$4 sm:$0xff]  }
 0x202   :  { %v7696_v4 = vld [vmem:[#allocation2 + $0x100] ss:$8 sps:$4 sm:$0xff]  }
 0x204   :  { %1782 = vmatpush1.bf16.msra.mxu0 %v7663_v5  ;;  %2128 = vmatpush1.bf16.msra.mxu1 %v7666_v6  ;;  %v7701_v6 = vld [vmem:[%s11383_s5 + $0x114] ss:$8 sps:$4 sm:$0xff]  }
 0x205   :  { %1783 = vmatprep.subr.bf16.mxu0 %v7671_v7  ;;  %2129 = vmatprep.subr.bf16.mxu1 %v7674_v8  ;;  %v7704_v7 = vld [vmem:[#allocation2 + $0x114] ss:$8 sps:$4 sm:$0xff]   ;;  %v7699_v8 = vld [vmem:[%s11383_s5 + $0x110] ss:$8 sps:$4 sm:$0xff]  }
 0x208   :  { %1784 = vmatpush1.bf16.msra.mxu0 %v7669_v9  ;;  %2130 = vmatpush1.bf16.msra.mxu1 %v7672_v10  ;;  %v7702_v9 = vld [vmem:[#allocation2 + $0x110] ss:$8 sps:$4 sm:$0xff]   ;;  %v7707_v10 = vld [vmem:[%s11383_s5 + $0x124] ss:$8 sps:$4 sm:$0xff]  }
 0x209   :  { %1785 = vmatprep.subr.bf16.mxu0 %v7677_v11  ;;  %2131 = vmatprep.subr.bf16.mxu1 %v7680_v12  ;;  %v7710_v11 = vld [vmem:[#allocation2 + $0x124] ss:$8 sps:$4 sm:$0xff]   ;;  %v7705_v12 = vld [vmem:[%s11383_s5 + $0x120] ss:$8 sps:$4 sm:$0xff]  }
 0x20c   :  { %1786 = vmatpush1.bf16.msra.mxu0 %v7675_v15  ;;  %2132 = vmatpush1.bf16.msra.mxu1 %v7678_v16  ;;  %v7708_v15 = vld [vmem:[#allocation2 + $0x120] ss:$8 sps:$4 sm:$0xff]   ;;  %v7713_v16 = vld [vmem:[%s11383_s5 + $0x134] ss:$8 sps:$4 sm:$0xff]  }
 0x20d   :  { %1787 = vmatprep.subr.bf16.mxu0 %v7683_v17  ;;  %2133 = vmatprep.subr.bf16.mxu1 %v7686_v18  ;;  %v7716_v17 = vld [vmem:[#allocation2 + $0x134] ss:$8 sps:$4 sm:$0xff]   ;;  %v7711_v18 = vld [vmem:[%s11383_s5 + $0x130] ss:$8 sps:$4 sm:$0xff]  }
 0x210   :  { %1788 = vmatpush1.bf16.msra.mxu0 %v7681_v19  ;;  %2134 = vmatpush1.bf16.msra.mxu1 %v7684_v20  ;;  %v7714_v19 = vld [vmem:[#allocation2 + $0x130] ss:$8 sps:$4 sm:$0xff]   ;;  %v7719_v20 = vld [vmem:[%s11383_s5 + $0x144] ss:$8 sps:$4 sm:$0xff]  }
 0x211   :  { %1789 = vmatprep.subr.bf16.mxu0 %v7689_v21  ;;  %2135 = vmatprep.subr.bf16.mxu1 %v7692_v22  ;;  %v7722_v21 = vld [vmem:[#allocation2 + $0x144] ss:$8 sps:$4 sm:$0xff]   ;;  %v7717_v22 = vld [vmem:[%s11383_s5 + $0x140] ss:$8 sps:$4 sm:$0xff]  }
 0x214   :  { %1790 = vmatpush1.bf16.msra.mxu0 %v7687_v23  ;;  %2136 = vmatpush1.bf16.msra.mxu1 %v7690_v24  ;;  %v7720_v23 = vld [vmem:[#allocation2 + $0x140] ss:$8 sps:$4 sm:$0xff]   ;;  %v7725_v24 = vld [vmem:[%s11383_s5 + $0x154] ss:$8 sps:$4 sm:$0xff]  }
 0x215   :  { %1802 = vmatprep.subr.bf16.mxu0 %v7695_v25  ;;  %2148 = vmatprep.subr.bf16.mxu1 %v7698_v26  ;;  %v7728_v25 = vld [vmem:[#allocation2 + $0x154] ss:$8 sps:$4 sm:$0xff]   ;;  %v7723_v26 = vld [vmem:[%s11383_s5 + $0x150] ss:$8 sps:$4 sm:$0xff]  }
 0x2a2   :  { %v1337_v27 = vpop.f32.mrb[8].mxu0  ;;  %v1380_v28 = vpop.f32.mrb[8].mxu1 }
 0x2a3   :  { %v1339_v29 = vpop.f32.mrb[9].mxu0  ;;  %v1382_v30 = vpop.f32.mrb[9].mxu1 }
 0x2a4   :  { %v1341_v31 = vpop.f32.mrb[10].mxu0  ;;  %v1384_v32 = vpop.f32.mrb[10].mxu1 }
 0x2a5   :  { %v1343_v34 = vpop.f32.mrb[11].mxu0  ;;  %v1386_v36 = vpop.f32.mrb[11].mxu1 }
 0x2aa   :  { %v1431_v37 = vpop.f32.mrb[12].mxu0  ;;  %v1474_v38 = vpop.f32.mrb[12].mxu1 }
 0x2ab   :  { %v1483_v39 = vmax.f32 %v1337_v27, %v1431_v37  ;;  %v1433_v40 = vpop.f32.mrb[13].mxu0  ;;  %v1485_v41 = vmax.f32 %v1380_v28, %v1474_v38  ;;  %v1476_v42 = vpop.f32.mrb[13].mxu1  ;;  %v7726_v27 = vld [vmem:[#allocation2 + $0x150] ss:$8 sps:$4 sm:$0xff]   ;;  %v7731_v28 = vld [vmem:[%s11383_s5 + $0x164] ss:$8 sps:$4 sm:$0xff]  }
 0x2ac   :  { %v1484_v43 = vmax.f32 %v1339_v29, %v1433_v40  ;;  %v1435_v46 = vpop.f32.mrb[14].mxu0  ;;  %v1486_v47 = vmax.f32 %v1382_v30, %v1476_v42  ;;  %v1478_v48 = vpop.f32.mrb[14].mxu1  ;;  %v7734_v29 = vld [vmem:[#allocation2 + $0x164] ss:$8 sps:$4 sm:$0xff]   ;;  %v7729_v30 = vld [vmem:[%s11383_s5 + $0x160] ss:$8 sps:$4 sm:$0xff]  }
 0x2ad   :  { %v1487_v49 = vmax.f32 %v1341_v31, %v1435_v46  ;;  %v1437_v53 = vpop.f32.mrb[15].mxu0  ;;  %v1489_v55 = vmax.f32 %v1384_v32, %v1478_v48  ;;  %v1480_v60 = vpop.f32.mrb[15].mxu1  ;;  %v7732_v31 = vld [vmem:[#allocation2 + $0x160] ss:$8 sps:$4 sm:$0xff]   ;;  %v7737_v32 = vld [vmem:[%s11383_s5 + $0x174] ss:$8 sps:$4 sm:$0xff]  }
 0x2ae   :  { %v1488_v61 = vmax.f32 %v1343_v34, %v1437_v53  ;;  %v1490_v62 = vmax.f32 %v1386_v36, %v1480_v60  ;;  %v7740_v34 = vld [vmem:[#allocation2 + $0x174] ss:$8 sps:$4 sm:$0xff]   ;;  %v7735_v36 = vld [vmem:[%s11383_s5 + $0x170] ss:$8 sps:$4 sm:$0xff]   ;;  %v7743_v38 = vld [vmem:[%s11383_s5 + $0x184] ss:$8 sps:$4 sm:$0xff]  }
 0x2af   :  { %v1491_v63 = vpack.c.bf16 %v1487_v49, %v1483_v39  ;;  %v9284_v1 = vpack.c.bf16 %v1489_v55, %v1485_v41  ;;  %v7738_v37 = vld [vmem:[#allocation2 + $0x170] ss:$8 sps:$4 sm:$0xff]   ;;  %v7746_v39 = vld [vmem:[#allocation2 + $0x184] ss:$8 sps:$4 sm:$0xff]   ;;  %v7741_v40 = vld [vmem:[%s11383_s5 + $0x180] ss:$8 sps:$4 sm:$0xff]  }
 0x2b0   :  { %v1492_v2 = vpack.c.bf16 %v1488_v61, %v1484_v43  ;;  %v1494_v5 = vpack.c.bf16 %v1490_v62, %v1486_v47  ;;  %v7744_v41 = vld [vmem:[#allocation2 + $0x180] ss:$8 sps:$4 sm:$0xff]   ;;  %v7749_v42 = vld [vmem:[%s11383_s5 + $0x194] ss:$8 sps:$4 sm:$0xff]   ;;  %v7747_v46 = vld [vmem:[%s11383_s5 + $0x190] ss:$8 sps:$4 sm:$0xff]  }
 0x2b1   :  { %v7752_v43 = vld [vmem:[#allocation2 + $0x194] ss:$8 sps:$4 sm:$0xff]   ;;  %v7750_v47 = vld [vmem:[#allocation2 + $0x190] ss:$8 sps:$4 sm:$0xff]   ;;  %v7756_v53 = vld [vmem:[%s11349_s6 + $0x140] ss:$12 sps:$4 sm:$0xff]  }
 0x2b2   :  { %1791 = vmatprep.mubr.bf16.mxu0 %v1492_v2  ;;  %2137 = vmatprep.mubr.bf16.mxu1 %v1492_v2  ;;  %v7755_v48 = vld [vmem:[%s11349_s6 + $0x13c] ss:$12 sps:$4 sm:$0xff]   ;;  %v7753_v49 = vld [vmem:[%s11349_s6 + $0x138] ss:$12 sps:$4 sm:$0xff]   ;;  %v7759_v55 = vld [vmem:[%s11349_s6 + $0x154] ss:$12 sps:$4 sm:$0xff]  }
 0x2b3   :  { %1792 = vmatmul.mubr.bf16.vlgmr.msra.gmra.mrb[16].mxu0 %v1491_v63  ;;  %2138 = vmatmul.mubr.bf16.vlgmr.msra.gmra.mrb[16].mxu1 %v1491_v63  ;;  %v7757_v60 = vld [vmem:[%s11349_s6 + $0x150] ss:$12 sps:$4 sm:$0xff]   ;;  %v7760_v61 = vld [vmem:[%s11349_s6 + $0x158] ss:$12 sps:$4 sm:$0xff]   ;;  %v7761_v63 = vld [vmem:[%s11349_s6 + $0x168] ss:$12 sps:$4 sm:$0xff]  }
 0x2b4   :  { %1803 = vmatpush1.bf16.msra.mxu0 %v7693_v3  ;;  %2149 = vmatpush1.bf16.msra.mxu1 %v7696_v4  ;;  %v7763_v62 = vld [vmem:[%s11349_s6 + $0x16c] ss:$12 sps:$4 sm:$0xff]   ;;  %v7767_v2 = vld [vmem:[%s11349_s6 + $0x184] ss:$12 sps:$4 sm:$0xff]   ;;  %v7768_v4 = vld [vmem:[%s11349_s6 + $0x188] ss:$12 sps:$4 sm:$0xff]  }
 0x2b5   :  { %1804 = vmatprep.subr.bf16.mxu0 %v7701_v6  ;;  %2150 = vmatprep.subr.bf16.mxu1 %v7704_v7  ;;  %v7765_v3 = vld [vmem:[%s11349_s6 + $0x180] ss:$12 sps:$4 sm:$0xff]   ;;  %v7769_v6 = vld [vmem:[%s11349_s6 + $0x198] ss:$12 sps:$4 sm:$0xff]  }
 0x2b6   :  { %6761 = vmatprep.mubr.msk.bf16.mxu0 %vm1755_vm6, %v1494_v5  ;;  %6814 = vmatprep.mubr.msk.bf16.mxu1 %vm1755_vm6, %v1494_v5  ;;  %v7771_v5 = vld [vmem:[%s11349_s6 + $0x19c] ss:$12 sps:$4 sm:$0xff]   ;;  %v7772_v7 = vld [vmem:[%s11349_s6 + $0x1a0] ss:$12 sps:$4 sm:$0xff]  }
 0x2b8   :  { %1805 = vmatpush1.bf16.msra.mxu0 %v7699_v8  ;;  %2151 = vmatpush1.bf16.msra.mxu1 %v7702_v9  ;;  %v7775_v8 = vld [vmem:[%s11349_s6 + $0x1b4] ss:$12 sps:$4 sm:$0xff]   ;;  %v7773_v9 = vld [vmem:[%s11349_s6 + $0x1b0] ss:$12 sps:$4 sm:$0xff]  }
 0x2b9   :  { %1806 = vmatprep.subr.bf16.mxu0 %v7707_v10  ;;  %2152 = vmatprep.subr.bf16.mxu1 %v7710_v11  ;;  %v7776_v10 = vld [vmem:[%s11349_s6 + $0x1b8] ss:$12 sps:$4 sm:$0xff]  }
 0x2ba   :  { %v7779_v11 = vld [vmem:[%s11349_s6 + $0x1cc] ss:$12 sps:$4 sm:$0xff]  }
 0x2bc   :  { %1807 = vmatpush1.bf16.msra.mxu0 %v7705_v12  ;;  %2153 = vmatpush1.bf16.msra.mxu1 %v7708_v15  ;;  %v7777_v12 = vld [vmem:[%s11349_s6 + $0x1c8] ss:$12 sps:$4 sm:$0xff]   ;;  %v7780_v15 = vld [vmem:[%s11349_s6 + $0x1d0] ss:$12 sps:$4 sm:$0xff]  }
 0x2bd   :  { %1808 = vmatprep.subr.bf16.mxu0 %v7713_v16  ;;  %2154 = vmatprep.subr.bf16.mxu1 %v7716_v17  ;;  %v7783_v16 = vld [vmem:[%s11349_s6 + $0x1e4] ss:$12 sps:$4 sm:$0xff]   ;;  %v7781_v17 = vld [vmem:[%s11349_s6 + $0x1e0] ss:$12 sps:$4 sm:$0xff]  }
 0x2c0   :  { %1809 = vmatpush1.bf16.msra.mxu0 %v7711_v18  ;;  %2155 = vmatpush1.bf16.msra.mxu1 %v7714_v19  ;;  %v7784_v18 = vld [vmem:[%s11349_s6 + $0x1e8] ss:$12 sps:$4 sm:$0xff]  }
 0x2c1   :  { %1810 = vmatprep.subr.bf16.mxu0 %v7719_v20  ;;  %2156 = vmatprep.subr.bf16.mxu1 %v7722_v21  ;;  %v7787_v19 = vld [vmem:[%s11349_s6 + $0x1fc] ss:$12 sps:$4 sm:$0xff]   ;;  %v7785_v20 = vld [vmem:[%s11349_s6 + $0x1f8] ss:$12 sps:$4 sm:$0xff]   ;;  %v7788_v21 = vld [vmem:[%s11349_s6 + $0x200] ss:$12 sps:$4 sm:$0xff]  }
 0x2c4   :  { %1811 = vmatpush1.bf16.msra.mxu0 %v7717_v22  ;;  %2157 = vmatpush1.bf16.msra.mxu1 %v7720_v23  ;;  %v7791_v22 = vld [vmem:[%s11349_s6 + $0x214] ss:$12 sps:$4 sm:$0xff]   ;;  %v7789_v23 = vld [vmem:[%s11349_s6 + $0x210] ss:$12 sps:$4 sm:$0xff]  }
 0x2c5   :  { %1812 = vmatprep.subr.bf16.mxu0 %v7725_v24  ;;  %2158 = vmatprep.subr.bf16.mxu1 %v7728_v25  ;;  %v7792_v24 = vld [vmem:[%s11349_s6 + $0x218] ss:$12 sps:$4 sm:$0xff]  }
 0x2c6   :  { %v7795_v25 = vld [vmem:[%s11349_s6 + $0x22c] ss:$12 sps:$4 sm:$0xff]  }
 0x2c8   :  { %1813 = vmatpush1.bf16.msra.mxu0 %v7723_v26  ;;  %2159 = vmatpush1.bf16.msra.mxu1 %v7726_v27  ;;  %v7793_v26 = vld [vmem:[%s11349_s6 + $0x228] ss:$12 sps:$4 sm:$0xff]   ;;  %v7796_v27 = vld [vmem:[%s11349_s6 + $0x230] ss:$12 sps:$4 sm:$0xff]  }
 0x2c9   :  { %1814 = vmatprep.subr.bf16.mxu0 %v7731_v28  ;;  %2160 = vmatprep.subr.bf16.mxu1 %v7734_v29  ;;  %v7799_v28 = vld [vmem:[%s11349_s6 + $0x244] ss:$12 sps:$4 sm:$0xff]   ;;  %v7797_v29 = vld [vmem:[%s11349_s6 + $0x240] ss:$12 sps:$4 sm:$0xff]  }
 0x2cc   :  { %1815 = vmatpush1.bf16.msra.mxu0 %v7729_v30  ;;  %2161 = vmatpush1.bf16.msra.mxu1 %v7732_v31  ;;  %v7800_v30 = vld [vmem:[%s11349_s6 + $0x248] ss:$12 sps:$4 sm:$0xff]  }
 0x2cd   :  { %1816 = vmatprep.subr.bf16.mxu0 %v7737_v32  ;;  %2162 = vmatprep.subr.bf16.mxu1 %v7740_v34  ;;  %v7803_v31 = vld [vmem:[%s11349_s6 + $0x25c] ss:$12 sps:$4 sm:$0xff]   ;;  %v7801_v32 = vld [vmem:[%s11349_s6 + $0x258] ss:$12 sps:$4 sm:$0xff]   ;;  %v7804_v34 = vld [vmem:[%s11349_s6 + $0x260] ss:$12 sps:$4 sm:$0xff]  }
 0x2d0   :  { %1817 = vmatpush1.bf16.msra.mxu0 %v7735_v36  ;;  %2163 = vmatpush1.bf16.msra.mxu1 %v7738_v37  ;;  %v7807_v36 = vld [vmem:[%s11349_s6 + $0x4] ss:$12 sps:$4 sm:$0xff]  }
 0x2d1   :  { %1818 = vmatprep.subr.bf16.mxu0 %v7743_v38  ;;  %2164 = vmatprep.subr.bf16.mxu1 %v7746_v39 }
 0x2d4   :  { %1819 = vmatpush1.bf16.msra.mxu0 %v7741_v40  ;;  %2165 = vmatpush1.bf16.msra.mxu1 %v7744_v41 }
 0x2d5   :  { %1820 = vmatprep.subr.bf16.mxu0 %v7749_v42  ;;  %2166 = vmatprep.subr.bf16.mxu1 %v7752_v43 }
 0x2d8   :  { %1821 = vmatpush1.bf16.msra.mxu0 %v7747_v46  ;;  %2167 = vmatpush1.bf16.msra.mxu1 %v7750_v47 }
 0x2d9   :  { %2424 = vmatprep.subr.bf16.mxu0 %v7755_v48  ;;  %2467 = vmatprep.subr.bf16.mxu1 %v8743_v0 }
 0x2db   :  { %1835 = vmatmul.mubr.bf16.vlgmr.msra.gmra.mrb[16].mxu0 %v9284_v1  ;;  %2181 = vmatmul.mubr.bf16.vlgmr.msra.gmra.mrb[16].mxu1 %v9284_v1  ;;  %v7764_v1 = vld [vmem:[%s11349_s6 + $0x170] ss:$12 sps:$4 sm:$0xff]  }
 0x2dc   :  { %2425 = vmatpush1.bf16.msra.mxu0 %v7753_v49  ;;  %2468 = vmatpush1.bf16.msra.mxu1 %v7756_v53 }
 0x2dd   :  { %2426 = vmatprep.subr.bf16.mxu0 %v7759_v55  ;;  %2469 = vmatprep.subr.bf16.mxu1 %v8743_v0 }
 0x2e0   :  { %2427 = vmatpush1.bf16.msra.mxu0 %v7757_v60  ;;  %2470 = vmatpush1.bf16.msra.mxu1 %v7760_v61 }
 0x2e1   :  { %2428 = vmatprep.subr.bf16.mxu0 %v7763_v62  ;;  %2471 = vmatprep.subr.bf16.mxu1 %v8743_v0 }
 0x2e4   :  { %2429 = vmatpush1.bf16.msra.mxu0 %v7761_v63  ;;  %2472 = vmatpush1.bf16.msra.mxu1 %v7764_v1 }
 0x2e5   :  { %2430 = vmatprep.subr.bf16.mxu0 %v7767_v2  ;;  %2473 = vmatprep.subr.bf16.mxu1 %v8743_v0 }
 0x2e8   :  { %2431 = vmatpush1.bf16.msra.mxu0 %v7765_v3  ;;  %2474 = vmatpush1.bf16.msra.mxu1 %v7768_v4 }
 0x2e9   :  { %2432 = vmatprep.subr.bf16.mxu0 %v7771_v5  ;;  %2475 = vmatprep.subr.bf16.mxu1 %v8743_v0  ;;  %v7805_v5 = vld [vmem:[%s11349_s6] ss:$12 sps:$4 sm:$0xff]  }
 0x2ec   :  { %2433 = vmatpush1.bf16.msra.mxu0 %v7769_v6  ;;  %2476 = vmatpush1.bf16.msra.mxu1 %v7772_v7  ;;  %v7808_v6 = vld [vmem:[%s11349_s6 + $0x8] ss:$12 sps:$4 sm:$0xff]  }
 0x2ed   :  { %2434 = vmatprep.subr.bf16.mxu0 %v7775_v8  ;;  %2477 = vmatprep.subr.bf16.mxu1 %v8743_v0  ;;  %v7811_v8 = vld [vmem:[%s11349_s6 + $0x1c] ss:$12 sps:$4 sm:$0xff]  }
 0x2f0   :  { %2435 = vmatpush1.bf16.msra.mxu0 %v7773_v9  ;;  %2478 = vmatpush1.bf16.msra.mxu1 %v7776_v10  ;;  %v7809_v9 = vld [vmem:[%s11349_s6 + $0x18] ss:$12 sps:$4 sm:$0xff]   ;;  %v7812_v10 = vld [vmem:[%s11349_s6 + $0x20] ss:$12 sps:$4 sm:$0xff]  }
 0x2f1   :  { %2436 = vmatprep.subr.bf16.mxu0 %v7779_v11  ;;  %2479 = vmatprep.subr.bf16.mxu1 %v8743_v0  ;;  %v7815_v11 = vld [vmem:[%s11349_s6 + $0x34] ss:$12 sps:$4 sm:$0xff]  }
 0x2f4   :  { %2437 = vmatpush1.bf16.msra.mxu0 %v7777_v12  ;;  %2480 = vmatpush1.bf16.msra.mxu1 %v7780_v15  ;;  %v7813_v12 = vld [vmem:[%s11349_s6 + $0x30] ss:$12 sps:$4 sm:$0xff]   ;;  %v7816_v15 = vld [vmem:[%s11349_s6 + $0x38] ss:$12 sps:$4 sm:$0xff]  }
 0x2f5   :  { %2438 = vmatprep.subr.bf16.mxu0 %v7783_v16  ;;  %2481 = vmatprep.subr.bf16.mxu1 %v8743_v0  ;;  %v7819_v16 = vld [vmem:[%s11349_s6 + $0x4c] ss:$12 sps:$4 sm:$0xff]  }
 0x2f8   :  { %2439 = vmatpush1.bf16.msra.mxu0 %v7781_v17  ;;  %2482 = vmatpush1.bf16.msra.mxu1 %v7784_v18  ;;  %v7817_v17 = vld [vmem:[%s11349_s6 + $0x48] ss:$12 sps:$4 sm:$0xff]   ;;  %v7820_v18 = vld [vmem:[%s11349_s6 + $0x50] ss:$12 sps:$4 sm:$0xff]  }
 0x2f9   :  { %2440 = vmatprep.subr.bf16.mxu0 %v7787_v19  ;;  %2483 = vmatprep.subr.bf16.mxu1 %v8743_v0  ;;  %v7823_v19 = vld [vmem:[%s11349_s6 + $0x64] ss:$12 sps:$4 sm:$0xff]  }
 0x2fc   :  { %2441 = vmatpush1.bf16.msra.mxu0 %v7785_v20  ;;  %2484 = vmatpush1.bf16.msra.mxu1 %v7788_v21  ;;  %v7821_v20 = vld [vmem:[%s11349_s6 + $0x60] ss:$12 sps:$4 sm:$0xff]   ;;  %v7824_v21 = vld [vmem:[%s11349_s6 + $0x68] ss:$12 sps:$4 sm:$0xff]  }
 0x2fd   :  { %2442 = vmatprep.subr.bf16.mxu0 %v7791_v22  ;;  %2485 = vmatprep.subr.bf16.mxu1 %v8743_v0  ;;  %v7827_v22 = vld [vmem:[%s11349_s6 + $0x7c] ss:$12 sps:$4 sm:$0xff]  }
 0x300   :  { %2443 = vmatpush1.bf16.msra.mxu0 %v7789_v23  ;;  %2486 = vmatpush1.bf16.msra.mxu1 %v7792_v24  ;;  %v7825_v23 = vld [vmem:[%s11349_s6 + $0x78] ss:$12 sps:$4 sm:$0xff]   ;;  %v7828_v24 = vld [vmem:[%s11349_s6 + $0x80] ss:$12 sps:$4 sm:$0xff]  }
 0x301   :  { %2487 = vmatprep.subr.bf16.mxu1 %v8743_v0  ;;  %2444 = vmatprep.subr.bf16.mxu0 %v7795_v25  ;;  %v7831_v25 = vld [vmem:[%s11349_s6 + $0x94] ss:$12 sps:$4 sm:$0xff]  }
 0x304   :  { %2445 = vmatpush1.bf16.msra.mxu0 %v7793_v26  ;;  %2488 = vmatpush1.bf16.msra.mxu1 %v7796_v27  ;;  %v7829_v26 = vld [vmem:[%s11349_s6 + $0x90] ss:$12 sps:$4 sm:$0xff]   ;;  %v7832_v27 = vld [vmem:[%s11349_s6 + $0x98] ss:$12 sps:$4 sm:$0xff]  }
 0x305   :  { %2489 = vmatprep.subr.bf16.mxu1 %v8743_v0  ;;  %2446 = vmatprep.subr.bf16.mxu0 %v7799_v28  ;;  %v7835_v28 = vld [vmem:[%s11349_s6 + $0xac] ss:$12 sps:$4 sm:$0xff]  }
 0x308   :  { %2447 = vmatpush1.bf16.msra.mxu0 %v7797_v29  ;;  %2490 = vmatpush1.bf16.msra.mxu1 %v7800_v30  ;;  %v7833_v29 = vld [vmem:[%s11349_s6 + $0xa8] ss:$12 sps:$4 sm:$0xff]   ;;  %v7836_v30 = vld [vmem:[%s11349_s6 + $0xb0] ss:$12 sps:$4 sm:$0xff]  }
 0x309   :  { %2448 = vmatprep.subr.bf16.mxu0 %v7803_v31  ;;  %2491 = vmatprep.subr.bf16.mxu1 %v8743_v0  ;;  %v7839_v31 = vld [vmem:[%s11349_s6 + $0xc4] ss:$12 sps:$4 sm:$0xff]  }
 0x30c   :  { %2449 = vmatpush1.bf16.msra.mxu0 %v7801_v32  ;;  %2492 = vmatpush1.bf16.msra.mxu1 %v7804_v34  ;;  %v7837_v32 = vld [vmem:[%s11349_s6 + $0xc0] ss:$12 sps:$4 sm:$0xff]   ;;  %v7840_v34 = vld [vmem:[%s11349_s6 + $0xc8] ss:$12 sps:$4 sm:$0xff]  }
 0x30d   :  { %2761 = vmatprep.subr.bf16.mxu1 %v8743_v0  ;;  %2718 = vmatprep.subr.bf16.mxu0 %v7807_v36  ;;  %v7843_v36 = vld [vmem:[%s11349_s6 + $0xdc] ss:$12 sps:$4 sm:$0xff]  }
 0x3ae   :  { %v1836_v37 = vpop.f32.mrb[16].mxu0  ;;  %v2182_v38 = vpop.f32.mrb[16].mxu1 }
 0x3af   :  { %v2191_v39 = vmax.f32 %v1836_v37, %v2182_v38  ;;  %v1838_v40 = vpop.f32.mrb[17].mxu0  ;;  %v2184_v41 = vpop.f32.mrb[17].mxu1  ;;  %v7841_v37 = vld [vmem:[%s11349_s6 + $0xd8] ss:$12 sps:$4 sm:$0xff]   ;;  %v7844_v38 = vld [vmem:[%s11349_s6 + $0xe0] ss:$12 sps:$4 sm:$0xff]  }
 0x3b0   :  { %v2192_v42 = vmax.f32 %v1838_v40, %v2184_v41  ;;  %v1840_v43 = vpop.f32.mrb[18].mxu0  ;;  %v2186_v46 = vpop.f32.mrb[18].mxu1  ;;  %v7845_v40 = vld [vmem:[%s11349_s6 + $0xf0] ss:$12 sps:$4 sm:$0xff]   ;;  %v7848_v41 = vld [vmem:[%s11349_s6 + $0xf8] ss:$12 sps:$4 sm:$0xff]  }
 0x3b1   :  { %v2193_v47 = vmax.f32 %v1840_v43, %v2186_v46  ;;  %v1842_v48 = vpop.f32.mrb[19].mxu0  ;;  %v2188_v49 = vpop.f32.mrb[19].mxu1  ;;  %v7849_v43 = vld [vmem:[%s11349_s6 + $0x108] ss:$12 sps:$4 sm:$0xff]   ;;  %v7852_v46 = vld [vmem:[%s11349_s6 + $0x110] ss:$12 sps:$4 sm:$0xff]  }
 0x3b2   :  { %v2194_v53 = vmax.f32 %v1842_v48, %v2188_v49  ;;  %v7853_v48 = vld [vmem:[%s11349_s6 + $0x120] ss:$12 sps:$4 sm:$0xff]   ;;  %v7856_v49 = vld [vmem:[%s11349_s6 + $0x128] ss:$12 sps:$4 sm:$0xff]  }
 0x3b3   :  { %v9481_v55 = vpack.c.bf16 %v2193_v47, %v2191_v39  ;;  %v7847_v39 = vld [vmem:[%s11349_s6 + $0xf4] ss:$12 sps:$4 sm:$0xff]   ;;  %v7855_v47 = vld [vmem:[%s11349_s6 + $0x124] ss:$12 sps:$4 sm:$0xff]  }
 0x3b4   :  { %v9483_v60 = vpack.c.bf16 %v2194_v53, %v2192_v42  ;;  %v7851_v42 = vld [vmem:[%s11349_s6 + $0x10c] ss:$12 sps:$4 sm:$0xff]   ;;  %v7859_v53 = vld [vmem:[%s11349_s6 + $0x274] ss:$12 sps:$4 sm:$0xff]  }
 0x3b5   :  { %v2200_v61 = vshll.u32 %v9481_v55, 16  ;;  %v2198_v3 = vshrl.u32 %v9481_v55, 16 }
 0x3b6   :  { %v2207_v62 = vshll.u32 %v9483_v60, 16  ;;  %v2205_v1 = vshrl.u32 %v9483_v60, 16 }
 0x3b7   :  { %v2202_v63 = vrot.slane %v2200_v61, 1  ;;  %v7857_v61 = vld [vmem:[%s11349_s6 + $0x270] ss:$12 sps:$4 sm:$0xff]  }
 0x3b8   :  { %v2209_v2 = vrot.slane %v2207_v62, 1  ;;  %v7860_v62 = vld [vmem:[%s11349_s6 + $0x278] ss:$12 sps:$4 sm:$0xff]  }
 0x3b9   :  { %v2203_v7 = vor.u32 %v2202_v63, %v2198_v3  ;;  %v2805_v63 = vrot.slane %v9483_v60, 1  ;;  %v7867_v3 = vld [vmem:[%s11349_s6 + $0x2a4] ss:$12 sps:$4 sm:$0xff]  }
 0x3ba   :  { %v2210_v4 = vor.u32 %v2209_v2, %v2205_v1  ;;  %v7863_v1 = vld [vmem:[%s11349_s6 + $0x28c] ss:$12 sps:$4 sm:$0xff]   ;;  %v7861_v2 = vld [vmem:[%s11349_s6 + $0x288] ss:$12 sps:$4 sm:$0xff]  }
 0x3bc   :  { %6854 = vmatprep.mubr.msk.bf16.mxu0 %vm2420_vm7, %v2210_v4  ;;  %6855 = vmatprep.mubr.msk.bf16.mxu1 %vm2420_vm7, %v2210_v4  ;;  %v7865_v4 = vld [vmem:[%s11349_s6 + $0x2a0] ss:$12 sps:$4 sm:$0xff]  }
 0x3bd   :  { %2457 = vmatmul.mubr.bf16.vlgmr.msra.gmra.mrb[20].mxu0 %v2203_v7  ;;  %2500 = vmatmul.mubr.bf16.vlgmr.msra.gmra.mrb[20].mxu1 %v2203_v7  ;;  %v7869_v7 = vld [vmem:[%s11349_s6 + $0x2b8] ss:$12 sps:$4 sm:$0xff]  }
 0x3be   :  { %2719 = vmatpush1.bf16.msra.mxu0 %v7805_v5  ;;  %2762 = vmatpush1.bf16.msra.mxu1 %v7808_v6  ;;  %v7868_v5 = vld [vmem:[%s11349_s6 + $0x2a8] ss:$12 sps:$4 sm:$0xff]  }
 0x3bf   :  { %6895 = vmatprep.mubr.msk.bf16.mxu0 %vm2420_vm7, %v9483_v60  ;;  %6896 = vmatprep.mubr.msk.bf16.mxu1 %vm2420_vm7, %v9483_v60  ;;  %v7864_v60 = vld [vmem:[%s11349_s6 + $0x290] ss:$12 sps:$4 sm:$0xff]  }
 0x3c0   :  { %2720 = vmatprep.subr.bf16.mxu0 %v7811_v8  ;;  %2763 = vmatprep.subr.bf16.mxu1 %v8743_v0  ;;  %v7871_v6 = vld [vmem:[%s11349_s6 + $0x2bc] ss:$12 sps:$4 sm:$0xff]   ;;  %v7872_v8 = vld [vmem:[%s11349_s6 + $0x2c0] ss:$12 sps:$4 sm:$0xff]  }
 0x3c2   :  { %2721 = vmatpush1.bf16.msra.mxu0 %v7809_v9  ;;  %2764 = vmatpush1.bf16.msra.mxu1 %v7812_v10  ;;  %v7875_v9 = vld [vmem:[%s11349_s6 + $0x2d4] ss:$12 sps:$4 sm:$0xff]   ;;  %v7873_v10 = vld [vmem:[%s11349_s6 + $0x2d0] ss:$12 sps:$4 sm:$0xff]  }
 0x3c3   :  { %2722 = vmatprep.subr.bf16.mxu0 %v7815_v11  ;;  %2765 = vmatprep.subr.bf16.mxu1 %v8743_v0  ;;  %v7876_v11 = vld [vmem:[%s11349_s6 + $0x2d8] ss:$12 sps:$4 sm:$0xff]  }
 0x3c6   :  { %2723 = vmatpush1.bf16.msra.mxu0 %v7813_v12  ;;  %2766 = vmatpush1.bf16.msra.mxu1 %v7816_v15  ;;  %v7879_v12 = vld [vmem:[%s11349_s6 + $0x2ec] ss:$12 sps:$4 sm:$0xff]   ;;  %v7877_v15 = vld [vmem:[%s11349_s6 + $0x2e8] ss:$12 sps:$4 sm:$0xff]  }
 0x3c7   :  { %2724 = vmatprep.subr.bf16.mxu0 %v7819_v16  ;;  %2767 = vmatprep.subr.bf16.mxu1 %v8743_v0  ;;  %v7880_v16 = vld [vmem:[%s11349_s6 + $0x2f0] ss:$12 sps:$4 sm:$0xff]  }
 0x3ca   :  { %2725 = vmatpush1.bf16.msra.mxu0 %v7817_v17  ;;  %2768 = vmatpush1.bf16.msra.mxu1 %v7820_v18  ;;  %v7883_v17 = vld [vmem:[%s11349_s6 + $0x304] ss:$12 sps:$4 sm:$0xff]   ;;  %v7881_v18 = vld [vmem:[%s11349_s6 + $0x300] ss:$12 sps:$4 sm:$0xff]  }
 0x3cb   :  { %2726 = vmatprep.subr.bf16.mxu0 %v7823_v19  ;;  %2769 = vmatprep.subr.bf16.mxu1 %v8743_v0  ;;  %v7884_v19 = vld [vmem:[%s11349_s6 + $0x308] ss:$12 sps:$4 sm:$0xff]  }
 0x3ce   :  { %2727 = vmatpush1.bf16.msra.mxu0 %v7821_v20  ;;  %2770 = vmatpush1.bf16.msra.mxu1 %v7824_v21  ;;  %v7887_v20 = vld [vmem:[%s11349_s6 + $0x31c] ss:$12 sps:$4 sm:$0xff]   ;;  %v7885_v21 = vld [vmem:[%s11349_s6 + $0x318] ss:$12 sps:$4 sm:$0xff]  }
 0x3cf   :  { %2728 = vmatprep.subr.bf16.mxu0 %v7827_v22  ;;  %2771 = vmatprep.subr.bf16.mxu1 %v8743_v0  ;;  %v7888_v22 = vld [vmem:[%s11349_s6 + $0x320] ss:$12 sps:$4 sm:$0xff]  }
 0x3d2   :  { %2729 = vmatpush1.bf16.msra.mxu0 %v7825_v23  ;;  %2772 = vmatpush1.bf16.msra.mxu1 %v7828_v24  ;;  %v7891_v23 = vld [vmem:[%s11349_s6 + $0x334] ss:$12 sps:$4 sm:$0xff]   ;;  %v7889_v24 = vld [vmem:[%s11349_s6 + $0x330] ss:$12 sps:$4 sm:$0xff]  }
 0x3d3   :  { %2730 = vmatprep.subr.bf16.mxu0 %v7831_v25  ;;  %2773 = vmatprep.subr.bf16.mxu1 %v8743_v0  ;;  %v7892_v25 = vld [vmem:[%s11349_s6 + $0x338] ss:$12 sps:$4 sm:$0xff]  }
 0x3d6   :  { %2731 = vmatpush1.bf16.msra.mxu0 %v7829_v26  ;;  %2774 = vmatpush1.bf16.msra.mxu1 %v7832_v27  ;;  %v7895_v26 = vld [vmem:[%s11349_s6 + $0x34c] ss:$12 sps:$4 sm:$0xff]   ;;  %v7893_v27 = vld [vmem:[%s11349_s6 + $0x348] ss:$12 sps:$4 sm:$0xff]  }
 0x3d7   :  { %2732 = vmatprep.subr.bf16.mxu0 %v7835_v28  ;;  %2775 = vmatprep.subr.bf16.mxu1 %v8743_v0  ;;  %v7896_v28 = vld [vmem:[%s11349_s6 + $0x350] ss:$12 sps:$4 sm:$0xff]  }
 0x3da   :  { %2733 = vmatpush1.bf16.msra.mxu0 %v7833_v29  ;;  %2776 = vmatpush1.bf16.msra.mxu1 %v7836_v30  ;;  %v7899_v29 = vld [vmem:[%s11349_s6 + $0x364] ss:$12 sps:$4 sm:$0xff]   ;;  %v7897_v30 = vld [vmem:[%s11349_s6 + $0x360] ss:$12 sps:$4 sm:$0xff]  }
 0x3db   :  { %2734 = vmatprep.subr.bf16.mxu0 %v7839_v31  ;;  %2777 = vmatprep.subr.bf16.mxu1 %v8743_v0  ;;  %v7900_v31 = vld [vmem:[%s11349_s6 + $0x368] ss:$12 sps:$4 sm:$0xff]  }
 0x3de   :  { %2735 = vmatpush1.bf16.msra.mxu0 %v7837_v32  ;;  %2778 = vmatpush1.bf16.msra.mxu1 %v7840_v34  ;;  %v7903_v32 = vld [vmem:[%s11349_s6 + $0x37c] ss:$12 sps:$4 sm:$0xff]   ;;  %v7901_v34 = vld [vmem:[%s11349_s6 + $0x378] ss:$12 sps:$4 sm:$0xff]  }
 0x3df   :  { %2736 = vmatprep.subr.bf16.mxu0 %v7843_v36  ;;  %2779 = vmatprep.subr.bf16.mxu1 %v8743_v0  ;;  %v7904_v36 = vld [vmem:[%s11349_s6 + $0x380] ss:$12 sps:$4 sm:$0xff]  }
 0x3e2   :  { %2737 = vmatpush1.bf16.msra.mxu0 %v7841_v37  ;;  %2780 = vmatpush1.bf16.msra.mxu1 %v7844_v38  ;;  %v7907_v37 = vld [vmem:[%s11349_s6 + $0x394] ss:$12 sps:$4 sm:$0xff]   ;;  %v7905_v38 = vld [vmem:[%s11349_s6 + $0x390] ss:$12 sps:$4 sm:$0xff]  }
 0x3e3   :  { %2738 = vmatprep.subr.bf16.mxu0 %v7847_v39  ;;  %2781 = vmatprep.subr.bf16.mxu1 %v8743_v0  ;;  %v7908_v39 = vld [vmem:[%s11349_s6 + $0x398] ss:$12 sps:$4 sm:$0xff]  }
 0x3e6   :  { %2739 = vmatpush1.bf16.msra.mxu0 %v7845_v40  ;;  %2782 = vmatpush1.bf16.msra.mxu1 %v7848_v41  ;;  %v2804_v40 = vrot.slane %v9481_v55, 1  ;;  %v8744_v41 = vmov 0.0  }
 0x3e7   :  { %2740 = vmatprep.subr.bf16.mxu0 %v7851_v42  ;;  %2783 = vmatprep.subr.bf16.mxu1 %v8743_v0 }
 0x3ea   :  { %2741 = vmatpush1.bf16.msra.mxu0 %v7849_v43  ;;  %2784 = vmatpush1.bf16.msra.mxu1 %v7852_v46 }
 0x3eb   :  { %2742 = vmatprep.subr.bf16.mxu0 %v7855_v47  ;;  %2785 = vmatprep.subr.bf16.mxu1 %v8743_v0 }
 0x3ee   :  { %2743 = vmatpush1.bf16.msra.mxu0 %v7853_v48  ;;  %2786 = vmatpush1.bf16.msra.mxu1 %v7856_v49 }
 0x3ef   :  { %3018 = vmatprep.subr.bf16.mxu0 %v7859_v53  ;;  %3061 = vmatprep.subr.bf16.mxu1 %v8743_v0 }
 0x3f1   :  { %2751 = vmatmul.mubr.bf16.vlgmr.msra.gmra.mrb[20].mxu0 %v9481_v55  ;;  %2794 = vmatmul.mubr.bf16.vlgmr.msra.gmra.mrb[24].mxu1 %v9481_v55 }
 0x3f2   :  { %3019 = vmatpush1.bf16.msra.mxu0 %v7857_v61  ;;  %6936 = vmatprep.mubr.msk.bf16.mxu0 %vm2420_vm7, %v2805_v63 }
 0x3f3   :  { %3062 = vmatpush1.bf16.msra.mxu1 %v7860_v62  ;;  %6937 = vmatprep.mubr.msk.bf16.mxu1 %vm2420_vm7, %v2805_v63  ;;  %v691_v63 = vld [vmem:[#allocation11] sm:$0x7] }
 0x3f4   :  { %3020 = vmatprep.subr.bf16.mxu0 %v7863_v1  ;;  %3063 = vmatprep.subr.bf16.mxu1 %v8743_v0  ;;  %v9763_v1 = vrot.slane %v691_v63, %v1223_v51 }
 0x3f6   :  { %3021 = vmatpush1.bf16.msra.mxu0 %v7861_v2  ;;  %v9767_v2 = vrot.slane %v691_v63, %v1227_v54 }
 0x3f7   :  { %3064 = vmatpush1.bf16.msra.mxu1 %v7864_v60  ;;  %3022 = vmatprep.subr.bf16.mxu0 %v7867_v3  ;;  %v9771_v3 = vrot.slane %v691_v63, %v1231_v52  ;;  %v7930_v63 = vld [vmem:[%s11353_s10 + $0x30] ss:$8 sps:$4 sm:$0xff]  }
 0x3f8   :  { %3065 = vmatprep.subr.bf16.mxu1 %v8743_v0 }
 0x3fa   :  { %3023 = vmatpush1.bf16.msra.mxu0 %v7865_v4 }
 0x3fb   :  { %3066 = vmatpush1.bf16.msra.mxu1 %v7868_v5  ;;  %3024 = vmatprep.subr.bf16.mxu0 %v7871_v6 }
 0x3fc   :  { %3067 = vmatprep.subr.bf16.mxu1 %v8743_v0 }
 0x3fe   :  { %3025 = vmatpush1.bf16.msra.mxu0 %v7869_v7 }
 0x3ff   :  { %3068 = vmatpush1.bf16.msra.mxu1 %v7872_v8  ;;  %3026 = vmatprep.subr.bf16.mxu0 %v7875_v9 }
 0x400   :  { %3069 = vmatprep.subr.bf16.mxu1 %v8743_v0 }
 0x402   :  { %3027 = vmatpush1.bf16.msra.mxu0 %v7873_v10 }
 0x403   :  { %3070 = vmatpush1.bf16.msra.mxu1 %v7876_v11  ;;  %3028 = vmatprep.subr.bf16.mxu0 %v7879_v12 }
 0x404   :  { %3071 = vmatprep.subr.bf16.mxu1 %v8743_v0 }
 0x406   :  { %3029 = vmatpush1.bf16.msra.mxu0 %v7877_v15  ;;  %v8746_v15 = vmov 65535  }
 0x407   :  { %3072 = vmatpush1.bf16.msra.mxu1 %v7880_v16  ;;  %3030 = vmatprep.subr.bf16.mxu0 %v7883_v17  ;;  %v3143_v50 = vsel %vm1290_vm4, 4294967295, %v8746_v15  ;;  %v7953_v15 = vld [vmem:[%s11352_s9 + $0x74] ss:$8 sps:$4 sm:$0xff]  }
 0x408   :  { %3073 = vmatprep.subr.bf16.mxu1 %v8743_v0 }
 0x40a   :  { %3031 = vmatpush1.bf16.msra.mxu0 %v7881_v18 }
 0x40b   :  { %3074 = vmatpush1.bf16.msra.mxu1 %v7884_v19  ;;  %3032 = vmatprep.subr.bf16.mxu0 %v7887_v20 }
 0x40c   :  { %3075 = vmatprep.subr.bf16.mxu1 %v8743_v0 }
 0x40e   :  { %3033 = vmatpush1.bf16.msra.mxu0 %v7885_v21 }
 0x40f   :  { %3076 = vmatpush1.bf16.msra.mxu1 %v7888_v22  ;;  %3034 = vmatprep.subr.bf16.mxu0 %v7891_v23 }
 0x410   :  { %3077 = vmatprep.subr.bf16.mxu1 %v8743_v0 }
 0x412   :  { %3035 = vmatpush1.bf16.msra.mxu0 %v7889_v24  ;;  %v9781_v24 = vsel %vm761_vm0, %v3143_v50, 0  ;;  %v7956_v50 = vld [vmem:[%s11353_s10 + $0x74] ss:$8 sps:$4 sm:$0xff]  }
 0x413   :  { %3078 = vmatpush1.bf16.msra.mxu1 %v7892_v25  ;;  %3036 = vmatprep.subr.bf16.mxu0 %v7895_v26 }
 0x414   :  { %3079 = vmatprep.subr.bf16.mxu1 %v8743_v0 }
 0x416   :  { %3037 = vmatpush1.bf16.msra.mxu0 %v7893_v27 }
 0x417   :  { %3080 = vmatpush1.bf16.msra.mxu1 %v7896_v28  ;;  %3038 = vmatprep.subr.bf16.mxu0 %v7899_v29 }
 0x418   :  { %3081 = vmatprep.subr.bf16.mxu1 %v8743_v0 }
 0x41a   :  { %3039 = vmatpush1.bf16.msra.mxu0 %v7897_v30 }
 0x41b   :  { %3082 = vmatpush1.bf16.msra.mxu1 %v7900_v31  ;;  %3040 = vmatprep.subr.bf16.mxu0 %v7903_v32  ;;  %v574_v32 = vld [vmem:[%s11350_s7] sm:$0x7] }
 0x41c   :  { %3083 = vmatprep.subr.bf16.mxu1 %v8743_v0 }
 0x41e   :  { %3041 = vmatpush1.bf16.msra.mxu0 %v7901_v34  ;;  %v7911_v34 = vld [vmem:[%s11352_s9 + $0x4] ss:$8 sps:$4 sm:$0xff]  }
 0x41f   :  { %3084 = vmatpush1.bf16.msra.mxu1 %v7904_v36  ;;  %3042 = vmatprep.subr.bf16.mxu0 %v7907_v37  ;;  %v7914_v36 = vld [vmem:[%s11353_s10 + $0x4] ss:$8 sps:$4 sm:$0xff]   ;;  %v575_v37 = vld [vmem:[%s11351_s8] sm:$0x7] }
 0x420   :  { %3085 = vmatprep.subr.bf16.mxu1 %v8743_v0 }
 0x422   :  { %3043 = vmatpush1.bf16.msra.mxu0 %v7905_v38  ;;  %v7909_v38 = vld [vmem:[%s11352_s9] ss:$8 sps:$4 sm:$0xff]  }
 0x423   :  { %3086 = vmatpush1.bf16.msra.mxu1 %v7908_v39  ;;  %v7912_v39 = vld [vmem:[%s11353_s10] ss:$8 sps:$4 sm:$0xff]  }
 0x424   :  { %7237 = vmatprep.subr.bf16.mxu1 %v8744_v41 }
 0x425   :  { %3051 = vmatmul.mubr.bf16.vlgmr.msra.gmra.mrb[20].mxu0 %v2804_v40 }
 0x426   :  { %3094 = vmatmul.mubr.bf16.vlgmr.msra.gmra.mrb[28].mxu1 %v2804_v40  ;;  %3186 = vmatprep.mubr.bf16.mxu0 %v8743_v0  ;;  %v7917_v40 = vld [vmem:[%s11352_s9 + $0x14] ss:$8 sps:$4 sm:$0xff]  }
 0x427   :  { %7239 = vmatprep.mubr.msk.bf16.mxu1 %vm8745_vm8, %v8744_v41 }
 0x490   :  { %v2501_v42 = vpop.f32.mrb[20].mxu1 }
 0x491   :  { %v2503_v43 = vpop.f32.mrb[21].mxu1 }
 0x492   :  { %v2504_v46 = vpop.f32.mrb[22].mxu1  ;;  %v7915_v43 = vld [vmem:[%s11352_s9 + $0x10] ss:$8 sps:$4 sm:$0xff]  }
 0x493   :  { %v2506_v47 = vpop.f32.mrb[23].mxu1 }
 0x494   :  { %v7923_v47 = vld [vmem:[%s11352_s9 + $0x24] ss:$8 sps:$4 sm:$0xff]  }
 0x4c4   :  { %v2795_v48 = vpop.f32.mrb[24].mxu1 }
 0x4c5   :  { %v2796_v49 = vadd.f32 %v2795_v48, %v2501_v42  ;;  %v2797_v53 = vpop.f32.mrb[25].mxu1  ;;  %v7920_v42 = vld [vmem:[%s11353_s10 + $0x14] ss:$8 sps:$4 sm:$0xff]   ;;  %v7926_v48 = vld [vmem:[%s11353_s10 + $0x24] ss:$8 sps:$4 sm:$0xff]  }
 0x4c6   :  { %v2798_v61 = vpop.f32.mrb[26].mxu1  ;;  %v7924_v53 = vld [vmem:[%s11353_s10 + $0x20] ss:$8 sps:$4 sm:$0xff]  }
 0x4c7   :  { %v2799_v55 = vadd.f32 %v2798_v61, %v2504_v46  ;;  %v2800_v62 = vpop.f32.mrb[27].mxu1  ;;  %v7918_v46 = vld [vmem:[%s11353_s10 + $0x10] ss:$8 sps:$4 sm:$0xff]   ;;  %v7929_v61 = vld [vmem:[%s11352_s9 + $0x34] ss:$8 sps:$4 sm:$0xff]  }
 0x4c8   :  { %v7927_v62 = vld [vmem:[%s11352_s9 + $0x30] ss:$8 sps:$4 sm:$0xff]  }
 0x4f8   :  { %v3052_v60 = vpop.f32.mrb[20].mxu0 }
 0x4f9   :  { %v3124_v4 = vadd.f32 %v9763_v1, %v3052_v60  ;;  %v3095_v5 = vpop.f32.mrb[28].mxu1  ;;  %v3054_v6 = vpop.f32.mrb[21].mxu0  ;;  %v7935_v60 = vld [vmem:[%s11352_s9 + $0x44] ss:$8 sps:$4 sm:$0xff]  }
 0x4fa   :  { %v3104_v7 = vadd.f32 %v3095_v5, %v2796_v49  ;;  %v3125_v8 = vadd.f32 %v9767_v2, %v3054_v6  ;;  %v3097_v9 = vpop.f32.mrb[29].mxu1  ;;  %v3056_v10 = vpop.f32.mrb[22].mxu0  ;;  %v7921_v49 = vld [vmem:[%s11352_s9 + $0x20] ss:$8 sps:$4 sm:$0xff]  }
 0x4fb   :  { %v3127_v51 = vadd.f32 %v9763_v1, %v3056_v10  ;;  %v3098_v11 = vpop.f32.mrb[30].mxu1  ;;  %v3058_v12 = vpop.f32.mrb[23].mxu0  ;;  %v3130_v18 = vmax.f32 %v3124_v4, 0.0  ;;  %v7938_v4 = vld [vmem:[%s11353_s10 + $0x44] ss:$8 sps:$4 sm:$0xff]  }
 0x4fc   :  { %v3126_v54 = vadd.f32 %v9771_v3, %v3104_v7  ;;  %v3107_v52 = vadd.f32 %v3098_v11, %v2799_v55  ;;  %v3128_v16 = vadd.f32 %v9767_v2, %v3058_v12  ;;  %v3100_v17 = vpop.f32.mrb[31].mxu1  ;;  %v3131_v20 = vmax.f32 %v3125_v8, 0.0  ;;  %v7932_v55 = vld [vmem:[%s11353_s10 + $0x34] ss:$8 sps:$4 sm:$0xff]   ;;  %v7933_v5 = vld [vmem:[%s11352_s9 + $0x40] ss:$8 sps:$4 sm:$0xff]  }
 0x4fd   :  { %v3133_v19 = vmax.f32 %v3127_v51, 0.0  ;;  %v7936_v6 = vld [vmem:[%s11353_s10 + $0x40] ss:$8 sps:$4 sm:$0xff]   ;;  %v7941_v7 = vld [vmem:[%s11352_s9 + $0x54] ss:$8 sps:$4 sm:$0xff]  }
 0x4fe   :  { %v3129_v21 = vadd.f32 %v9771_v3, %v3107_v52  ;;  %v3134_v22 = vmax.f32 %v3128_v16, 0.0  ;;  %v3132_v25 = vmax.f32 %v3126_v54, 0.0  ;;  %v7944_v8 = vld [vmem:[%s11353_s10 + $0x54] ss:$8 sps:$4 sm:$0xff]   ;;  %v7939_v9 = vld [vmem:[%s11352_s9 + $0x50] ss:$8 sps:$4 sm:$0xff]  }
 0x4ff   :  { %v3136_v23 = vpack.c.bf16 %v3133_v19, %v3130_v18  ;;  %v7942_v10 = vld [vmem:[%s11353_s10 + $0x50] ss:$8 sps:$4 sm:$0xff]   ;;  %v7947_v51 = vld [vmem:[%s11352_s9 + $0x64] ss:$8 sps:$4 sm:$0xff]   ;;  %v7945_v12 = vld [vmem:[%s11352_s9 + $0x60] ss:$8 sps:$4 sm:$0xff]  }
 0x500   :  { %v3135_v26 = vmax.f32 %v3129_v21, 0.0  ;;  %v3137_v27 = vpack.c.bf16 %v3134_v22, %v3131_v20  ;;  %v7950_v11 = vld [vmem:[%s11353_s10 + $0x64] ss:$8 sps:$4 sm:$0xff]   ;;  %v7948_v54 = vld [vmem:[%s11353_s10 + $0x60] ss:$8 sps:$4 sm:$0xff]  }
 0x501   :  { %v3146_v30 = vand.u32 %v9781_v24, %v3136_v23  ;;  %v7951_v52 = vld [vmem:[%s11352_s9 + $0x70] ss:$8 sps:$4 sm:$0xff]   ;;  %v7959_v17 = vld [vmem:[%s11352_s9 + $0x84] ss:$8 sps:$4 sm:$0xff]   ;;  %v7957_v19 = vld [vmem:[%s11352_s9 + $0x80] ss:$8 sps:$4 sm:$0xff]  }
 0x502   :  { %v3138_v28 = vpack.c.bf16 %v3135_v26, %v3132_v25  ;;  %v3149_v29 = vand.u32 %v9781_v24, %v3137_v27  ;;  %v7954_v16 = vld [vmem:[%s11353_s10 + $0x70] ss:$8 sps:$4 sm:$0xff]   ;;  %v7962_v18 = vld [vmem:[%s11353_s10 + $0x84] ss:$8 sps:$4 sm:$0xff]   ;;  %v7960_v20 = vld [vmem:[%s11353_s10 + $0x80] ss:$8 sps:$4 sm:$0xff]  }
 0x503   :  { %v7965_v21 = vld [vmem:[%s11352_s9 + $0x94] ss:$8 sps:$4 sm:$0xff]   ;;  %v7963_v23 = vld [vmem:[%s11352_s9 + $0x90] ss:$8 sps:$4 sm:$0xff]   ;;  %v7971_v26 = vld [vmem:[%s11352_s9 + $0xa4] ss:$8 sps:$4 sm:$0xff]  }
 0x504   :  { %v3152_v31 = vand.u32 %v9781_v24, %v3138_v28  ;;  %3154 = vmatprep.subr.bf16.mxu0 %v3149_v29  ;;  %v7968_v22 = vld [vmem:[%s11353_s10 + $0x94] ss:$8 sps:$4 sm:$0xff]   ;;  %v7966_v25 = vld [vmem:[%s11353_s10 + $0x90] ss:$8 sps:$4 sm:$0xff]   ;;  %v7974_v27 = vld [vmem:[%s11353_s10 + $0xa4] ss:$8 sps:$4 sm:$0xff]  }
 0x505   :  { %3155 = vmatpush1.bf16.msra.mxu0 %v3146_v30  ;;  %v7969_v28 = vld [vmem:[%s11352_s9 + $0xa0] ss:$8 sps:$4 sm:$0xff]  }
 0x506   :  { %7238 = vmatpush3.bf16.msra.mxu1 %v3152_v31  ;;  %3238 = vmatprep.subr.bf16.mxu0 %v3149_v29  ;;  %v7972_v29 = vld [vmem:[%s11353_s10 + $0xa0] ss:$8 sps:$4 sm:$0xff]  }
 0x507   :  { %7243 = vmatprep.subr.bf16.mxu1 %v8744_v41 }
 0x508   :  { %6938 = vmatmul.mubr.msk.bf16.vlgmr.msra.gmra.mrb[24].mxu0 %vm3139_vm9, %v574_v32 }
 0x509   :  { %7240 = vmatmul.mubr.msk.bf16.vlgmr.msra.gmra.mrb[32].mxu1 %vm3139_vm9, %v574_v32  ;;  %3239 = vmatpush1.bf16.msra.mxu0 %v3146_v30  ;;  %v7977_v30 = vld [vmem:[%s11352_s9 + $0xb4] ss:$8 sps:$4 sm:$0xff]   ;;  %v7975_v32 = vld [vmem:[%s11352_s9 + $0xb0] ss:$8 sps:$4 sm:$0xff]  }
 0x50a   :  { %7244 = vmatpush3.bf16.msra.mxu1 %v3152_v31  ;;  %3270 = vmatprep.mubr.bf16.mxu0 %v8743_v0  ;;  %v7980_v31 = vld [vmem:[%s11353_s10 + $0xb4] ss:$8 sps:$4 sm:$0xff]  }
 0x50b   :  { %7245 = vmatprep.mubr.msk.bf16.mxu1 %vm8745_vm8, %v8744_v41  ;;  %3549 = vmatprep.subr.bf16.mxu0 %v7911_v34  ;;  %v7978_v34 = vld [vmem:[%s11353_s10 + $0xb0] ss:$8 sps:$4 sm:$0xff]  }
 0x50c   :  { %3851 = vmatprep.subr.bf16.mxu1 %v7914_v36  ;;  %v7983_v36 = vld [vmem:[%s11352_s9 + $0xc4] ss:$8 sps:$4 sm:$0xff]  }
 0x510   :  { %6940 = vmatmul.mubr.msk.bf16.vlgmr.msra.gmra.mrb[28].mxu0 %vm3139_vm9, %v575_v37 }
 0x511   :  { %7246 = vmatmul.mubr.msk.bf16.vlgmr.msra.gmra.mrb[36].mxu1 %vm3139_vm9, %v575_v37  ;;  %3550 = vmatpush1.bf16.msra.mxu0 %v7909_v38  ;;  %v7986_v37 = vld [vmem:[%s11353_s10 + $0xc4] ss:$8 sps:$4 sm:$0xff]   ;;  %v7981_v38 = vld [vmem:[%s11352_s9 + $0xc0] ss:$8 sps:$4 sm:$0xff]  }
 0x512   :  { %3852 = vmatpush1.bf16.msra.mxu1 %v7912_v39  ;;  %3551 = vmatprep.subr.bf16.mxu0 %v7917_v40  ;;  %v7984_v39 = vld [vmem:[%s11353_s10 + $0xc0] ss:$8 sps:$4 sm:$0xff]   ;;  %v7989_v40 = vld [vmem:[%s11352_s9 + $0xd4] ss:$8 sps:$4 sm:$0xff]  }
 0x513   :  { %3853 = vmatprep.subr.bf16.mxu1 %v7920_v42  ;;  %v7992_v42 = vld [vmem:[%s11353_s10 + $0xd4] ss:$8 sps:$4 sm:$0xff]  }
 0x515   :  { %3552 = vmatpush1.bf16.msra.mxu0 %v7915_v43  ;;  %v7987_v43 = vld [vmem:[%s11352_s9 + $0xd0] ss:$8 sps:$4 sm:$0xff]  }
 0x516   :  { %3854 = vmatpush1.bf16.msra.mxu1 %v7918_v46  ;;  %3553 = vmatprep.subr.bf16.mxu0 %v7923_v47  ;;  %v7990_v46 = vld [vmem:[%s11353_s10 + $0xd0] ss:$8 sps:$4 sm:$0xff]   ;;  %v7995_v47 = vld [vmem:[%s11352_s9 + $0xe4] ss:$8 sps:$4 sm:$0xff]  }
 0x517   :  { %3855 = vmatprep.subr.bf16.mxu1 %v7926_v48  ;;  %v7993_v48 = vld [vmem:[%s11352_s9 + $0xe0] ss:$8 sps:$4 sm:$0xff]  }
 0x519   :  { %3554 = vmatpush1.bf16.msra.mxu0 %v7921_v49  ;;  %v7996_v49 = vld [vmem:[%s11353_s10 + $0xe0] ss:$8 sps:$4 sm:$0xff]  }
 0x51a   :  { %3856 = vmatpush1.bf16.msra.mxu1 %v7924_v53  ;;  %3555 = vmatprep.subr.bf16.mxu0 %v7929_v61  ;;  %v7998_v53 = vld [vmem:[%s11353_s10 + $0xe4] ss:$8 sps:$4 sm:$0xff]   ;;  %v8001_v61 = vld [vmem:[%s11352_s9 + $0xf4] ss:$8 sps:$4 sm:$0xff]  }
 0x51b   :  { %3857 = vmatprep.subr.bf16.mxu1 %v7932_v55  ;;  %v8004_v55 = vld [vmem:[%s11353_s10 + $0xf4] ss:$8 sps:$4 sm:$0xff]  }
 0x51d   :  { %3556 = vmatpush1.bf16.msra.mxu0 %v7927_v62  ;;  %v7999_v62 = vld [vmem:[%s11352_s9 + $0xf0] ss:$8 sps:$4 sm:$0xff]  }
 0x51e   :  { %3858 = vmatpush1.bf16.msra.mxu1 %v7930_v63  ;;  %3557 = vmatprep.subr.bf16.mxu0 %v7935_v60  ;;  %v8002_v63 = vld [vmem:[%s11353_s10 + $0xf0] ss:$8 sps:$4 sm:$0xff]   ;;  %v8007_v60 = vld [vmem:[%s11352_s9 + $0x104] ss:$8 sps:$4 sm:$0xff]  }
 0x51f   :  { %3859 = vmatprep.subr.bf16.mxu1 %v7938_v4  ;;  %v8010_v4 = vld [vmem:[%s11353_s10 + $0x104] ss:$8 sps:$4 sm:$0xff]  }
 0x521   :  { %3558 = vmatpush1.bf16.msra.mxu0 %v7933_v5 }
 0x522   :  { %3860 = vmatpush1.bf16.msra.mxu1 %v7936_v6  ;;  %3559 = vmatprep.subr.bf16.mxu0 %v7941_v7 }
 0x523   :  { %3861 = vmatprep.subr.bf16.mxu1 %v7944_v8 }
 0x525   :  { %3560 = vmatpush1.bf16.msra.mxu0 %v7939_v9 }
 0x526   :  { %3862 = vmatpush1.bf16.msra.mxu1 %v7942_v10  ;;  %3561 = vmatprep.subr.bf16.mxu0 %v7947_v51 }
 0x527   :  { %3863 = vmatprep.subr.bf16.mxu1 %v7950_v11 }
 0x529   :  { %3562 = vmatpush1.bf16.msra.mxu0 %v7945_v12 }
 0x52a   :  { %3864 = vmatpush1.bf16.msra.mxu1 %v7948_v54  ;;  %3563 = vmatprep.subr.bf16.mxu0 %v7953_v15 }
 0x52b   :  { %3865 = vmatprep.subr.bf16.mxu1 %v7956_v50 }
 0x52d   :  { %3564 = vmatpush1.bf16.msra.mxu0 %v7951_v52 }
 0x52e   :  { %3866 = vmatpush1.bf16.msra.mxu1 %v7954_v16  ;;  %3565 = vmatprep.subr.bf16.mxu0 %v7959_v17 }
 0x52f   :  { %3867 = vmatprep.subr.bf16.mxu1 %v7962_v18 }
 0x531   :  { %3566 = vmatpush1.bf16.msra.mxu0 %v7957_v19 }
 0x532   :  { %3868 = vmatpush1.bf16.msra.mxu1 %v7960_v20  ;;  %3567 = vmatprep.subr.bf16.mxu0 %v7965_v21 }
 0x533   :  { %3869 = vmatprep.subr.bf16.mxu1 %v7968_v22  ;;  %v8005_v22 = vld [vmem:[%s11352_s9 + $0x100] ss:$8 sps:$4 sm:$0xff]  }
 0x535   :  { %3568 = vmatpush1.bf16.msra.mxu0 %v7963_v23  ;;  %v8008_v23 = vld [vmem:[%s11353_s10 + $0x100] ss:$8 sps:$4 sm:$0xff]  }
 0x536   :  { %3870 = vmatpush1.bf16.msra.mxu1 %v7966_v25  ;;  %3569 = vmatprep.subr.bf16.mxu0 %v7971_v26 }
 0x537   :  { %3871 = vmatprep.subr.bf16.mxu1 %v7974_v27  ;;  %v8013_v27 = vld [vmem:[%s11352_s9 + $0x114] ss:$8 sps:$4 sm:$0xff]  }
 0x539   :  { %3570 = vmatpush1.bf16.msra.mxu0 %v7969_v28  ;;  %v8016_v28 = vld [vmem:[%s11353_s10 + $0x114] ss:$8 sps:$4 sm:$0xff]  }
 0x53a   :  { %3872 = vmatpush1.bf16.msra.mxu1 %v7972_v29  ;;  %3571 = vmatprep.subr.bf16.mxu0 %v7977_v30  ;;  %v8011_v29 = vld [vmem:[%s11352_s9 + $0x110] ss:$8 sps:$4 sm:$0xff]  }
 0x53b   :  { %3873 = vmatprep.subr.bf16.mxu1 %v7980_v31  ;;  %v8014_v30 = vld [vmem:[%s11353_s10 + $0x110] ss:$8 sps:$4 sm:$0xff]   ;;  %v8019_v31 = vld [vmem:[%s11352_s9 + $0x124] ss:$8 sps:$4 sm:$0xff]  }
 0x53d   :  { %3572 = vmatpush1.bf16.msra.mxu0 %v7975_v32  ;;  %v8022_v32 = vld [vmem:[%s11353_s10 + $0x124] ss:$8 sps:$4 sm:$0xff]  }
 0x53e   :  { %3874 = vmatpush1.bf16.msra.mxu1 %v7978_v34  ;;  %3573 = vmatprep.subr.bf16.mxu0 %v7983_v36  ;;  %v8017_v34 = vld [vmem:[%s11352_s9 + $0x120] ss:$8 sps:$4 sm:$0xff]  }
 0x53f   :  { %3875 = vmatprep.subr.bf16.mxu1 %v7986_v37  ;;  %v8020_v36 = vld [vmem:[%s11353_s10 + $0x120] ss:$8 sps:$4 sm:$0xff]   ;;  %v8025_v37 = vld [vmem:[%s11352_s9 + $0x134] ss:$8 sps:$4 sm:$0xff]  }
 0x541   :  { %3574 = vmatpush1.bf16.msra.mxu0 %v7981_v38  ;;  %v8028_v38 = vld [vmem:[%s11353_s10 + $0x134] ss:$8 sps:$4 sm:$0xff]  }
 0x542   :  { %3876 = vmatpush1.bf16.msra.mxu1 %v7984_v39  ;;  %3575 = vmatprep.subr.bf16.mxu0 %v7989_v40  ;;  %v8023_v39 = vld [vmem:[%s11352_s9 + $0x130] ss:$8 sps:$4 sm:$0xff]  }
 0x543   :  { %3877 = vmatprep.subr.bf16.mxu1 %v7992_v42  ;;  %v8026_v40 = vld [vmem:[%s11353_s10 + $0x130] ss:$8 sps:$4 sm:$0xff]   ;;  %v8031_v42 = vld [vmem:[%s11352_s9 + $0x144] ss:$8 sps:$4 sm:$0xff]  }
 0x545   :  { %3576 = vmatpush1.bf16.msra.mxu0 %v7987_v43  ;;  %v8034_v43 = vld [vmem:[%s11353_s10 + $0x144] ss:$8 sps:$4 sm:$0xff]  }
 0x546   :  { %3878 = vmatpush1.bf16.msra.mxu1 %v7990_v46  ;;  %3577 = vmatprep.subr.bf16.mxu0 %v7995_v47  ;;  %v8029_v46 = vld [vmem:[%s11352_s9 + $0x140] ss:$8 sps:$4 sm:$0xff]  }
 0x547   :  { %3879 = vmatprep.subr.bf16.mxu1 %v7998_v53  ;;  %v8032_v47 = vld [vmem:[%s11353_s10 + $0x140] ss:$8 sps:$4 sm:$0xff]   ;;  %v8035_v53 = vld [vmem:[%s11352_s9 + $0x150] ss:$8 sps:$4 sm:$0xff]  }
 0x549   :  { %3578 = vmatpush1.bf16.msra.mxu0 %v7993_v48  ;;  %v8037_v48 = vld [vmem:[%s11352_s9 + $0x154] ss:$8 sps:$4 sm:$0xff]  }
 0x54a   :  { %3880 = vmatpush1.bf16.msra.mxu1 %v7996_v49  ;;  %3579 = vmatprep.subr.bf16.mxu0 %v8001_v61  ;;  %v8040_v49 = vld [vmem:[%s11353_s10 + $0x154] ss:$8 sps:$4 sm:$0xff]   ;;  %v8038_v61 = vld [vmem:[%s11353_s10 + $0x150] ss:$8 sps:$4 sm:$0xff]  }
 0x54b   :  { %3881 = vmatprep.subr.bf16.mxu1 %v8004_v55  ;;  %v8041_v55 = vld [vmem:[#allocation5] sm:$0xff]  }
 0x54d   :  { %3580 = vmatpush1.bf16.msra.mxu0 %v7999_v62  ;;  %v8043_v62 = vld [vmem:[#allocation5 + $0x50] sm:$0xff]  }
 0x54e   :  { %3882 = vmatpush1.bf16.msra.mxu1 %v8002_v63  ;;  %3590 = vmatprep.subr.bf16.mxu0 %v8007_v60  ;;  %v8042_v60 = vld [vmem:[#allocation5 + $0x8] sm:$0xff]  }
 0x54f   :  { %3892 = vmatprep.subr.bf16.mxu1 %v8010_v4  ;;  %v8045_v4 = vld [vmem:[#allocation5 + $0x58] sm:$0xff]  }
 0x5db   :  { %v3188_v5 = vpop.f32.mrb[24].mxu0 }
 0x5dc   :  { %v3190_v6 = vpop.f32.mrb[25].mxu0  ;;  %v3229_v7 = vpop.f32.mrb[32].mxu1 }
 0x5dd   :  { %v3192_v8 = vpop.f32.mrb[26].mxu0  ;;  %v7241_v9 = vpop.f32.mrb[33].mxu1 }
 0x5de   :  { %v3193_v10 = vpop.f32.mrb[27].mxu0  ;;  %v3232_v51 = vpop.f32.mrb[34].mxu1  ;;  %v8049_v8 = vld [vmem:[#allocation5 + $0x68] sm:$0xff]   ;;  %v8048_v9 = vld [vmem:[#allocation5 + $0x20] sm:$0xff]  }
 0x5df   :  { %v7242_v11 = vpop.f32.mrb[35].mxu1  ;;  %v8051_v10 = vld [vmem:[#allocation5 + $0x70] sm:$0xff]   ;;  %v8050_v51 = vld [vmem:[#allocation5 + $0x28] sm:$0xff]  }
 0x5e0   :  { %v8053_v11 = vld [vmem:[#allocation5 + $0x78] sm:$0xff]  }
 0x5e3   :  { %v3272_v12 = vpop.f32.mrb[28].mxu0 }
 0x5e4   :  { %v3319_v54 = vmax.f32 %v3188_v5, %v3272_v12  ;;  %v3274_v15 = vpop.f32.mrb[29].mxu0  ;;  %v3313_v50 = vpop.f32.mrb[36].mxu1  ;;  %v8044_v5 = vld [vmem:[#allocation5 + $0x10] sm:$0xff]  }
 0x5e5   :  { %v3320_v52 = vmax.f32 %v3190_v6, %v3274_v15  ;;  %v3276_v16 = vpop.f32.mrb[30].mxu0  ;;  %v3321_v17 = vmax.f32 %v3229_v7, %v3313_v50  ;;  %v7247_v18 = vpop.f32.mrb[37].mxu1  ;;  %v8047_v6 = vld [vmem:[#allocation5 + $0x60] sm:$0xff]   ;;  %v8046_v7 = vld [vmem:[#allocation5 + $0x18] sm:$0xff]   ;;  %v8052_v12 = vld [vmem:[#allocation5 + $0x30] sm:$0xff]  }
 0x5e6   :  { %v3277_v19 = vpop.f32.mrb[31].mxu0  ;;  %v3316_v20 = vpop.f32.mrb[38].mxu1  ;;  %v3322_v26 = vpack.c.bf16 %v3319_v54, %v3319_v54  ;;  %v8055_v54 = vld [vmem:[#allocation5 + $0x80] sm:$0xff]   ;;  %v8054_v15 = vld [vmem:[#allocation5 + $0x38] sm:$0xff]   ;;  %v8058_v16 = vld [vmem:[#allocation5 + $0x48] sm:$0xff]  }
 0x5e7   :  { %v3323_v21 = vpack.c.bf16 %v3320_v52, %v3320_v52  ;;  %v7248_v25 = vpop.f32.mrb[39].mxu1  ;;  %v3324_v63 = vpack.c.bf16 %v3321_v17, %v3321_v17  ;;  %v8056_v50 = vld [vmem:[#allocation5 + $0x40] sm:$0xff]   ;;  %v8057_v52 = vld [vmem:[#allocation5 + $0x88] sm:$0xff]   ;;  %v8059_v17 = vld [vmem:[#allocation5 + $0x90] sm:$0xff]  }
 0x5e8   :  { %v8060_v18 = vld [vmem:[#allocation5 + $0x98] sm:$0xff]  }
 0x5e9   :  { %3581 = vmatprep.mubr.bf16.mxu0 %v3323_v21  ;;  %3883 = vmatprep.mubr.bf16.mxu1 %v3323_v21 }
 0x5ea   :  { %3582 = vmatmul.mubr.bf16.vlgmr.msra.gmra.mrb[32].mxu0 %v3322_v26  ;;  %3884 = vmatmul.mubr.bf16.vlgmr.msra.gmra.mrb[40].mxu1 %v3322_v26 }
 0x5eb   :  { %3591 = vmatpush1.bf16.msra.mxu0 %v8005_v22  ;;  %3893 = vmatpush1.bf16.msra.mxu1 %v8008_v23 }
 0x5ec   :  { %3592 = vmatprep.subr.bf16.mxu0 %v8013_v27  ;;  %3894 = vmatprep.subr.bf16.mxu1 %v8016_v28 }
 0x5ed   :  { %3622 = vmatprep.mubr.bf16.mxu0 %v8743_v0  ;;  %3924 = vmatprep.mubr.bf16.mxu1 %v8743_v0 }
 0x5ef   :  { %3593 = vmatpush1.bf16.msra.mxu0 %v8011_v29  ;;  %3895 = vmatpush1.bf16.msra.mxu1 %v8014_v30 }
 0x5f0   :  { %3594 = vmatprep.subr.bf16.mxu0 %v8019_v31  ;;  %3896 = vmatprep.subr.bf16.mxu1 %v8022_v32 }
 0x5f3   :  { %3595 = vmatpush1.bf16.msra.mxu0 %v8017_v34  ;;  %3897 = vmatpush1.bf16.msra.mxu1 %v8020_v36 }
 0x5f4   :  { %3596 = vmatprep.subr.bf16.mxu0 %v8025_v37  ;;  %3898 = vmatprep.subr.bf16.mxu1 %v8028_v38 }
 0x5f7   :  { %3597 = vmatpush1.bf16.msra.mxu0 %v8023_v39  ;;  %3899 = vmatpush1.bf16.msra.mxu1 %v8026_v40 }
 0x5f8   :  { %3598 = vmatprep.subr.bf16.mxu0 %v8031_v42  ;;  %3900 = vmatprep.subr.bf16.mxu1 %v8034_v43  ;;  %v8061_v42 = vld [vmem:[#allocation5 + $0xa0] sm:$0xff]  }
 0x5fb   :  { %3599 = vmatpush1.bf16.msra.mxu0 %v8029_v46  ;;  %3901 = vmatpush1.bf16.msra.mxu1 %v8032_v47  ;;  %v8062_v47 = vld [vmem:[#allocation5 + $0xa8] sm:$0xff]  }
 0x5fc   :  { %3600 = vmatprep.subr.bf16.mxu0 %v8037_v48  ;;  %3902 = vmatprep.subr.bf16.mxu1 %v8040_v49  ;;  %v8063_v48 = vld [vmem:[#allocation5 + $0xb0] sm:$0xff]   ;;  %v8064_v49 = vld [vmem:[#allocation5 + $0xb8] sm:$0xff]  }
 0x5ff   :  { %3601 = vmatpush1.bf16.msra.mxu0 %v8035_v53  ;;  %3903 = vmatpush1.bf16.msra.mxu1 %v8038_v61  ;;  %v8065_v53 = vld [vmem:[#allocation5 + $0xc0] sm:$0xff]   ;;  %v8066_v61 = vld [vmem:[#allocation5 + $0xc8] sm:$0xff]  }
 0x600   :  { %4117 = vmatprep.subr.bf16.mxu1 %v8743_v0  ;;  %4015 = vmatprep.subr.bf16.mxu0 %v8743_v0 }
 0x602   :  { %6986 = vmatmul.mubr.msk.bf16.vlgmr.msra.gmra.mrb[32].mxu0 %vm3545_vm10, %v3324_v63  ;;  %7031 = vmatmul.mubr.msk.bf16.vlgmr.msra.gmra.mrb[40].mxu1 %vm3545_vm10, %v3324_v63  ;;  %v8069_v63 = vld [vmem:[#allocation5 + $0xe0] sm:$0xff]  }
 0x603   :  { %4118 = vmatpush1.bf16.msra.mxu1 %v8041_v55  ;;  %4016 = vmatpush1.bf16.msra.mxu0 %v8043_v62  ;;  %v8067_v55 = vld [vmem:[#allocation5 + $0xd0] sm:$0xff]   ;;  %v8068_v62 = vld [vmem:[#allocation5 + $0xd8] sm:$0xff]  }
 0x604   :  { %4119 = vmatprep.subr.bf16.mxu1 %v8743_v0  ;;  %4017 = vmatprep.subr.bf16.mxu0 %v8743_v0 }
 0x607   :  { %4120 = vmatpush1.bf16.msra.mxu1 %v8042_v60  ;;  %4018 = vmatpush1.bf16.msra.mxu0 %v8045_v4  ;;  %v8070_v60 = vld [vmem:[#allocation5 + $0xe8] sm:$0xff]  }
 0x608   :  { %4121 = vmatprep.subr.bf16.mxu1 %v8743_v0  ;;  %4019 = vmatprep.subr.bf16.mxu0 %v8743_v0 }
 0x60b   :  { %4122 = vmatpush1.bf16.msra.mxu1 %v8044_v5  ;;  %4020 = vmatpush1.bf16.msra.mxu0 %v8047_v6  ;;  %v8071_v5 = vld [vmem:[#allocation7 + $0x30] sm:$0xff]   ;;  %v8072_v6 = vld [vmem:[#allocation7 + $0x60] sm:$0xff]  }
 0x60c   :  { %4123 = vmatprep.subr.bf16.mxu1 %v8743_v0  ;;  %4021 = vmatprep.subr.bf16.mxu0 %v8743_v0 }
 0x60f   :  { %4124 = vmatpush1.bf16.msra.mxu1 %v8046_v7  ;;  %4022 = vmatpush1.bf16.msra.mxu0 %v8049_v8  ;;  %v8073_v7 = vld [vmem:[#allocation7 + $0x38] sm:$0xff]   ;;  %v8074_v8 = vld [vmem:[#allocation7 + $0x68] sm:$0xff]  }
 0x610   :  { %4125 = vmatprep.subr.bf16.mxu1 %v8743_v0  ;;  %4023 = vmatprep.subr.bf16.mxu0 %v8743_v0 }
 0x613   :  { %4126 = vmatpush1.bf16.msra.mxu1 %v8048_v9  ;;  %4024 = vmatpush1.bf16.msra.mxu0 %v8051_v10  ;;  %v8075_v9 = vld [vmem:[#allocation7 + $0x40] sm:$0xff]   ;;  %v8076_v10 = vld [vmem:[#allocation7 + $0x70] sm:$0xff]  }
 0x614   :  { %4127 = vmatprep.subr.bf16.mxu1 %v8743_v0  ;;  %4025 = vmatprep.subr.bf16.mxu0 %v8743_v0 }
 0x617   :  { %4128 = vmatpush1.bf16.msra.mxu1 %v8050_v51  ;;  %4026 = vmatpush1.bf16.msra.mxu0 %v8053_v11  ;;  %v8077_v51 = vld [vmem:[#allocation7 + $0x48] sm:$0xff]   ;;  %v8078_v11 = vld [vmem:[#allocation7 + $0x78] sm:$0xff]  }
 0x618   :  { %4129 = vmatprep.subr.bf16.mxu1 %v8743_v0  ;;  %4027 = vmatprep.subr.bf16.mxu0 %v8743_v0 }
 0x61b   :  { %4130 = vmatpush1.bf16.msra.mxu1 %v8052_v12  ;;  %4028 = vmatpush1.bf16.msra.mxu0 %v8055_v54  ;;  %v8079_v12 = vld [vmem:[#allocation7 + $0x50] sm:$0xff]   ;;  %v8080_v54 = vld [vmem:[#allocation7 + $0x80] sm:$0xff]  }
 0x61c   :  { %4131 = vmatprep.subr.bf16.mxu1 %v8743_v0  ;;  %4029 = vmatprep.subr.bf16.mxu0 %v8743_v0 }
 0x61f   :  { %4132 = vmatpush1.bf16.msra.mxu1 %v8054_v15  ;;  %4030 = vmatpush1.bf16.msra.mxu0 %v8057_v52  ;;  %v8081_v15 = vld [vmem:[#allocation7 + $0x58] sm:$0xff]  }
 0x620   :  { %4133 = vmatprep.subr.bf16.mxu1 %v8743_v0  ;;  %4031 = vmatprep.subr.bf16.mxu0 %v8743_v0 }
 0x623   :  { %4134 = vmatpush1.bf16.msra.mxu1 %v8056_v50  ;;  %4032 = vmatpush1.bf16.msra.mxu0 %v8059_v17  ;;  %v8082_v50 = vld [vmem:[#allocation7 + $0x88] sm:$0xff]  }
 0x624   :  { %4135 = vmatprep.subr.bf16.mxu1 %v8743_v0  ;;  %4033 = vmatprep.subr.bf16.mxu0 %v8743_v0 }
 0x627   :  { %4136 = vmatpush1.bf16.msra.mxu1 %v8058_v16  ;;  %4034 = vmatpush1.bf16.msra.mxu0 %v8060_v18 }
 0x628   :  { %7249 = vmatprep.subr.bf16.mxu1 %v8744_v41  ;;  %4225 = vmatprep.subr.bf16.mxu0 %v8743_v0 }
 0x6d5   :  { %v3624_v19 = vpop.f32.mrb[32].mxu0  ;;  %v3926_v20 = vpop.f32.mrb[40].mxu1 }
 0x6d6   :  { %v3933_v21 = vmax.f32 %v3624_v19, %v3926_v20  ;;  %v3626_v22 = vpop.f32.mrb[33].mxu0  ;;  %v3928_v23 = vpop.f32.mrb[41].mxu1 }
 0x6d7   :  { %v3934_v25 = vmax.f32 %v3626_v22, %v3928_v23  ;;  %v3628_v26 = vpop.f32.mrb[34].mxu0  ;;  %v3930_v27 = vpop.f32.mrb[42].mxu1 }
 0x6d8   :  { %v3935_v28 = vpack.c.bf16 %v3933_v21, %v3933_v21  ;;  %v3629_v29 = vpop.f32.mrb[35].mxu0  ;;  %v3931_v30 = vpop.f32.mrb[43].mxu1 }
 0x6d9   :  { %v3936_v31 = vpack.c.bf16 %v3934_v25, %v3934_v25  ;;  %v7065_v25 = vld [vmem:[%s11360_s17] ss:$0 sm:$0xff] }
 0x6da   :  { %v3940_v32 = vshll.u32 %v3935_v28, 16  ;;  %v3938_v39 = vshrl.u32 %v3935_v28, 16  ;;  %v4159_v4 = vrot.slane %v3935_v28, 1 }
 0x6db   :  { %v3947_v34 = vshll.u32 %v3936_v31, 16  ;;  %7053 = vmatprep.mubr.msk.bf16.mxu1 %vm1755_vm6, %v3936_v31  ;;  %v3945_v37 = vshrl.u32 %v3936_v31, 16  ;;  %v4160_v46 = vrot.slane %v3936_v31, 1 }
 0x6dc   :  { %4150 = vmatmul.mubr.bf16.vlgmr.msra.gmra.mrb[44].mxu1 %v3935_v28  ;;  %v3942_v36 = vrot.slane %v3940_v32, 1 }
 0x6dd   :  { %v3949_v38 = vrot.slane %v3947_v34, 1  ;;  %7261 = vmatprep.mubr.msk.bf16.mxu1 %vm8745_vm8, %v8744_v41  ;;  %7250 = vmatpush3.bf16.msra.mxu1 %v8071_v5  ;;  %v8097_v5 = vld [vmem:[#allocation8] sm:$0xff]  }
 0x6de   :  { %v3943_v43 = vor.u32 %v3942_v36, %v3938_v39  ;;  %7251 = vmatprep.subr.bf16.mxu1 %v8744_v41  ;;  %v8083_v36 = vld [vmem:[#allocation7] sm:$0xff]   ;;  %v8084_v39 = vld [vmem:[#allocation7 + $0x8] sm:$0xff]  }
 0x6df   :  { %v3950_v40 = vor.u32 %v3949_v38, %v3945_v37 }
 0x6e1   :  { %7042 = vmatprep.mubr.msk.bf16.mxu0 %vm1755_vm6, %v3950_v40  ;;  %7252 = vmatpush3.bf16.msra.mxu1 %v8073_v7  ;;  %v8085_v40 = vld [vmem:[#allocation7 + $0x10] sm:$0xff]   ;;  %v8099_v7 = vld [vmem:[#allocation8 + $0x10] sm:$0xff]  }
 0x6e2   :  { %4048 = vmatmul.mubr.bf16.vlgmr.msra.gmra.mrb[36].mxu0 %v3943_v43  ;;  %7253 = vmatprep.subr.bf16.mxu1 %v8744_v41  ;;  %v8087_v43 = vld [vmem:[#allocation7 + $0x20] sm:$0xff]  }
 0x6e3   :  { %4226 = vmatpush1.bf16.msra.mxu0 %v8061_v42  ;;  %7064 = vmatprep.mubr.msk.bf16.mxu0 %vm1755_vm6, %v4160_v46  ;;  %v8086_v42 = vld [vmem:[#allocation7 + $0x18] sm:$0xff]   ;;  %v8088_v46 = vld [vmem:[#allocation7 + $0x28] sm:$0xff]  }
 0x6e4   :  { %4227 = vmatprep.subr.bf16.mxu0 %v8743_v0 }
 0x6e5   :  { %7254 = vmatpush3.bf16.msra.mxu1 %v8075_v9 }
 0x6e6   :  { %7255 = vmatprep.subr.bf16.mxu1 %v8744_v41 }
 0x6e7   :  { %4228 = vmatpush1.bf16.msra.mxu0 %v8062_v47  ;;  %v8089_v47 = vld [vmem:[%s11356_s13] sm:$0xff]  }
 0x6e8   :  { %4229 = vmatprep.subr.bf16.mxu0 %v8743_v0 }
 0x6e9   :  { %7256 = vmatpush3.bf16.msra.mxu1 %v8077_v51 }
 0x6ea   :  { %7257 = vmatprep.subr.bf16.mxu1 %v8744_v41 }
 0x6eb   :  { %4230 = vmatpush1.bf16.msra.mxu0 %v8063_v48  ;;  %v8090_v48 = vld [vmem:[%s11356_s13 + $0x8] sm:$0xff]  }
 0x6ec   :  { %4231 = vmatprep.subr.bf16.mxu0 %v8743_v0 }
 0x6ed   :  { %7258 = vmatpush3.bf16.msra.mxu1 %v8079_v12 }
 0x6ee   :  { %7259 = vmatprep.subr.bf16.mxu1 %v8744_v41 }
 0x6ef   :  { %4232 = vmatpush1.bf16.msra.mxu0 %v8064_v49  ;;  %v8091_v49 = vld [vmem:[%s11356_s13 + $0x10] sm:$0xff]  }
 0x6f0   :  { %4233 = vmatprep.subr.bf16.mxu0 %v8743_v0 }
 0x6f1   :  { %7260 = vmatpush3.bf16.msra.mxu1 %v8081_v15 }
 0x6f2   :  { %7265 = vmatprep.subr.bf16.mxu1 %v8744_v41 }
 0x6f3   :  { %4234 = vmatpush1.bf16.msra.mxu0 %v8065_v53  ;;  %v8092_v53 = vld [vmem:[%s11356_s13 + $0x18] sm:$0xff]  }
 0x6f4   :  { %4235 = vmatprep.subr.bf16.mxu0 %v8743_v0 }
 0x6f7   :  { %4236 = vmatpush1.bf16.msra.mxu0 %v8066_v61  ;;  %v8093_v61 = vld [vmem:[%s11356_s13 + $0x20] sm:$0xff]  }
 0x6f8   :  { %4237 = vmatprep.subr.bf16.mxu0 %v8743_v0 }
 0x6fb   :  { %4238 = vmatpush1.bf16.msra.mxu0 %v8067_v55  ;;  %v8094_v55 = vld [vmem:[%s11356_s13 + $0x28] sm:$0xff]  }
 0x6fc   :  { %4239 = vmatprep.subr.bf16.mxu0 %v8743_v0 }
 0x6ff   :  { %4240 = vmatpush1.bf16.msra.mxu0 %v8068_v62  ;;  %v8095_v62 = vld [vmem:[%s11356_s13 + $0x30] sm:$0xff]  }
 0x700   :  { %4241 = vmatprep.subr.bf16.mxu0 %v8743_v0 }
 0x703   :  { %4242 = vmatpush1.bf16.msra.mxu0 %v8069_v63  ;;  %v8096_v63 = vld [vmem:[%s11356_s13 + $0x38] ss:$0 sps:$4 sm:$0xff]  }
 0x704   :  { %4243 = vmatprep.subr.bf16.mxu0 %v8743_v0 }
 0x707   :  { %4244 = vmatpush1.bf16.msra.mxu0 %v8070_v60  ;;  %v10168_v60 = vsel %vm4569_vm11, %v8096_v63, 0 }
 0x708   :  { %7281 = vmatprep.subr.bf16.mxu0 %v8744_v41 }
 0x70a   :  { %4258 = vmatmul.mubr.bf16.vlgmr.msra.gmra.mrb[40].mxu0 %v4159_v4  ;;  %v8103_v4 = vld [vmem:[%s11380_s26 + $0x44] ss:$16 sps:$4 sm:$0xff]  }
 0x70b   :  { %7293 = vmatprep.mubr.msk.bf16.mxu0 %vm8745_vm8, %v8744_v41  ;;  %7282 = vmatpush3.bf16.msra.mxu0 %v8072_v6  ;;  %v8098_v6 = vld [vmem:[#allocation8 + $0x8] sm:$0xff]  }
 0x70c   :  { %7283 = vmatprep.subr.bf16.mxu0 %v8744_v41 }
 0x70f   :  { %7284 = vmatpush3.bf16.msra.mxu0 %v8074_v8  ;;  %v8100_v8 = vld [vmem:[#allocation8 + $0x18] sm:$0xff]  }
 0x710   :  { %7285 = vmatprep.subr.bf16.mxu0 %v8744_v41 }
 0x713   :  { %7286 = vmatpush3.bf16.msra.mxu0 %v8076_v10 }
 0x714   :  { %7287 = vmatprep.subr.bf16.mxu0 %v8744_v41 }
 0x717   :  { %7288 = vmatpush3.bf16.msra.mxu0 %v8078_v11 }
 0x718   :  { %7289 = vmatprep.subr.bf16.mxu0 %v8744_v41 }
 0x71b   :  { %7290 = vmatpush3.bf16.msra.mxu0 %v8080_v54 }
 0x71c   :  { %7291 = vmatprep.subr.bf16.mxu0 %v8744_v41 }
 0x71f   :  { %7292 = vmatpush3.bf16.msra.mxu0 %v8082_v50 }
 0x720   :  { %7317 = vmatprep.subr.bf16.mxu0 %v8744_v41 }
 0x7af   :  { %v4151_v52 = vpop.f32.mrb[44].mxu1 }
 0x7b0   :  { %v4153_v16 = vpop.f32.mrb[45].mxu1 }
 0x7b1   :  { %v4154_v17 = vpop.f32.mrb[46].mxu1  ;;  %v7104_v16 = vld [vmem:[%s11381_s0 + $0x28] sm:$0xff] }
 0x7b2   :  { %v4155_v18 = vpop.f32.mrb[47].mxu1 }
 0x7b5   :  { %v4049_v19 = vpop.f32.mrb[36].mxu0 }
 0x7b6   :  { %v4152_v20 = vadd.f32 %v4151_v52, %v4049_v19  ;;  %v4051_v21 = vpop.f32.mrb[37].mxu0  ;;  %v7103_v52 = vld [vmem:[%s11381_s0 + $0x20] sm:$0xff] }
 0x7b7   :  { %v4052_v22 = vpop.f32.mrb[38].mxu0  ;;  %v10184_v18 = vpack.c.bf16 %v7104_v16, %v7103_v52  ;;  %v7105_v21 = vld [vmem:[%s11381_s0 + $0x30] sm:$0xff]  ;;  %v8115_v52 = vld [vmem:[%s11380_s26 + $0xc] ss:$16 sps:$4 sm:$0xff]   ;;  %v8116_v16 = vld [vmem:[%s11380_s26 + $0x8] ss:$16 sps:$4 sm:$0xff]  }
 0x7b8   :  { %v4053_v23 = vpop.f32.mrb[39].mxu0  ;;  %v7106_v22 = vld [vmem:[%s11381_s0 + $0x38] sm:$0xf] }
 0x7b9   :  { %v693_v23 = vld [vmem:[#allocation13] sm:$0x1] }
 0x7dd   :  { %v4259_v26 = vpop.f32.mrb[40].mxu0 }
 0x7de   :  { %v4265_v27 = vadd.f32 %v4259_v26, %v4152_v20  ;;  %v4261_v28 = vpop.f32.mrb[41].mxu0 }
 0x7df   :  { %v4262_v29 = vpop.f32.mrb[42].mxu0  ;;  %v10192_v28 = vpack.c.bf16 %v7106_v22, %v7105_v21 }
 0x7e0   :  { %v4272_v30 = vadd.f32 %v7065_v25, %v4265_v27  ;;  %v4263_v31 = vpop.f32.mrb[43].mxu0  ;;  %v4707_v29 = vshll.u32 %v10184_v18, 16 }
 0x7e2   :  { %v4273_v32 = vmax.f32 %v4272_v30, 0.0 }
 0x7e4   :  { %v4274_v34 = vpack.c.bf16 %v4273_v32, %v4273_v32  ;;  %v4705_v32 = vshrl.u32 %v10184_v18, 16 }
 0x7e6   :  { %v4276_v37 = vshrl.u32 %v4274_v34, 16  ;;  %v4436_v38 = vrot.slane %v4274_v34, 1 }
 0x7e8   :  { %7262 = vmatmul.mubr.msk.bf16.vlgmr.msra.gmra.mrb[48].mxu1 %vm3545_vm10, %v4276_v37  ;;  %7294 = vmatmul.mubr.msk.bf16.vlgmr.msra.gmra.mrb[44].mxu0 %vm3545_vm10, %v4436_v38  ;;  %v8104_v38 = vld [vmem:[%s11380_s26 + $0x40] ss:$16 sps:$4 sm:$0xff]  }
 0x7e9   :  { %7266 = vmatpush3.bf16.msra.mxu1 %v8083_v36  ;;  %7277 = vmatprep.mubr.msk.bf16.mxu1 %vm8745_vm8, %v8744_v41  ;;  %v4712_v36 = vshll.u32 %v10192_v28, 16 }
 0x7ea   :  { %7267 = vmatprep.subr.bf16.mxu1 %v8744_v41  ;;  %7329 = vmatprep.mubr.msk.bf16.mxu0 %vm8745_vm8, %v8744_v41 }
 0x7eb   :  { %7318 = vmatpush3.bf16.msra.mxu0 %v8097_v5 }
 0x7ec   :  { %7319 = vmatprep.subr.bf16.mxu0 %v8744_v41 }
 0x7ed   :  { %7268 = vmatpush3.bf16.msra.mxu1 %v8084_v39 }
 0x7ee   :  { %7269 = vmatprep.subr.bf16.mxu1 %v8744_v41 }
 0x7ef   :  { %7320 = vmatpush3.bf16.msra.mxu0 %v8098_v6  ;;  %v8112_v6 = vld [vmem:[%s11380_s26 + $0x4c] ss:$16 sps:$4 sm:$0xff]  }
 0x7f0   :  { %7321 = vmatprep.subr.bf16.mxu0 %v8744_v41 }
 0x7f1   :  { %7270 = vmatpush3.bf16.msra.mxu1 %v8085_v40  ;;  %v4714_v40 = vrot.slane %v4712_v36, 1 }
 0x7f2   :  { %7271 = vmatprep.subr.bf16.mxu1 %v8744_v41 }
 0x7f3   :  { %7322 = vmatpush3.bf16.msra.mxu0 %v8099_v7  ;;  %v694_v7 = vld [vmem:[#allocation14] sm:$0x1] }
 0x7f4   :  { %7323 = vmatprep.subr.bf16.mxu0 %v8744_v41 }
 0x7f5   :  { %7272 = vmatpush3.bf16.msra.mxu1 %v8086_v42  ;;  %v8105_v42 = vld [vmem:[%s11380_s26 + $0x64] ss:$16 sps:$4 sm:$0x3f]  }
 0x7f6   :  { %7273 = vmatprep.subr.bf16.mxu1 %v8744_v41 }
 0x7f7   :  { %7324 = vmatpush3.bf16.msra.mxu0 %v8100_v8 }
 0x7f8   :  { %7325 = vmatprep.subr.bf16.mxu0 %v8744_v41 }
 0x7f9   :  { %7274 = vmatpush3.bf16.msra.mxu1 %v8087_v43 }
 0x7fa   :  { %7275 = vmatprep.subr.bf16.mxu1 %v8744_v41 }
 0x7fd   :  { %7276 = vmatpush3.bf16.msra.mxu1 %v8088_v46  ;;  %v8106_v46 = vld [vmem:[%s11380_s26 + $0x4] ss:$16 sps:$4 sm:$0xff]  }
 0x7fe   :  { %7297 = vmatprep.subr.bf16.mxu1 %v8744_v41 }
 0x800   :  { %7278 = vmatmul.mubr.msk.bf16.vlgmr.msra.gmra.mrb[52].mxu1 %vm3545_vm10, %v4274_v34  ;;  %v4709_v34 = vrot.slane %v4707_v29, 1 }
 0x801   :  { %7313 = vmatprep.mubr.msk.bf16.mxu1 %vm8745_vm8, %v8744_v41  ;;  %7298 = vmatpush3.bf16.msra.mxu1 %v8089_v47  ;;  %v4716_v47 = vshrl.u32 %v10192_v28, 16 }
 0x802   :  { %7299 = vmatprep.subr.bf16.mxu1 %v8744_v41  ;;  %v4710_v39 = vor.u32 %v4709_v34, %v4705_v32 }
 0x804   :  { %v4715_v43 = vsel %vm702_vm1, %v4710_v39, %v4714_v40 }
 0x805   :  { %7300 = vmatpush3.bf16.msra.mxu1 %v8090_v48  ;;  %v8107_v48 = vld [vmem:[%s11380_s26] ss:$16 sps:$4 sm:$0xff]  }
 0x806   :  { %7301 = vmatprep.subr.bf16.mxu1 %v8744_v41 }
 0x809   :  { %7302 = vmatpush3.bf16.msra.mxu1 %v8091_v49  ;;  %v4718_v49 = vor.u32 %v4716_v47, %v4714_v40 }
 0x80a   :  { %7303 = vmatprep.subr.bf16.mxu1 %v8744_v41 }
 0x80d   :  { %7304 = vmatpush3.bf16.msra.mxu1 %v8092_v53  ;;  %v8109_v53 = vld [vmem:[%s11380_s26 + $0x84] ss:$16 sps:$4 sm:$0xff]  }
 0x80e   :  { %7305 = vmatprep.subr.bf16.mxu1 %v8744_v41 }
 0x811   :  { %7306 = vmatpush3.bf16.msra.mxu1 %v8093_v61  ;;  %v8110_v61 = vld [vmem:[%s11380_s26 + $0x80] ss:$16 sps:$4 sm:$0xff]  }
 0x812   :  { %7307 = vmatprep.subr.bf16.mxu1 %v8744_v41 }
 0x815   :  { %7308 = vmatpush3.bf16.msra.mxu1 %v8094_v55  ;;  %v4943_v55 = vrot.slane %v10184_v18, 1 }
 0x816   :  { %7309 = vmatprep.subr.bf16.mxu1 %v8744_v41 }
 0x819   :  { %7310 = vmatpush3.bf16.msra.mxu1 %v8095_v62  ;;  %v10243_v62 = vrot.slane %v10192_v28, 1 }
 0x81a   :  { %7311 = vmatprep.subr.bf16.mxu1 %v8744_v41 }
 0x81b   :  { %v10247_v63 = vsel %vm1040_vm3, %v4943_v55, %v10243_v62  ;;  %v8124_v55 = vld [vmem:[%s11383_s5] ss:$8 sps:$4 sm:$0xff]  }
 0x81d   :  { %7312 = vmatpush3.bf16.msra.mxu1 %v10168_v60 }
 0x81e   :  { %4725 = vmatprep.subr.bf16.mxu1 %v8103_v4  ;;  %v8102_v4 = vld [vmem:[#allocation8 + $0x28] ss:$0 sps:$4 sm:$0x33]  }
 0x81f   :  { %v10256_v5 = vsel %vm4652_vm13, %v8102_v4, 0  ;;  %v8128_v4 = vld [vmem:[%s11383_s5 + $0x20] ss:$8 sps:$4 sm:$0xff]  }
 0x8bb   :  { %v4351_v9 = vpop.f32.mrb[48].mxu1  ;;  %v4510_v10 = vpop.f32.mrb[44].mxu0 }
 0x8bc   :  { %v7263_v51 = vpop.f32.mrb[49].mxu1  ;;  %v7295_v11 = vpop.f32.mrb[45].mxu0 }
 0x8bd   :  { %v4354_v12 = vpop.f32.mrb[50].mxu1  ;;  %v4513_v54 = vpop.f32.mrb[46].mxu0 }
 0x8be   :  { %v7264_v15 = vpop.f32.mrb[51].mxu1  ;;  %v7296_v50 = vpop.f32.mrb[47].mxu0 }
 0x8bf   :  { %v8113_v15 = vld [vmem:[%s11380_s26 + $0x48] ss:$16 sps:$4 sm:$0xff]   ;;  %v8114_v50 = vld [vmem:[%s11380_s26 + $0x6c] ss:$16 sps:$4 sm:$0x3f]  }
 0x8d3   :  { %v4429_v17 = vpop.f32.mrb[52].mxu1 }
 0x8d4   :  { %v4430_v19 = vadd.f32 %v4429_v17, %v4351_v9  ;;  %v7279_v20 = vpop.f32.mrb[53].mxu1  ;;  %v8117_v17 = vld [vmem:[%s11380_s26 + $0x2c] ss:$16 sps:$4 sm:$0x3f]  }
 0x8d5   :  { %v4432_v25 = vpop.f32.mrb[54].mxu1 }
 0x8d6   :  { %v4516_v26 = vadd.f32 %v4510_v10, %v4430_v19  ;;  %v7280_v27 = vpop.f32.mrb[55].mxu1  ;;  %v8119_v19 = vld [vmem:[%s11380_s26 + $0x88] ss:$16 sps:$4 sm:$0xff]  }
 0x8d8   :  { %v4517_v30 = vadd.f32 %v4516_v26, %v693_v23 }
 0x8da   :  { %v4518_v31 = vmax.f32 %v4517_v30, 0.0 }
 0x8dc   :  { %v4519_v37 = vpack.c.bf16 %v4518_v31, %v4518_v31 }
 0x8de   :  { %7314 = vmatmul.mubr.msk.bf16.vlgmr.msra.gmra.mrb[56].mxu1 %vm4565_vm12, %v4519_v37 }
 0x8df   :  { %4726 = vmatpush1.bf16.msra.mxu1 %v8104_v38  ;;  %4757 = vmatprep.mubr.bf16.mxu1 %v8743_v0 }
 0x8e0   :  { %7107 = vmatprep.subr.msk.bf16.mxu1 %vm761_vm0, %v8105_v42 }
 0x8e3   :  { %4728 = vmatpush1.bf16.msra.mxu1 %v9016_v13  ;;  %v8108_v13 = vld [vmem:[%s11380_s26 + $0x24] ss:$16 sps:$4 sm:$0x3f]  }
 0x8e4   :  { %4835 = vmatprep.subr.bf16.mxu1 %v8106_v46 }
 0x8e6   :  { %7108 = vmatmul.mubr.msk.bf16.vlgmr.msra.gmra.mrb[60].mxu1 %vm754_vm2, %v4715_v43 }
 0x8e7   :  { %4767 = vmatprep.mubr.bf16.mxu1 %v8743_v0  ;;  %4836 = vmatpush1.bf16.msra.mxu1 %v8107_v48 }
 0x8e8   :  { %7113 = vmatprep.subr.msk.bf16.mxu1 %vm761_vm0, %v8108_v13 }
 0x8eb   :  { %4838 = vmatpush1.bf16.msra.mxu1 %v9061_v33  ;;  %v8111_v33 = vld [vmem:[%s11380_s26 + $0xa4] ss:$16 sps:$4 sm:$0x3f]  }
 0x8ec   :  { %4952 = vmatprep.subr.bf16.mxu1 %v8109_v53 }
 0x8ee   :  { %7109 = vmatmul.mubr.msk.bf16.gmra.mrb[64].mxu1 %vm754_vm2, %v4718_v49 }
 0x8ef   :  { %4867 = vmatprep.mubr.bf16.mxu1 %v8743_v0 }
 0x8f6   :  { %7114 = vmatmul.mubr.msk.bf16.vlgmr.msra.gmra.mrb[60].mxu1 %vm754_vm2, %v10184_v18 }
 0x8f7   :  { %4877 = vmatprep.mubr.bf16.mxu1 %v8743_v0  ;;  %4953 = vmatpush1.bf16.msra.mxu1 %v8110_v61 }
 0x8f8   :  { %7119 = vmatprep.subr.msk.bf16.mxu1 %vm761_vm0, %v8111_v33  ;;  %v10335_v33 = vld [vmem:[%s11384_s18] sm:$0x7f]  }
 0x8fb   :  { %4955 = vmatpush1.bf16.msra.mxu1 %v9105_v44  ;;  %v8101_v44 = vld [vmem:[#allocation8 + $0x20] sm:$0xff]  }
 0x8fc   :  { %7326 = vmatpush3.bf16.msra.mxu0 %v8101_v44  ;;  %v8127_v44 = vld [vmem:[%s11383_s5 + $0x24] ss:$8 sps:$4 sm:$0xff]  }
 0x8fd   :  { %7327 = vmatprep.subr.bf16.mxu0 %v8744_v41 }
 0x8fe   :  { %7115 = vmatmul.mubr.msk.bf16.gmra.mrb[64].mxu1 %vm754_vm2, %v10192_v28 }
 0x8ff   :  { %4984 = vmatprep.mubr.bf16.mxu1 %v8743_v0 }
 0x900   :  { %7328 = vmatpush3.bf16.msra.mxu0 %v10256_v5 }
 0x901   :  { %4778 = vmatprep.subr.bf16.mxu0 %v8112_v6  ;;  %v8129_v6 = vld [vmem:[%s11383_s5 + $0x34] ss:$8 sps:$4 sm:$0xff]  }
 0x906   :  { %7120 = vmatmul.mubr.msk.bf16.vlgmr.msra.gmra.mrb[60].mxu1 %vm754_vm2, %v10247_v63 }
 0x907   :  { %4994 = vmatprep.mubr.bf16.mxu1 %v8743_v0 }
 0x90e   :  { %7121 = vmatmul.mubr.msk.bf16.gmra.mrb[64].mxu1 %vm754_vm2, %v10243_v62 }
 0x90f   :  { %5158 = vmatprep.mubr.bf16.mxu1 %v8743_v0 }
 0x9b1   :  { %v4607_v8 = vpop.f32.mrb[56].mxu1 }
 0x9b2   :  { %v4608_v9 = vadd.f32 %v4607_v8, %v694_v7  ;;  %v7315_v10 = vpop.f32.mrb[57].mxu1  ;;  %v8130_v7 = vld [vmem:[%s11383_s5 + $0x30] ss:$8 sps:$4 sm:$0xff]   ;;  %v8131_v8 = vld [vmem:[%s11383_s5 + $0x44] ss:$8 sps:$4 sm:$0xff]  }
 0x9b3   :  { %v4610_v51 = vpop.f32.mrb[58].mxu1  ;;  %v8133_v10 = vld [vmem:[%s11383_s5 + $0x54] ss:$8 sps:$4 sm:$0xff]  }
 0x9b4   :  { %v4613_v11 = vmax.f32 %v4608_v9, 0.0  ;;  %v7316_v12 = vpop.f32.mrb[59].mxu1  ;;  %v8132_v9 = vld [vmem:[%s11383_s5 + $0x40] ss:$8 sps:$4 sm:$0xff]   ;;  %v8134_v51 = vld [vmem:[%s11383_s5 + $0x50] ss:$8 sps:$4 sm:$0xff]  }
 0x9b5   :  { %v8136_v12 = vld [vmem:[%s11383_s5 + $0x60] ss:$8 sps:$4 sm:$0xff]  }
 0x9b6   :  { %v4614_v54 = vpack.c.bf16 %v4613_v11, %v4613_v11  ;;  %v8135_v11 = vld [vmem:[%s11383_s5 + $0x64] ss:$8 sps:$4 sm:$0xff]  }
 0x9b8   :  { %7330 = vmatmul.mubr.msk.bf16.vlgmr.msra.gmra.mrb[48].mxu0 %vm4648_vm14, %v4614_v54  ;;  %v8137_v54 = vld [vmem:[%s11383_s5 + $0x74] ss:$8 sps:$4 sm:$0xff]  }
 0x9b9   :  { %4779 = vmatpush1.bf16.msra.mxu0 %v8113_v15  ;;  %4810 = vmatprep.mubr.bf16.mxu0 %v8743_v0  ;;  %v8138_v15 = vld [vmem:[%s11383_s5 + $0x70] ss:$8 sps:$4 sm:$0xff]  }
 0x9ba   :  { %7110 = vmatprep.subr.msk.bf16.mxu0 %vm761_vm0, %v8114_v50  ;;  %v8139_v50 = vld [vmem:[%s11383_s5 + $0x84] ss:$8 sps:$4 sm:$0xff]  }
 0x9bd   :  { %4781 = vmatpush1.bf16.msra.mxu0 %v9019_v14  ;;  %v8118_v14 = vld [vmem:[%s11380_s26 + $0x8c] ss:$16 sps:$4 sm:$0xff]  }
 0x9be   :  { %4888 = vmatprep.subr.bf16.mxu0 %v8115_v52  ;;  %v8140_v52 = vld [vmem:[%s11383_s5 + $0x80] ss:$8 sps:$4 sm:$0xff]  }
 0x9c0   :  { %7111 = vmatmul.mubr.msk.bf16.vlgmr.msra.gmra.mrb[52].mxu0 %vm754_vm2, %v4715_v43 }
 0x9c1   :  { %4889 = vmatpush1.bf16.msra.mxu0 %v8116_v16  ;;  %4820 = vmatprep.mubr.bf16.mxu0 %v8743_v0  ;;  %v8141_v16 = vld [vmem:[%s11383_s5 + $0x94] ss:$8 sps:$4 sm:$0xff]  }
 0x9c2   :  { %7116 = vmatprep.subr.msk.bf16.mxu0 %vm761_vm0, %v8117_v17  ;;  %v8142_v17 = vld [vmem:[%s11383_s5 + $0x90] ss:$8 sps:$4 sm:$0xff]  }
 0x9c5   :  { %4891 = vmatpush1.bf16.msra.mxu0 %v9069_v35  ;;  %v8120_v35 = vld [vmem:[%s11380_s26 + $0xac] ss:$16 sps:$4 sm:$0x3f]  }
 0x9c6   :  { %5005 = vmatprep.subr.bf16.mxu0 %v8118_v14  ;;  %v8143_v14 = vld [vmem:[%s11383_s5 + $0xa4] ss:$8 sps:$4 sm:$0xff]  }
 0x9c8   :  { %7112 = vmatmul.mubr.msk.bf16.gmra.mrb[56].mxu0 %vm754_vm2, %v4718_v49 }
 0x9c9   :  { %4920 = vmatprep.mubr.bf16.mxu0 %v8743_v0 }
 0x9d0   :  { %7117 = vmatmul.mubr.msk.bf16.vlgmr.msra.gmra.mrb[52].mxu0 %vm754_vm2, %v10184_v18 }
 0x9d1   :  { %5006 = vmatpush1.bf16.msra.mxu0 %v8119_v19  ;;  %4930 = vmatprep.mubr.bf16.mxu0 %v8743_v0  ;;  %v8144_v19 = vld [vmem:[%s11383_s5 + $0xa0] ss:$8 sps:$4 sm:$0xff]  }
 0x9d2   :  { %7122 = vmatprep.subr.msk.bf16.mxu0 %vm761_vm0, %v8120_v35  ;;  %v8145_v35 = vld [vmem:[%s11383_s5 + $0xb4] ss:$8 sps:$4 sm:$0xff]  }
 0x9d5   :  { %5008 = vmatpush1.bf16.msra.mxu0 %v9110_v45 }
 0x9d8   :  { %7118 = vmatmul.mubr.msk.bf16.gmra.mrb[56].mxu0 %vm754_vm2, %v10192_v28 }
 0x9d9   :  { %5037 = vmatprep.mubr.bf16.mxu0 %v8743_v0  ;;  %v4986_v18 = vpop.f32.mrb[60].mxu1 }
 0x9da   :  { %v5074_v20 = vadd.f32 %v4986_v18, %v9139_v56  ;;  %v4988_v21 = vpop.f32.mrb[61].mxu1  ;;  %v8146_v18 = vld [vmem:[%s11383_s5 + $0xb0] ss:$8 sps:$4 sm:$0xff]  }
 0x9db   :  { %v5075_v22 = vadd.f32 %v4988_v21, %v9147_v58  ;;  %v4990_v23 = vpop.f32.mrb[62].mxu1  ;;  %v8148_v21 = vld [vmem:[%s11383_s5 + $0xc0] ss:$8 sps:$4 sm:$0xff]  }
 0x9dc   :  { %v5090_v25 = vmax.f32 %v5074_v20, 0.0  ;;  %v5078_v26 = vadd.f32 %v4990_v23, %v9139_v56  ;;  %v4992_v27 = vpop.f32.mrb[63].mxu1  ;;  %v8147_v20 = vld [vmem:[%s11383_s5 + $0xc4] ss:$8 sps:$4 sm:$0xff]   ;;  %v8150_v23 = vld [vmem:[%s11383_s5 + $0xd0] ss:$8 sps:$4 sm:$0xff]  }
 0x9dd   :  { %v5091_v29 = vmax.f32 %v5075_v22, 0.0  ;;  %v5079_v30 = vadd.f32 %v4992_v27, %v9147_v58  ;;  %v8149_v22 = vld [vmem:[%s11383_s5 + $0xd4] ss:$8 sps:$4 sm:$0xff]  }
 0x9de   :  { %v5094_v45 = vmax.f32 %v5078_v26, 0.0  ;;  %v8152_v26 = vld [vmem:[%s11383_s5 + $0xe0] ss:$8 sps:$4 sm:$0xff]   ;;  %v8153_v27 = vld [vmem:[%s11383_s5 + $0xf4] ss:$8 sps:$4 sm:$0xff]  }
 0x9df   :  { %v5095_v31 = vmax.f32 %v5079_v30, 0.0  ;;  %v8155_v30 = vld [vmem:[%s11383_s5 + $0x104] ss:$8 sps:$4 sm:$0xff]  }
 0x9e0   :  { %7123 = vmatmul.mubr.msk.bf16.vlgmr.msra.gmra.mrb[52].mxu0 %vm754_vm2, %v10247_v63  ;;  %v5106_v28 = vpack.c.bf16 %v5094_v45, %v5090_v25  ;;  %v8126_v63 = vld [vmem:[%s11383_s5 + $0x10] ss:$8 sps:$4 sm:$0xff]   ;;  %v8151_v25 = vld [vmem:[%s11383_s5 + $0xe4] ss:$8 sps:$4 sm:$0xff]  }
 0x9e1   :  { %5047 = vmatprep.mubr.bf16.mxu0 %v8743_v0  ;;  %v5107_v32 = vpack.c.bf16 %v5095_v31, %v5091_v29  ;;  %v4996_v34 = vpop.f32.mrb[64].mxu1  ;;  %v8154_v29 = vld [vmem:[%s11383_s5 + $0xf0] ss:$8 sps:$4 sm:$0xff]  }
 0x9e2   :  { %v5082_v36 = vadd.f32 %v4996_v34, %v9139_v56  ;;  %v4998_v37 = vpop.f32.mrb[65].mxu1  ;;  %v695_v45 = vld [vmem:[#allocation16] sm:$0x1] }
 0x9e3   :  { %v5083_v38 = vadd.f32 %v4998_v37, %v9147_v58  ;;  %v5000_v39 = vpop.f32.mrb[66].mxu1  ;;  %5126 = vmatprep.subr.bf16.mxu1 %v5107_v32 }
 0x9e4   :  { %v5098_v40 = vmax.f32 %v5082_v36, 0.0  ;;  %v5086_v42 = vadd.f32 %v5000_v39, %v9139_v56  ;;  %v5002_v43 = vpop.f32.mrb[67].mxu1  ;;  %5127 = vmatpush1.bf16.msra.mxu1 %v5106_v28  ;;  %v10323_v56 = vld [vmem:[%s11382_s14] sm:$0x7f]  }
 0x9e5   :  { %v5099_v46 = vmax.f32 %v5083_v38, 0.0  ;;  %v5087_v47 = vadd.f32 %v5002_v43, %v9147_v58  ;;  %v8122_v58 = vld [vmem:[%s11383_s5 + $0x4] ss:$8 sps:$4 sm:$0xff]  }
 0x9e6   :  { %v5102_v48 = vmax.f32 %v5086_v42, 0.0 }
 0x9e7   :  { %v5103_v13 = vmax.f32 %v5087_v47, 0.0 }
 0x9e8   :  { %7124 = vmatmul.mubr.msk.bf16.gmra.mrb[56].mxu0 %vm754_vm2, %v10243_v62  ;;  %v5110_v49 = vpack.c.bf16 %v5102_v48, %v5098_v40  ;;  %v8125_v62 = vld [vmem:[%s11383_s5 + $0x14] ss:$8 sps:$4 sm:$0xff]  }
 0x9e9   :  { %v5111_v53 = vpack.c.bf16 %v5103_v13, %v5099_v46  ;;  %5201 = vmatprep.mubr.bf16.mxu0 %v8743_v0 }
 0x9ea   :  { %v5115_v61 = vsel %vm1290_vm4, %v5110_v49, 0 }
 0x9eb   :  { %7125 = vmatprep.subr.msk.bf16.mxu1 %vm1290_vm4, %v5111_v53 }
 0x9ec   :  { %5129 = vmatpush1.bf16.msra.mxu1 %v5115_v61 }
 0x9ed   :  { %5212 = vmatprep.subr.bf16.mxu1 %v5107_v32 }
 0x9ef   :  { %7126 = vmatmul.mubr.msk.bf16.vlgmr.msra.gmra.mrb[68].mxu1 %vm1286_vm5, %v10323_v56 }
 0x9f0   :  { %5213 = vmatpush1.bf16.msra.mxu1 %v5106_v28  ;;  %5244 = vmatprep.mubr.bf16.mxu1 %v8743_v0 }
 0x9f1   :  { %7129 = vmatprep.subr.msk.bf16.mxu1 %vm1290_vm4, %v5111_v53 }
 0x9f4   :  { %5215 = vmatpush1.bf16.msra.mxu1 %v5115_v61 }
 0x9f5   :  { %5313 = vmatprep.subr.bf16.mxu1 %v8122_v58 }
 0x9f7   :  { %7130 = vmatmul.mubr.msk.bf16.vlgmr.msra.gmra.mrb[72].mxu1 %vm1286_vm5, %v10335_v33 }
 0x9f8   :  { %5314 = vmatpush1.bf16.msra.mxu1 %v8124_v55 }
 0x9f9   :  { %5315 = vmatprep.subr.bf16.mxu1 %v8125_v62 }
 0x9fc   :  { %5316 = vmatpush1.bf16.msra.mxu1 %v8126_v63 }
 0x9fd   :  { %5317 = vmatprep.subr.bf16.mxu1 %v8127_v44 }
 0xa00   :  { %5318 = vmatpush1.bf16.msra.mxu1 %v8128_v4 }
 0xa01   :  { %5319 = vmatprep.subr.bf16.mxu1 %v8129_v6 }
 0xa04   :  { %5320 = vmatpush1.bf16.msra.mxu1 %v8130_v7 }
 0xa05   :  { %5321 = vmatprep.subr.bf16.mxu1 %v8131_v8 }
 0xa08   :  { %5322 = vmatpush1.bf16.msra.mxu1 %v8132_v9 }
 0xa09   :  { %5323 = vmatprep.subr.bf16.mxu1 %v8133_v10 }
 0xa0c   :  { %5324 = vmatpush1.bf16.msra.mxu1 %v8134_v51 }
 0xa0d   :  { %5325 = vmatprep.subr.bf16.mxu1 %v8135_v11 }
 0xa10   :  { %5326 = vmatpush1.bf16.msra.mxu1 %v8136_v12 }
 0xa11   :  { %5327 = vmatprep.subr.bf16.mxu1 %v8137_v54 }
 0xa14   :  { %5328 = vmatpush1.bf16.msra.mxu1 %v8138_v15 }
 0xa15   :  { %5329 = vmatprep.subr.bf16.mxu1 %v8139_v50 }
 0xa18   :  { %5330 = vmatpush1.bf16.msra.mxu1 %v8140_v52 }
 0xa19   :  { %5331 = vmatprep.subr.bf16.mxu1 %v8141_v16 }
 0xa1c   :  { %5332 = vmatpush1.bf16.msra.mxu1 %v8142_v17 }
 0xa1d   :  { %5333 = vmatprep.subr.bf16.mxu1 %v8143_v14 }
 0xa20   :  { %5334 = vmatpush1.bf16.msra.mxu1 %v8144_v19 }
 0xa21   :  { %5335 = vmatprep.subr.bf16.mxu1 %v8145_v35 }
 0xa24   :  { %5336 = vmatpush1.bf16.msra.mxu1 %v8146_v18 }
 0xa25   :  { %5337 = vmatprep.subr.bf16.mxu1 %v8147_v20 }
 0xa28   :  { %5338 = vmatpush1.bf16.msra.mxu1 %v8148_v21 }
 0xa29   :  { %5339 = vmatprep.subr.bf16.mxu1 %v8149_v22  ;;  %v8156_v22 = vld [vmem:[#allocation2 + $0x4] ss:$8 sps:$4 sm:$0xff]  }
 0xa2c   :  { %5340 = vmatpush1.bf16.msra.mxu1 %v8150_v23 }
 0xa2d   :  { %5341 = vmatprep.subr.bf16.mxu1 %v8151_v25 }
 0xa30   :  { %5342 = vmatpush1.bf16.msra.mxu1 %v8152_v26  ;;  %v8158_v26 = vld [vmem:[#allocation2 + $0x14] ss:$8 sps:$4 sm:$0xff]  }
 0xa31   :  { %5343 = vmatprep.subr.bf16.mxu1 %v8153_v27  ;;  %v8159_v27 = vld [vmem:[%s11383_s5 + $0x100] ss:$8 sps:$4 sm:$0xff]  }
 0xa34   :  { %5344 = vmatpush1.bf16.msra.mxu1 %v8154_v29  ;;  %v8160_v29 = vld [vmem:[#allocation2 + $0x10] ss:$8 sps:$4 sm:$0xff]  }
 0xa35   :  { %5356 = vmatprep.subr.bf16.mxu1 %v8155_v30  ;;  %v8161_v30 = vld [vmem:[%s11383_s5 + $0x114] ss:$8 sps:$4 sm:$0xff]  }
 0xa8b   :  { %v4690_v31 = vpop.f32.mrb[48].mxu0 }
 0xa8c   :  { %v4691_v28 = vadd.f32 %v4690_v31, %v695_v45  ;;  %v7331_v32 = vpop.f32.mrb[49].mxu0  ;;  %v8163_v45 = vld [vmem:[%s11383_s5 + $0x110] ss:$8 sps:$4 sm:$0xff]   ;;  %v8164_v31 = vld [vmem:[#allocation2 + $0x20] ss:$8 sps:$4 sm:$0xff]  }
 0xa8d   :  { %v4693_v34 = vpop.f32.mrb[50].mxu0  ;;  %v8166_v32 = vld [vmem:[#allocation2 + $0x34] ss:$8 sps:$4 sm:$0xff]  }
 0xa8e   :  { %4696 = vst [vmem:[#allocation17] sm:$0x1] %v4691_v28  ;;  %v7332_v36 = vpop.f32.mrb[51].mxu0  ;;  %v8165_v28 = vld [vmem:[%s11383_s5 + $0x124] ss:$8 sps:$4 sm:$0xff]  }
 0xa8f   :  { %v8167_v34 = vld [vmem:[%s11383_s5 + $0x120] ss:$8 sps:$4 sm:$0xff]   ;;  %v8168_v36 = vld [vmem:[#allocation2 + $0x30] ss:$8 sps:$4 sm:$0xff]  }
 0xab3   :  { %v5039_v37 = vpop.f32.mrb[52].mxu0 }
 0xab4   :  { %v5076_v38 = vadd.f32 %v5039_v37, %v9143_v57  ;;  %v5041_v39 = vpop.f32.mrb[53].mxu0  ;;  %v8169_v37 = vld [vmem:[%s11383_s5 + $0x134] ss:$8 sps:$4 sm:$0xff]  }
 0xab5   :  { %v5077_v40 = vadd.f32 %v5041_v39, %v9149_v59  ;;  %v5043_v42 = vpop.f32.mrb[54].mxu0  ;;  %v8171_v39 = vld [vmem:[%s11383_s5 + $0x130] ss:$8 sps:$4 sm:$0xff]  }
 0xab6   :  { %v5080_v43 = vadd.f32 %v5043_v42, %v9143_v57  ;;  %v5045_v46 = vpop.f32.mrb[55].mxu0  ;;  %v5092_v48 = vmax.f32 %v5076_v38, 0.0  ;;  %v8170_v38 = vld [vmem:[#allocation2 + $0x44] ss:$8 sps:$4 sm:$0xff]  }
 0xab7   :  { %v5081_v47 = vadd.f32 %v5045_v46, %v9149_v59  ;;  %v5093_v49 = vmax.f32 %v5077_v40, 0.0  ;;  %v8172_v40 = vld [vmem:[#allocation2 + $0x40] ss:$8 sps:$4 sm:$0xff]   ;;  %v8173_v42 = vld [vmem:[%s11383_s5 + $0x144] ss:$8 sps:$4 sm:$0xff]  }
 0xab8   :  { %v5096_v13 = vmax.f32 %v5080_v43, 0.0  ;;  %v8174_v43 = vld [vmem:[#allocation2 + $0x54] ss:$8 sps:$4 sm:$0xff]   ;;  %v8175_v46 = vld [vmem:[%s11383_s5 + $0x140] ss:$8 sps:$4 sm:$0xff]  }
 0xab9   :  { %v5097_v53 = vmax.f32 %v5081_v47, 0.0  ;;  %v8176_v47 = vld [vmem:[#allocation2 + $0x50] ss:$8 sps:$4 sm:$0xff]  }
 0xaba   :  { %v5108_v61 = vpack.c.bf16 %v5096_v13, %v5092_v48  ;;  %v8177_v48 = vld [vmem:[%s11383_s5 + $0x154] ss:$8 sps:$4 sm:$0xff]   ;;  %v8178_v13 = vld [vmem:[#allocation2 + $0x64] ss:$8 sps:$4 sm:$0xff]  }
 0xabb   :  { %v5109_v58 = vpack.c.bf16 %v5097_v53, %v5093_v49  ;;  %v5049_v55 = vpop.f32.mrb[56].mxu0  ;;  %v8179_v49 = vld [vmem:[%s11383_s5 + $0x150] ss:$8 sps:$4 sm:$0xff]   ;;  %v8180_v53 = vld [vmem:[#allocation2 + $0x60] ss:$8 sps:$4 sm:$0xff]  }
 0xabc   :  { %v5084_v62 = vadd.f32 %v5049_v55, %v9143_v57  ;;  %v5051_v63 = vpop.f32.mrb[57].mxu0  ;;  %v8183_v55 = vld [vmem:[%s11383_s5 + $0x160] ss:$8 sps:$4 sm:$0xff]  }
 0xabd   :  { %v5085_v44 = vadd.f32 %v5051_v63, %v9149_v59  ;;  %v5053_v4 = vpop.f32.mrb[58].mxu0  ;;  %5169 = vmatprep.subr.bf16.mxu0 %v5109_v58  ;;  %v8185_v63 = vld [vmem:[%s11383_s5 + $0x174] ss:$8 sps:$4 sm:$0xff]  }
 0xabe   :  { %v5088_v6 = vadd.f32 %v5053_v4, %v9143_v57  ;;  %v5055_v7 = vpop.f32.mrb[59].mxu0  ;;  %5170 = vmatpush1.bf16.msra.mxu0 %v5108_v61  ;;  %v5100_v9 = vmax.f32 %v5084_v62, 0.0  ;;  %v8184_v62 = vld [vmem:[#allocation2 + $0x70] ss:$8 sps:$4 sm:$0xff]  }
 0xabf   :  { %v5089_v8 = vadd.f32 %v5055_v7, %v9149_v59  ;;  %v5101_v51 = vmax.f32 %v5085_v44, 0.0  ;;  %v8186_v44 = vld [vmem:[#allocation2 + $0x84] ss:$8 sps:$4 sm:$0xff]   ;;  %v8187_v4 = vld [vmem:[%s11383_s5 + $0x170] ss:$8 sps:$4 sm:$0xff]  }
 0xac0   :  { %v5104_v10 = vmax.f32 %v5088_v6, 0.0  ;;  %v8188_v6 = vld [vmem:[#allocation2 + $0x80] ss:$8 sps:$4 sm:$0xff]   ;;  %v8189_v7 = vld [vmem:[%s11383_s5 + $0x184] ss:$8 sps:$4 sm:$0xff]  }
 0xac1   :  { %v5105_v11 = vmax.f32 %v5089_v8, 0.0  ;;  %v8190_v8 = vld [vmem:[#allocation2 + $0x94] ss:$8 sps:$4 sm:$0xff]  }
 0xac2   :  { %v5112_v12 = vpack.c.bf16 %v5104_v10, %v5100_v9  ;;  %v5160_v54 = vpop.f32.mrb[68].mxu1  ;;  %v8191_v9 = vld [vmem:[%s11383_s5 + $0x180] ss:$8 sps:$4 sm:$0xff]   ;;  %v8192_v10 = vld [vmem:[#allocation2 + $0x90] ss:$8 sps:$4 sm:$0xff]  }
 0xac3   :  { %v5113_v15 = vpack.c.bf16 %v5105_v11, %v5101_v51  ;;  %v5162_v50 = vpop.f32.mrb[69].mxu1  ;;  %v8193_v51 = vld [vmem:[%s11383_s5 + $0x194] ss:$8 sps:$4 sm:$0xff]   ;;  %v8194_v11 = vld [vmem:[#allocation2 + $0xa4] ss:$8 sps:$4 sm:$0xff]  }
 0xac4   :  { %v5121_v52 = vsel %vm1290_vm4, %v5112_v12, 0  ;;  %v5164_v16 = vpop.f32.mrb[70].mxu1  ;;  %v8195_v12 = vld [vmem:[%s11383_s5 + $0x190] ss:$8 sps:$4 sm:$0xff]  }
 0xac5   :  { %7127 = vmatprep.subr.msk.bf16.mxu0 %vm1290_vm4, %v5113_v15  ;;  %v5166_v17 = vpop.f32.mrb[71].mxu1 }
 0xac6   :  { %5172 = vmatpush1.bf16.msra.mxu0 %v5121_v52 }
 0xac7   :  { %5255 = vmatprep.subr.bf16.mxu0 %v5109_v58  ;;  %v8182_v58 = vld [vmem:[#allocation2 + $0x74] ss:$8 sps:$4 sm:$0xff]  }
 0xac9   :  { %7128 = vmatmul.mubr.msk.bf16.vlgmr.msra.gmra.mrb[60].mxu0 %vm1286_vm5, %v10323_v56  ;;  %v8157_v56 = vld [vmem:[#allocation2] ss:$8 sps:$4 sm:$0xff]  }
 0xaca   :  { %5256 = vmatpush1.bf16.msra.mxu0 %v5108_v61  ;;  %5287 = vmatprep.mubr.bf16.mxu0 %v8743_v0  ;;  %v5246_v57 = vpop.f32.mrb[72].mxu1  ;;  %v8181_v61 = vld [vmem:[%s11383_s5 + $0x164] ss:$8 sps:$4 sm:$0xff]  }
 0xacb   :  { %7131 = vmatprep.subr.msk.bf16.mxu0 %vm1290_vm4, %v5113_v15  ;;  %v5298_v59 = vmax.f32 %v5160_v54, %v5246_v57  ;;  %v5248_v14 = vpop.f32.mrb[73].mxu1  ;;  %v8196_v54 = vld [vmem:[#allocation2 + $0xa0] ss:$8 sps:$4 sm:$0xff]   ;;  %v8202_v57 = vld [vmem:[#allocation2 + $0xd4] ss:$8 sps:$4 sm:$0xff]  }
 0xacc   :  { %v5299_v19 = vmax.f32 %v5162_v50, %v5248_v14  ;;  %v5250_v35 = vpop.f32.mrb[74].mxu1  ;;  %v8197_v15 = vld [vmem:[%s11349_s6 + $0x13c] ss:$12 sps:$4 sm:$0xff]   ;;  %v8204_v14 = vld [vmem:[#allocation2 + $0xe4] ss:$8 sps:$4 sm:$0xff]  }
 0xacd   :  { %v5302_v18 = vmax.f32 %v5164_v16, %v5250_v35  ;;  %v5252_v20 = vpop.f32.mrb[75].mxu1  ;;  %v8198_v50 = vld [vmem:[#allocation2 + $0xb4] ss:$8 sps:$4 sm:$0xff]   ;;  %v8200_v16 = vld [vmem:[#allocation2 + $0xc4] ss:$8 sps:$4 sm:$0xff]  }
 0xace   :  { %5258 = vmatpush1.bf16.msra.mxu0 %v5121_v52  ;;  %v5303_v21 = vmax.f32 %v5166_v17, %v5252_v20  ;;  %v8199_v52 = vld [vmem:[#allocation2 + $0xb0] ss:$8 sps:$4 sm:$0xff]   ;;  %v8201_v17 = vld [vmem:[#allocation2 + $0xc0] ss:$8 sps:$4 sm:$0xff]   ;;  %v8206_v35 = vld [vmem:[#allocation2 + $0xf4] ss:$8 sps:$4 sm:$0xff]  }
 0xacf   :  { %5399 = vmatprep.subr.bf16.mxu0 %v8156_v22  ;;  %v10449_v23 = vpack.c.bf16 %v5302_v18, %v5298_v59  ;;  %v8203_v59 = vld [vmem:[#allocation2 + $0xd0] ss:$8 sps:$4 sm:$0xff]   ;;  %v8208_v20 = vld [vmem:[#allocation2 + $0x104] ss:$8 sps:$4 sm:$0xff]   ;;  %v8210_v22 = vld [vmem:[#allocation2 + $0x114] ss:$8 sps:$4 sm:$0xff]  }
 0xad0   :  { %v5307_v25 = vpack.c.bf16 %v5303_v21, %v5299_v19  ;;  %v8205_v19 = vld [vmem:[#allocation2 + $0xe0] ss:$8 sps:$4 sm:$0xff]   ;;  %v8207_v18 = vld [vmem:[#allocation2 + $0xf0] ss:$8 sps:$4 sm:$0xff]  }
 0xad1   :  { %7132 = vmatmul.mubr.msk.bf16.vlgmr.msra.gmra.mrb[64].mxu0 %vm1286_vm5, %v10335_v33  ;;  %v8162_v33 = vld [vmem:[#allocation2 + $0x24] ss:$8 sps:$4 sm:$0xff]   ;;  %v8209_v21 = vld [vmem:[#allocation2 + $0x100] ss:$8 sps:$4 sm:$0xff]  }
 0xad2   :  { %5400 = vmatpush1.bf16.msra.mxu0 %v8157_v56  ;;  %5345 = vmatprep.mubr.bf16.mxu1 %v5307_v25  ;;  %v8212_v56 = vld [vmem:[#allocation2 + $0x124] ss:$8 sps:$4 sm:$0xff]  }
 0xad3   :  { %5401 = vmatprep.subr.bf16.mxu0 %v8158_v26  ;;  %5431 = vmatprep.mubr.bf16.mxu0 %v5307_v25  ;;  %v8211_v25 = vld [vmem:[#allocation2 + $0x110] ss:$8 sps:$4 sm:$0xff]   ;;  %v8213_v26 = vld [vmem:[#allocation2 + $0x120] ss:$8 sps:$4 sm:$0xff]  }
 0xad4   :  { %5346 = vmatmul.mubr.bf16.vlgmr.msra.gmra.mrb[76].mxu1 %v10449_v23 }
 0xad5   :  { %5357 = vmatpush1.bf16.msra.mxu1 %v8159_v27  ;;  %v8214_v27 = vld [vmem:[#allocation2 + $0x134] ss:$8 sps:$4 sm:$0xff]  }
 0xad6   :  { %5402 = vmatpush1.bf16.msra.mxu0 %v8160_v29  ;;  %5358 = vmatprep.subr.bf16.mxu1 %v8161_v30  ;;  %v8215_v29 = vld [vmem:[#allocation2 + $0x130] ss:$8 sps:$4 sm:$0xff]   ;;  %v8216_v30 = vld [vmem:[#allocation2 + $0x144] ss:$8 sps:$4 sm:$0xff]  }
 0xad7   :  { %5403 = vmatprep.subr.bf16.mxu0 %v8162_v33  ;;  %v8217_v33 = vld [vmem:[#allocation2 + $0x140] ss:$8 sps:$4 sm:$0xff]  }
 0xad9   :  { %5359 = vmatpush1.bf16.msra.mxu1 %v8163_v45  ;;  %v8218_v45 = vld [vmem:[#allocation2 + $0x154] ss:$8 sps:$4 sm:$0xff]  }
 0xada   :  { %5404 = vmatpush1.bf16.msra.mxu0 %v8164_v31  ;;  %5360 = vmatprep.subr.bf16.mxu1 %v8165_v28  ;;  %v8220_v31 = vld [vmem:[#allocation2 + $0x164] ss:$8 sps:$4 sm:$0xff]   ;;  %v8221_v28 = vld [vmem:[#allocation2 + $0x160] ss:$8 sps:$4 sm:$0xff]  }
 0xadb   :  { %5405 = vmatprep.subr.bf16.mxu0 %v8166_v32  ;;  %v8222_v32 = vld [vmem:[#allocation2 + $0x174] ss:$8 sps:$4 sm:$0xff]  }
 0xadd   :  { %5361 = vmatpush1.bf16.msra.mxu1 %v8167_v34  ;;  %v8223_v34 = vld [vmem:[#allocation2 + $0x170] ss:$8 sps:$4 sm:$0xff]  }
 0xade   :  { %5406 = vmatpush1.bf16.msra.mxu0 %v8168_v36  ;;  %5362 = vmatprep.subr.bf16.mxu1 %v8169_v37  ;;  %v8224_v36 = vld [vmem:[#allocation2 + $0x184] ss:$8 sps:$4 sm:$0xff]   ;;  %v8225_v37 = vld [vmem:[#allocation2 + $0x180] ss:$8 sps:$4 sm:$0xff]  }
 0xadf   :  { %5407 = vmatprep.subr.bf16.mxu0 %v8170_v38  ;;  %v8226_v38 = vld [vmem:[#allocation2 + $0x194] ss:$8 sps:$4 sm:$0xff]  }
 0xae1   :  { %5363 = vmatpush1.bf16.msra.mxu1 %v8171_v39  ;;  %v8227_v39 = vld [vmem:[#allocation2 + $0x190] ss:$8 sps:$4 sm:$0xff]  }
 0xae2   :  { %5408 = vmatpush1.bf16.msra.mxu0 %v8172_v40  ;;  %5364 = vmatprep.subr.bf16.mxu1 %v8173_v42 }
 0xae3   :  { %5409 = vmatprep.subr.bf16.mxu0 %v8174_v43 }
 0xae5   :  { %5365 = vmatpush1.bf16.msra.mxu1 %v8175_v46 }
 0xae6   :  { %5410 = vmatpush1.bf16.msra.mxu0 %v8176_v47  ;;  %5366 = vmatprep.subr.bf16.mxu1 %v8177_v48 }
 0xae7   :  { %5411 = vmatprep.subr.bf16.mxu0 %v8178_v13 }
 0xae9   :  { %5367 = vmatpush1.bf16.msra.mxu1 %v8179_v49 }
 0xaea   :  { %5412 = vmatpush1.bf16.msra.mxu0 %v8180_v53  ;;  %5368 = vmatprep.subr.bf16.mxu1 %v8181_v61 }
 0xaeb   :  { %5413 = vmatprep.subr.bf16.mxu0 %v8182_v58 }
 0xaed   :  { %5369 = vmatpush1.bf16.msra.mxu1 %v8183_v55 }
 0xaee   :  { %5414 = vmatpush1.bf16.msra.mxu0 %v8184_v62  ;;  %5370 = vmatprep.subr.bf16.mxu1 %v8185_v63 }
 0xaef   :  { %5415 = vmatprep.subr.bf16.mxu0 %v8186_v44  ;;  %v8228_v44 = vld [vmem:[%s11349_s6 + $0x138] ss:$12 sps:$4 sm:$0xff]  }
 0xaf1   :  { %5371 = vmatpush1.bf16.msra.mxu1 %v8187_v4  ;;  %v8229_v4 = vld [vmem:[%s11349_s6 + $0x140] ss:$12 sps:$4 sm:$0xff]  }
 0xaf2   :  { %5416 = vmatpush1.bf16.msra.mxu0 %v8188_v6  ;;  %5372 = vmatprep.subr.bf16.mxu1 %v8189_v7  ;;  %v8230_v6 = vld [vmem:[%s11349_s6 + $0x154] ss:$12 sps:$4 sm:$0xff]   ;;  %v8231_v7 = vld [vmem:[%s11349_s6 + $0x150] ss:$12 sps:$4 sm:$0xff]  }
 0xaf3   :  { %5417 = vmatprep.subr.bf16.mxu0 %v8190_v8  ;;  %v8232_v8 = vld [vmem:[%s11349_s6 + $0x158] ss:$12 sps:$4 sm:$0xff]  }
 0xaf5   :  { %5373 = vmatpush1.bf16.msra.mxu1 %v8191_v9  ;;  %v8233_v9 = vld [vmem:[%s11349_s6 + $0x16c] ss:$12 sps:$4 sm:$0xff]  }
 0xaf6   :  { %5418 = vmatpush1.bf16.msra.mxu0 %v8192_v10  ;;  %5374 = vmatprep.subr.bf16.mxu1 %v8193_v51  ;;  %v8234_v10 = vld [vmem:[%s11349_s6 + $0x168] ss:$12 sps:$4 sm:$0xff]   ;;  %v8235_v51 = vld [vmem:[%s11349_s6 + $0x170] ss:$12 sps:$4 sm:$0xff]  }
 0xaf7   :  { %5419 = vmatprep.subr.bf16.mxu0 %v8194_v11  ;;  %v8236_v11 = vld [vmem:[%s11349_s6 + $0x184] ss:$12 sps:$4 sm:$0xff]  }
 0xaf9   :  { %5375 = vmatpush1.bf16.msra.mxu1 %v8195_v12  ;;  %v8237_v12 = vld [vmem:[%s11349_s6 + $0x180] ss:$12 sps:$4 sm:$0xff]  }
 0xafa   :  { %5420 = vmatpush1.bf16.msra.mxu0 %v8196_v54  ;;  %5509 = vmatprep.subr.bf16.mxu1 %v8197_v15  ;;  %v8238_v54 = vld [vmem:[%s11349_s6 + $0x188] ss:$12 sps:$4 sm:$0xff]  }
 0xafb   :  { %5421 = vmatprep.subr.bf16.mxu0 %v8198_v50  ;;  %v8239_v15 = vld [vmem:[%s11349_s6 + $0x19c] ss:$12 sps:$4 sm:$0xff]   ;;  %v8240_v50 = vld [vmem:[%s11349_s6 + $0x198] ss:$12 sps:$4 sm:$0xff]  }
 0xafe   :  { %5422 = vmatpush1.bf16.msra.mxu0 %v8199_v52  ;;  %v8241_v52 = vld [vmem:[%s11349_s6 + $0x1a0] ss:$12 sps:$4 sm:$0xff]  }
 0xaff   :  { %5423 = vmatprep.subr.bf16.mxu0 %v8200_v16  ;;  %v8242_v16 = vld [vmem:[%s11349_s6 + $0x1b4] ss:$12 sps:$4 sm:$0xff]  }
 0xb02   :  { %5424 = vmatpush1.bf16.msra.mxu0 %v8201_v17  ;;  %v8243_v17 = vld [vmem:[%s11349_s6 + $0x1b0] ss:$12 sps:$4 sm:$0xff]  }
 0xb03   :  { %5425 = vmatprep.subr.bf16.mxu0 %v8202_v57  ;;  %v8244_v57 = vld [vmem:[%s11349_s6 + $0x1b8] ss:$12 sps:$4 sm:$0xff]  }
 0xb06   :  { %5426 = vmatpush1.bf16.msra.mxu0 %v8203_v59  ;;  %v8245_v59 = vld [vmem:[%s11349_s6 + $0x1cc] ss:$12 sps:$4 sm:$0xff]  }
 0xb07   :  { %5427 = vmatprep.subr.bf16.mxu0 %v8204_v14  ;;  %v8246_v14 = vld [vmem:[%s11349_s6 + $0x1c8] ss:$12 sps:$4 sm:$0xff]  }
 0xb0a   :  { %5428 = vmatpush1.bf16.msra.mxu0 %v8205_v19  ;;  %v8247_v19 = vld [vmem:[%s11349_s6 + $0x1d0] ss:$12 sps:$4 sm:$0xff]  }
 0xb0b   :  { %5429 = vmatprep.subr.bf16.mxu0 %v8206_v35  ;;  %v8248_v35 = vld [vmem:[%s11349_s6 + $0x1e4] ss:$12 sps:$4 sm:$0xff]  }
 0xb0e   :  { %5430 = vmatpush1.bf16.msra.mxu0 %v8207_v18  ;;  %v8249_v18 = vld [vmem:[%s11349_s6 + $0x1e0] ss:$12 sps:$4 sm:$0xff]  }
 0xb0f   :  { %5442 = vmatprep.subr.bf16.mxu0 %v8208_v20  ;;  %v8250_v20 = vld [vmem:[%s11349_s6 + $0x1e8] ss:$12 sps:$4 sm:$0xff]  }
 0xb11   :  { %5432 = vmatmul.mubr.bf16.vlgmr.msra.gmra.mrb[68].mxu0 %v10449_v23  ;;  %v8219_v23 = vld [vmem:[#allocation2 + $0x150] ss:$8 sps:$4 sm:$0xff]  }
 0xb12   :  { %5443 = vmatpush1.bf16.msra.mxu0 %v8209_v21  ;;  %v8251_v21 = vld [vmem:[%s11349_s6 + $0x1fc] ss:$12 sps:$4 sm:$0xff]  }
 0xb13   :  { %5444 = vmatprep.subr.bf16.mxu0 %v8210_v22  ;;  %v8252_v22 = vld [vmem:[%s11349_s6 + $0x1f8] ss:$12 sps:$4 sm:$0xff]  }
 0xb16   :  { %5445 = vmatpush1.bf16.msra.mxu0 %v8211_v25  ;;  %v8253_v25 = vld [vmem:[%s11349_s6 + $0x200] ss:$12 sps:$4 sm:$0xff]  }
 0xb17   :  { %5446 = vmatprep.subr.bf16.mxu0 %v8212_v56  ;;  %v8254_v56 = vld [vmem:[%s11349_s6 + $0x214] ss:$12 sps:$4 sm:$0xff]  }
 0xb1a   :  { %5447 = vmatpush1.bf16.msra.mxu0 %v8213_v26  ;;  %v8255_v26 = vld [vmem:[%s11349_s6 + $0x210] ss:$12 sps:$4 sm:$0xff]  }
 0xb1b   :  { %5448 = vmatprep.subr.bf16.mxu0 %v8214_v27  ;;  %v8256_v27 = vld [vmem:[%s11349_s6 + $0x218] ss:$12 sps:$4 sm:$0xff]  }
 0xb1e   :  { %5449 = vmatpush1.bf16.msra.mxu0 %v8215_v29  ;;  %v8257_v29 = vld [vmem:[%s11349_s6 + $0x22c] ss:$12 sps:$4 sm:$0xff]  }
 0xb1f   :  { %5450 = vmatprep.subr.bf16.mxu0 %v8216_v30  ;;  %v8258_v30 = vld [vmem:[%s11349_s6 + $0x228] ss:$12 sps:$4 sm:$0xff]  }
 0xb22   :  { %5451 = vmatpush1.bf16.msra.mxu0 %v8217_v33  ;;  %v8259_v33 = vld [vmem:[%s11349_s6 + $0x230] ss:$12 sps:$4 sm:$0xff]  }
 0xb23   :  { %5452 = vmatprep.subr.bf16.mxu0 %v8218_v45  ;;  %v8260_v45 = vld [vmem:[%s11349_s6 + $0x244] ss:$12 sps:$4 sm:$0xff]  }
 0xb26   :  { %5453 = vmatpush1.bf16.msra.mxu0 %v8219_v23  ;;  %v8261_v23 = vld [vmem:[%s11349_s6 + $0x240] ss:$12 sps:$4 sm:$0xff]  }
 0xb27   :  { %5454 = vmatprep.subr.bf16.mxu0 %v8220_v31  ;;  %v8262_v31 = vld [vmem:[%s11349_s6 + $0x248] ss:$12 sps:$4 sm:$0xff]  }
 0xb2a   :  { %5455 = vmatpush1.bf16.msra.mxu0 %v8221_v28  ;;  %v8263_v28 = vld [vmem:[%s11349_s6 + $0x25c] ss:$12 sps:$4 sm:$0xff]  }
 0xb2b   :  { %5456 = vmatprep.subr.bf16.mxu0 %v8222_v32  ;;  %v8264_v32 = vld [vmem:[%s11349_s6 + $0x258] ss:$12 sps:$4 sm:$0xff]  }
 0xb2e   :  { %5457 = vmatpush1.bf16.msra.mxu0 %v8223_v34  ;;  %v8265_v34 = vld [vmem:[%s11349_s6 + $0x260] ss:$12 sps:$4 sm:$0xff]  }
 0xb2f   :  { %5458 = vmatprep.subr.bf16.mxu0 %v8224_v36  ;;  %v8266_v36 = vld [vmem:[%s11349_s6 + $0x4] ss:$12 sps:$4 sm:$0xff]  }
 0xb32   :  { %5459 = vmatpush1.bf16.msra.mxu0 %v8225_v37 }
 0xb33   :  { %5460 = vmatprep.subr.bf16.mxu0 %v8226_v38 }
 0xb36   :  { %5461 = vmatpush1.bf16.msra.mxu0 %v8227_v39 }
 0xb37   :  { %5552 = vmatprep.subr.bf16.mxu0 %v8743_v0 }
 0xb9c   :  { %v5203_v40 = vpop.f32.mrb[60].mxu0 }
 0xb9d   :  { %v5205_v42 = vpop.f32.mrb[61].mxu0 }
 0xb9e   :  { %v5207_v43 = vpop.f32.mrb[62].mxu0 }
 0xb9f   :  { %v5209_v46 = vpop.f32.mrb[63].mxu0 }
 0xba4   :  { %v5289_v47 = vpop.f32.mrb[64].mxu0 }
 0xba5   :  { %v5300_v48 = vmax.f32 %v5203_v40, %v5289_v47  ;;  %v5291_v13 = vpop.f32.mrb[65].mxu0 }
 0xba6   :  { %v5301_v49 = vmax.f32 %v5205_v42, %v5291_v13  ;;  %v5293_v53 = vpop.f32.mrb[66].mxu0 }
 0xba7   :  { %v5304_v61 = vmax.f32 %v5207_v43, %v5293_v53  ;;  %v5295_v58 = vpop.f32.mrb[67].mxu0 }
 0xba8   :  { %v5305_v55 = vmax.f32 %v5209_v46, %v5295_v58 }
 0xba9   :  { %v5308_v62 = vpack.c.bf16 %v5304_v61, %v5300_v48 }
 0xbaa   :  { %v5309_v63 = vpack.c.bf16 %v5305_v55, %v5301_v49 }
 0xbac   :  { %7133 = vmatprep.mubr.msk.bf16.mxu1 %vm1755_vm6, %v5309_v63  ;;  %7134 = vmatprep.mubr.msk.bf16.mxu0 %vm1755_vm6, %v5309_v63 }
 0xbad   :  { %5389 = vmatmul.mubr.bf16.vlgmr.msra.gmra.mrb[76].mxu1 %v5308_v62  ;;  %5475 = vmatmul.mubr.bf16.vlgmr.msra.gmra.mrb[68].mxu0 %v5308_v62 }
 0xbae   :  { %5510 = vmatpush1.bf16.msra.mxu1 %v8228_v44  ;;  %5553 = vmatpush1.bf16.msra.mxu0 %v8229_v4 }
 0xbaf   :  { %5511 = vmatprep.subr.bf16.mxu1 %v8230_v6  ;;  %5554 = vmatprep.subr.bf16.mxu0 %v8743_v0 }
 0xbb2   :  { %5512 = vmatpush1.bf16.msra.mxu1 %v8231_v7  ;;  %5555 = vmatpush1.bf16.msra.mxu0 %v8232_v8 }
 0xbb3   :  { %5513 = vmatprep.subr.bf16.mxu1 %v8233_v9  ;;  %5556 = vmatprep.subr.bf16.mxu0 %v8743_v0  ;;  %v8267_v9 = vld [vmem:[%s11349_s6] ss:$12 sps:$4 sm:$0xff]  }
 0xbb6   :  { %5514 = vmatpush1.bf16.msra.mxu1 %v8234_v10  ;;  %5557 = vmatpush1.bf16.msra.mxu0 %v8235_v51  ;;  %v8268_v10 = vld [vmem:[%s11349_s6 + $0x8] ss:$12 sps:$4 sm:$0xff]  }
 0xbb7   :  { %5515 = vmatprep.subr.bf16.mxu1 %v8236_v11  ;;  %5558 = vmatprep.subr.bf16.mxu0 %v8743_v0  ;;  %v8269_v51 = vld [vmem:[%s11349_s6 + $0x1c] ss:$12 sps:$4 sm:$0xff]   ;;  %v8270_v11 = vld [vmem:[%s11349_s6 + $0x18] ss:$12 sps:$4 sm:$0xff]  }
 0xbba   :  { %5516 = vmatpush1.bf16.msra.mxu1 %v8237_v12  ;;  %5559 = vmatpush1.bf16.msra.mxu0 %v8238_v54  ;;  %v8271_v12 = vld [vmem:[%s11349_s6 + $0x20] ss:$12 sps:$4 sm:$0xff]  }
 0xbbb   :  { %5517 = vmatprep.subr.bf16.mxu1 %v8239_v15  ;;  %5560 = vmatprep.subr.bf16.mxu0 %v8743_v0  ;;  %v8272_v54 = vld [vmem:[%s11349_s6 + $0x34] ss:$12 sps:$4 sm:$0xff]   ;;  %v8273_v15 = vld [vmem:[%s11349_s6 + $0x30] ss:$12 sps:$4 sm:$0xff]  }
 0xbbe   :  { %5518 = vmatpush1.bf16.msra.mxu1 %v8240_v50  ;;  %5561 = vmatpush1.bf16.msra.mxu0 %v8241_v52  ;;  %v8274_v50 = vld [vmem:[%s11349_s6 + $0x38] ss:$12 sps:$4 sm:$0xff]  }
 0xbbf   :  { %5519 = vmatprep.subr.bf16.mxu1 %v8242_v16  ;;  %5562 = vmatprep.subr.bf16.mxu0 %v8743_v0  ;;  %v8275_v52 = vld [vmem:[%s11349_s6 + $0x4c] ss:$12 sps:$4 sm:$0xff]   ;;  %v8276_v16 = vld [vmem:[%s11349_s6 + $0x48] ss:$12 sps:$4 sm:$0xff]  }
 0xbc2   :  { %5520 = vmatpush1.bf16.msra.mxu1 %v8243_v17  ;;  %5563 = vmatpush1.bf16.msra.mxu0 %v8244_v57  ;;  %v8277_v17 = vld [vmem:[%s11349_s6 + $0x50] ss:$12 sps:$4 sm:$0xff]  }
 0xbc3   :  { %5521 = vmatprep.subr.bf16.mxu1 %v8245_v59  ;;  %5564 = vmatprep.subr.bf16.mxu0 %v8743_v0  ;;  %v8278_v57 = vld [vmem:[%s11349_s6 + $0x64] ss:$12 sps:$4 sm:$0xff]   ;;  %v8279_v59 = vld [vmem:[%s11349_s6 + $0x60] ss:$12 sps:$4 sm:$0xff]  }
 0xbc6   :  { %5522 = vmatpush1.bf16.msra.mxu1 %v8246_v14  ;;  %5565 = vmatpush1.bf16.msra.mxu0 %v8247_v19  ;;  %v8280_v14 = vld [vmem:[%s11349_s6 + $0x68] ss:$12 sps:$4 sm:$0xff]  }
 0xbc7   :  { %5523 = vmatprep.subr.bf16.mxu1 %v8248_v35  ;;  %5566 = vmatprep.subr.bf16.mxu0 %v8743_v0  ;;  %v8281_v19 = vld [vmem:[%s11349_s6 + $0x7c] ss:$12 sps:$4 sm:$0xff]   ;;  %v8282_v35 = vld [vmem:[%s11349_s6 + $0x78] ss:$12 sps:$4 sm:$0xff]  }
 0xbca   :  { %5524 = vmatpush1.bf16.msra.mxu1 %v8249_v18  ;;  %5567 = vmatpush1.bf16.msra.mxu0 %v8250_v20  ;;  %v8283_v18 = vld [vmem:[%s11349_s6 + $0x80] ss:$12 sps:$4 sm:$0xff]  }
 0xbcb   :  { %5525 = vmatprep.subr.bf16.mxu1 %v8251_v21  ;;  %5568 = vmatprep.subr.bf16.mxu0 %v8743_v0  ;;  %v8284_v20 = vld [vmem:[%s11349_s6 + $0x94] ss:$12 sps:$4 sm:$0xff]   ;;  %v8285_v21 = vld [vmem:[%s11349_s6 + $0x90] ss:$12 sps:$4 sm:$0xff]  }
 0xbce   :  { %5526 = vmatpush1.bf16.msra.mxu1 %v8252_v22  ;;  %5569 = vmatpush1.bf16.msra.mxu0 %v8253_v25  ;;  %v8286_v22 = vld [vmem:[%s11349_s6 + $0x98] ss:$12 sps:$4 sm:$0xff]  }
 0xbcf   :  { %5527 = vmatprep.subr.bf16.mxu1 %v8254_v56  ;;  %5570 = vmatprep.subr.bf16.mxu0 %v8743_v0  ;;  %v8287_v25 = vld [vmem:[%s11349_s6 + $0xac] ss:$12 sps:$4 sm:$0xff]   ;;  %v8288_v56 = vld [vmem:[%s11349_s6 + $0xa8] ss:$12 sps:$4 sm:$0xff]  }
 0xbd2   :  { %5528 = vmatpush1.bf16.msra.mxu1 %v8255_v26  ;;  %5571 = vmatpush1.bf16.msra.mxu0 %v8256_v27  ;;  %v8289_v26 = vld [vmem:[%s11349_s6 + $0xb0] ss:$12 sps:$4 sm:$0xff]  }
 0xbd3   :  { %5529 = vmatprep.subr.bf16.mxu1 %v8257_v29  ;;  %5572 = vmatprep.subr.bf16.mxu0 %v8743_v0  ;;  %v8290_v27 = vld [vmem:[%s11349_s6 + $0xc4] ss:$12 sps:$4 sm:$0xff]   ;;  %v8291_v29 = vld [vmem:[%s11349_s6 + $0xc0] ss:$12 sps:$4 sm:$0xff]  }
 0xbd6   :  { %5530 = vmatpush1.bf16.msra.mxu1 %v8258_v30  ;;  %5573 = vmatpush1.bf16.msra.mxu0 %v8259_v33  ;;  %v8292_v30 = vld [vmem:[%s11349_s6 + $0xc8] ss:$12 sps:$4 sm:$0xff]  }
 0xbd7   :  { %5531 = vmatprep.subr.bf16.mxu1 %v8260_v45  ;;  %5574 = vmatprep.subr.bf16.mxu0 %v8743_v0  ;;  %v8293_v33 = vld [vmem:[%s11349_s6 + $0xdc] ss:$12 sps:$4 sm:$0xff]   ;;  %v8294_v45 = vld [vmem:[%s11349_s6 + $0xd8] ss:$12 sps:$4 sm:$0xff]  }
 0xbda   :  { %5532 = vmatpush1.bf16.msra.mxu1 %v8261_v23  ;;  %5575 = vmatpush1.bf16.msra.mxu0 %v8262_v31  ;;  %v8295_v23 = vld [vmem:[%s11349_s6 + $0xe0] ss:$12 sps:$4 sm:$0xff]  }
 0xbdb   :  { %5533 = vmatprep.subr.bf16.mxu1 %v8263_v28  ;;  %5576 = vmatprep.subr.bf16.mxu0 %v8743_v0  ;;  %v8296_v31 = vld [vmem:[%s11349_s6 + $0xf4] ss:$12 sps:$4 sm:$0xff]   ;;  %v8297_v28 = vld [vmem:[%s11349_s6 + $0xf0] ss:$12 sps:$4 sm:$0xff]  }
 0xbde   :  { %5534 = vmatpush1.bf16.msra.mxu1 %v8264_v32  ;;  %5577 = vmatpush1.bf16.msra.mxu0 %v8265_v34  ;;  %v8298_v32 = vld [vmem:[%s11349_s6 + $0xf8] ss:$12 sps:$4 sm:$0xff]  }
 0xbdf   :  { %5595 = vmatprep.subr.bf16.mxu1 %v8266_v36  ;;  %5638 = vmatprep.subr.bf16.mxu0 %v8743_v0  ;;  %v8299_v34 = vld [vmem:[%s11349_s6 + $0x10c] ss:$12 sps:$4 sm:$0xff]   ;;  %v8300_v36 = vld [vmem:[%s11349_s6 + $0x108] ss:$12 sps:$4 sm:$0xff]  }
 0xc80   :  { %v5390_v37 = vpop.f32.mrb[76].mxu1  ;;  %v5476_v38 = vpop.f32.mrb[68].mxu0 }
 0xc81   :  { %v5485_v39 = vmax.f32 %v5390_v37, %v5476_v38  ;;  %v5392_v40 = vpop.f32.mrb[77].mxu1  ;;  %v5478_v42 = vpop.f32.mrb[69].mxu0  ;;  %v8301_v37 = vld [vmem:[%s11349_s6 + $0x110] ss:$12 sps:$4 sm:$0xff]  }
 0xc82   :  { %v5486_v43 = vmax.f32 %v5392_v40, %v5478_v42  ;;  %v5394_v46 = vpop.f32.mrb[78].mxu1  ;;  %v5480_v47 = vpop.f32.mrb[70].mxu0  ;;  %v8302_v38 = vld [vmem:[%s11349_s6 + $0x124] ss:$12 sps:$4 sm:$0xff]   ;;  %v8304_v40 = vld [vmem:[%s11349_s6 + $0x128] ss:$12 sps:$4 sm:$0xff]  }
 0xc83   :  { %v5487_v48 = vmax.f32 %v5394_v46, %v5480_v47  ;;  %v5396_v13 = vpop.f32.mrb[79].mxu1  ;;  %v5482_v49 = vpop.f32.mrb[71].mxu0  ;;  %v8305_v42 = vld [vmem:[%s11349_s6 + $0x274] ss:$12 sps:$4 sm:$0xff]   ;;  %v8306_v46 = vld [vmem:[%s11349_s6 + $0x270] ss:$12 sps:$4 sm:$0xff]  }
 0xc84   :  { %v5488_v53 = vmax.f32 %v5396_v13, %v5482_v49  ;;  %v8307_v47 = vld [vmem:[%s11349_s6 + $0x278] ss:$12 sps:$4 sm:$0xff]   ;;  %v8309_v13 = vld [vmem:[%s11349_s6 + $0x288] ss:$12 sps:$4 sm:$0xff]   ;;  %v8310_v49 = vld [vmem:[%s11349_s6 + $0x290] ss:$12 sps:$4 sm:$0xff]  }
 0xc85   :  { %v10648_v61 = vpack.c.bf16 %v5487_v48, %v5485_v39  ;;  %v8303_v39 = vld [vmem:[%s11349_s6 + $0x120] ss:$12 sps:$4 sm:$0xff]  }
 0xc86   :  { %v10650_v58 = vpack.c.bf16 %v5488_v53, %v5486_v43  ;;  %v8308_v48 = vld [vmem:[%s11349_s6 + $0x28c] ss:$12 sps:$4 sm:$0xff]   ;;  %v8311_v53 = vld [vmem:[%s11349_s6 + $0x2a4] ss:$12 sps:$4 sm:$0xff]  }
 0xc87   :  { %v5494_v55 = vshll.u32 %v10648_v61, 16  ;;  %v5492_v6 = vshrl.u32 %v10648_v61, 16 }
 0xc88   :  { %v5501_v62 = vshll.u32 %v10650_v58, 16  ;;  %v5499_v44 = vshrl.u32 %v10650_v58, 16  ;;  %v5682_v43 = vrot.slane %v10650_v58, 1 }
 0xc89   :  { %v5496_v63 = vrot.slane %v5494_v55, 1  ;;  %v8313_v55 = vld [vmem:[%s11349_s6 + $0x2a8] ss:$12 sps:$4 sm:$0xff]  }
 0xc8a   :  { %v5503_v4 = vrot.slane %v5501_v62, 1  ;;  %v8314_v62 = vld [vmem:[%s11349_s6 + $0x2bc] ss:$12 sps:$4 sm:$0xff]  }
 0xc8b   :  { %v5497_v8 = vor.u32 %v5496_v63, %v5492_v6  ;;  %v8315_v63 = vld [vmem:[%s11349_s6 + $0x2b8] ss:$12 sps:$4 sm:$0xff]   ;;  %v8318_v6 = vld [vmem:[%s11349_s6 + $0x2d0] ss:$12 sps:$4 sm:$0xff]  }
 0xc8c   :  { %v5504_v7 = vor.u32 %v5503_v4, %v5499_v44  ;;  %v8316_v44 = vld [vmem:[%s11349_s6 + $0x2c0] ss:$12 sps:$4 sm:$0xff]  }
 0xc8d   :  { %v8317_v4 = vld [vmem:[%s11349_s6 + $0x2d4] ss:$12 sps:$4 sm:$0xff]  }
 0xc8e   :  { %7135 = vmatprep.mubr.msk.bf16.mxu1 %vm2420_vm7, %v5504_v7  ;;  %7136 = vmatprep.mubr.msk.bf16.mxu0 %vm2420_vm7, %v5504_v7  ;;  %v8319_v7 = vld [vmem:[%s11349_s6 + $0x2d8] ss:$12 sps:$4 sm:$0xff]  }
 0xc8f   :  { %5542 = vmatmul.mubr.bf16.vlgmr.msra.gmra.mrb[80].mxu1 %v5497_v8  ;;  %5585 = vmatmul.mubr.bf16.vlgmr.msra.gmra.mrb[72].mxu0 %v5497_v8  ;;  %v8320_v8 = vld [vmem:[%s11349_s6 + $0x2ec] ss:$12 sps:$4 sm:$0xff]  }
 0xc90   :  { %5596 = vmatpush1.bf16.msra.mxu1 %v8267_v9  ;;  %5639 = vmatpush1.bf16.msra.mxu0 %v8268_v10  ;;  %v8321_v9 = vld [vmem:[%s11349_s6 + $0x2e8] ss:$12 sps:$4 sm:$0xff]   ;;  %v8322_v10 = vld [vmem:[%s11349_s6 + $0x2f0] ss:$12 sps:$4 sm:$0xff]  }
 0xc91   :  { %7137 = vmatprep.mubr.msk.bf16.mxu1 %vm2420_vm7, %v10650_v58  ;;  %7138 = vmatprep.mubr.msk.bf16.mxu0 %vm2420_vm7, %v10650_v58  ;;  %v8312_v58 = vld [vmem:[%s11349_s6 + $0x2a0] ss:$12 sps:$4 sm:$0xff]  }
 0xc92   :  { %5597 = vmatprep.subr.bf16.mxu1 %v8269_v51  ;;  %5640 = vmatprep.subr.bf16.mxu0 %v8743_v0  ;;  %v8323_v51 = vld [vmem:[%s11349_s6 + $0x304] ss:$12 sps:$4 sm:$0xff]  }
 0xc94   :  { %5598 = vmatpush1.bf16.msra.mxu1 %v8270_v11  ;;  %5641 = vmatpush1.bf16.msra.mxu0 %v8271_v12  ;;  %v8324_v11 = vld [vmem:[%s11349_s6 + $0x300] ss:$12 sps:$4 sm:$0xff]   ;;  %v8325_v12 = vld [vmem:[%s11349_s6 + $0x308] ss:$12 sps:$4 sm:$0xff]  }
 0xc95   :  { %5599 = vmatprep.subr.bf16.mxu1 %v8272_v54  ;;  %5642 = vmatprep.subr.bf16.mxu0 %v8743_v0  ;;  %v8326_v54 = vld [vmem:[%s11349_s6 + $0x31c] ss:$12 sps:$4 sm:$0xff]  }
 0xc98   :  { %5600 = vmatpush1.bf16.msra.mxu1 %v8273_v15  ;;  %5643 = vmatpush1.bf16.msra.mxu0 %v8274_v50  ;;  %v8327_v15 = vld [vmem:[%s11349_s6 + $0x318] ss:$12 sps:$4 sm:$0xff]   ;;  %v8328_v50 = vld [vmem:[%s11349_s6 + $0x320] ss:$12 sps:$4 sm:$0xff]  }
 0xc99   :  { %5601 = vmatprep.subr.bf16.mxu1 %v8275_v52  ;;  %5644 = vmatprep.subr.bf16.mxu0 %v8743_v0  ;;  %v8329_v52 = vld [vmem:[%s11349_s6 + $0x334] ss:$12 sps:$4 sm:$0xff]  }
 0xc9c   :  { %5602 = vmatpush1.bf16.msra.mxu1 %v8276_v16  ;;  %5645 = vmatpush1.bf16.msra.mxu0 %v8277_v17  ;;  %v8330_v16 = vld [vmem:[%s11349_s6 + $0x330] ss:$12 sps:$4 sm:$0xff]   ;;  %v8331_v17 = vld [vmem:[%s11349_s6 + $0x338] ss:$12 sps:$4 sm:$0xff]  }
 0xc9d   :  { %5603 = vmatprep.subr.bf16.mxu1 %v8278_v57  ;;  %5646 = vmatprep.subr.bf16.mxu0 %v8743_v0  ;;  %v8332_v57 = vld [vmem:[%s11349_s6 + $0x34c] ss:$12 sps:$4 sm:$0xff]  }
 0xca0   :  { %5604 = vmatpush1.bf16.msra.mxu1 %v8279_v59  ;;  %5647 = vmatpush1.bf16.msra.mxu0 %v8280_v14  ;;  %v8333_v59 = vld [vmem:[%s11349_s6 + $0x348] ss:$12 sps:$4 sm:$0xff]   ;;  %v8334_v14 = vld [vmem:[%s11349_s6 + $0x350] ss:$12 sps:$4 sm:$0xff]  }
 0xca1   :  { %5605 = vmatprep.subr.bf16.mxu1 %v8281_v19  ;;  %5648 = vmatprep.subr.bf16.mxu0 %v8743_v0  ;;  %v8335_v19 = vld [vmem:[%s11349_s6 + $0x364] ss:$12 sps:$4 sm:$0xff]  }
 0xca4   :  { %5606 = vmatpush1.bf16.msra.mxu1 %v8282_v35  ;;  %5649 = vmatpush1.bf16.msra.mxu0 %v8283_v18  ;;  %v8336_v35 = vld [vmem:[%s11349_s6 + $0x360] ss:$12 sps:$4 sm:$0xff]   ;;  %v8337_v18 = vld [vmem:[%s11349_s6 + $0x368] ss:$12 sps:$4 sm:$0xff]  }
 0xca5   :  { %5607 = vmatprep.subr.bf16.mxu1 %v8284_v20  ;;  %5650 = vmatprep.subr.bf16.mxu0 %v8743_v0  ;;  %v8338_v20 = vld [vmem:[%s11349_s6 + $0x37c] ss:$12 sps:$4 sm:$0xff]  }
 0xca8   :  { %5608 = vmatpush1.bf16.msra.mxu1 %v8285_v21  ;;  %5651 = vmatpush1.bf16.msra.mxu0 %v8286_v22  ;;  %v8339_v21 = vld [vmem:[%s11349_s6 + $0x378] ss:$12 sps:$4 sm:$0xff]   ;;  %v8340_v22 = vld [vmem:[%s11349_s6 + $0x380] ss:$12 sps:$4 sm:$0xff]  }
 0xca9   :  { %5609 = vmatprep.subr.bf16.mxu1 %v8287_v25  ;;  %5652 = vmatprep.subr.bf16.mxu0 %v8743_v0  ;;  %v8341_v25 = vld [vmem:[%s11349_s6 + $0x394] ss:$12 sps:$4 sm:$0xff]  }
 0xcac   :  { %5610 = vmatpush1.bf16.msra.mxu1 %v8288_v56  ;;  %5653 = vmatpush1.bf16.msra.mxu0 %v8289_v26  ;;  %v8342_v56 = vld [vmem:[%s11349_s6 + $0x390] ss:$12 sps:$4 sm:$0xff]   ;;  %v8343_v26 = vld [vmem:[%s11349_s6 + $0x398] ss:$12 sps:$4 sm:$0xff]  }
 0xcad   :  { %5611 = vmatprep.subr.bf16.mxu1 %v8290_v27  ;;  %5654 = vmatprep.subr.bf16.mxu0 %v8743_v0  ;;  %v5681_v27 = vrot.slane %v10648_v61, 1 }
 0xcb0   :  { %5612 = vmatpush1.bf16.msra.mxu1 %v8291_v29  ;;  %5655 = vmatpush1.bf16.msra.mxu0 %v8292_v30 }
 0xcb1   :  { %5613 = vmatprep.subr.bf16.mxu1 %v8293_v33  ;;  %5656 = vmatprep.subr.bf16.mxu0 %v8743_v0 }
 0xcb4   :  { %5614 = vmatpush1.bf16.msra.mxu1 %v8294_v45  ;;  %5657 = vmatpush1.bf16.msra.mxu0 %v8295_v23 }
 0xcb5   :  { %5615 = vmatprep.subr.bf16.mxu1 %v8296_v31  ;;  %5658 = vmatprep.subr.bf16.mxu0 %v8743_v0 }
 0xcb8   :  { %5616 = vmatpush1.bf16.msra.mxu1 %v8297_v28  ;;  %5659 = vmatpush1.bf16.msra.mxu0 %v8298_v32 }
 0xcb9   :  { %5617 = vmatprep.subr.bf16.mxu1 %v8299_v34  ;;  %5660 = vmatprep.subr.bf16.mxu0 %v8743_v0 }
 0xcbc   :  { %5618 = vmatpush1.bf16.msra.mxu1 %v8300_v36  ;;  %5661 = vmatpush1.bf16.msra.mxu0 %v8301_v37 }
 0xcbd   :  { %5619 = vmatprep.subr.bf16.mxu1 %v8302_v38  ;;  %5662 = vmatprep.subr.bf16.mxu0 %v8743_v0 }
 0xcc0   :  { %5620 = vmatpush1.bf16.msra.mxu1 %v8303_v39  ;;  %5663 = vmatpush1.bf16.msra.mxu0 %v8304_v40 }
 0xcc1   :  { %5687 = vmatprep.subr.bf16.mxu1 %v8305_v42  ;;  %5730 = vmatprep.subr.bf16.mxu0 %v8743_v0 }
 0xcc3   :  { %5628 = vmatmul.mubr.bf16.vlgmr.msra.gmra.mrb[80].mxu1 %v10648_v61  ;;  %5671 = vmatmul.mubr.bf16.vlgmr.msra.gmra.mrb[76].mxu0 %v10648_v61 }
 0xcc4   :  { %5688 = vmatpush1.bf16.msra.mxu1 %v8306_v46  ;;  %7139 = vmatprep.mubr.msk.bf16.mxu1 %vm2420_vm7, %v5682_v43 }
 0xcc5   :  { %5731 = vmatpush1.bf16.msra.mxu0 %v8307_v47  ;;  %7140 = vmatprep.mubr.msk.bf16.mxu0 %vm2420_vm7, %v5682_v43 }
 0xcc6   :  { %5689 = vmatprep.subr.bf16.mxu1 %v8308_v48  ;;  %5732 = vmatprep.subr.bf16.mxu0 %v8743_v0 }
 0xcc8   :  { %5690 = vmatpush1.bf16.msra.mxu1 %v8309_v13 }
 0xcc9   :  { %5733 = vmatpush1.bf16.msra.mxu0 %v8310_v49  ;;  %5691 = vmatprep.subr.bf16.mxu1 %v8311_v53 }
 0xcca   :  { %5734 = vmatprep.subr.bf16.mxu0 %v8743_v0 }
 0xccc   :  { %5692 = vmatpush1.bf16.msra.mxu1 %v8312_v58 }
 0xccd   :  { %5735 = vmatpush1.bf16.msra.mxu0 %v8313_v55  ;;  %5693 = vmatprep.subr.bf16.mxu1 %v8314_v62 }
 0xcce   :  { %5736 = vmatprep.subr.bf16.mxu0 %v8743_v0 }
 0xcd0   :  { %5694 = vmatpush1.bf16.msra.mxu1 %v8315_v63 }
 0xcd1   :  { %5737 = vmatpush1.bf16.msra.mxu0 %v8316_v44  ;;  %5695 = vmatprep.subr.bf16.mxu1 %v8317_v4 }
 0xcd2   :  { %5738 = vmatprep.subr.bf16.mxu0 %v8743_v0 }
 0xcd4   :  { %5696 = vmatpush1.bf16.msra.mxu1 %v8318_v6 }
 0xcd5   :  { %5739 = vmatpush1.bf16.msra.mxu0 %v8319_v7  ;;  %5697 = vmatprep.subr.bf16.mxu1 %v8320_v8 }
 0xcd6   :  { %5740 = vmatprep.subr.bf16.mxu0 %v8743_v0 }
 0xcd8   :  { %5698 = vmatpush1.bf16.msra.mxu1 %v8321_v9 }
 0xcd9   :  { %5741 = vmatpush1.bf16.msra.mxu0 %v8322_v10  ;;  %5699 = vmatprep.subr.bf16.mxu1 %v8323_v51 }
 0xcda   :  { %5742 = vmatprep.subr.bf16.mxu0 %v8743_v0 }
 0xcdc   :  { %5700 = vmatpush1.bf16.msra.mxu1 %v8324_v11 }
 0xcdd   :  { %5743 = vmatpush1.bf16.msra.mxu0 %v8325_v12  ;;  %5701 = vmatprep.subr.bf16.mxu1 %v8326_v54  ;;  %v8347_v54 = vld [vmem:[%s11351_s8] sm:$0x7] }
 0xcde   :  { %5744 = vmatprep.subr.bf16.mxu0 %v8743_v0 }
 0xce0   :  { %5702 = vmatpush1.bf16.msra.mxu1 %v8327_v15  ;;  %v8348_v15 = vld [vmem:[%s11352_s9] ss:$8 sps:$4 sm:$0xff]  }
 0xce1   :  { %5745 = vmatpush1.bf16.msra.mxu0 %v8328_v50  ;;  %5703 = vmatprep.subr.bf16.mxu1 %v8329_v52  ;;  %v8349_v50 = vld [vmem:[%s11353_s10] ss:$8 sps:$4 sm:$0xff]   ;;  %v8350_v52 = vld [vmem:[%s11352_s9 + $0x14] ss:$8 sps:$4 sm:$0xff]  }
 0xce2   :  { %5746 = vmatprep.subr.bf16.mxu0 %v8743_v0 }
 0xce4   :  { %5704 = vmatpush1.bf16.msra.mxu1 %v8330_v16  ;;  %v8351_v16 = vld [vmem:[%s11353_s10 + $0x14] ss:$8 sps:$4 sm:$0xff]  }
 0xce5   :  { %5747 = vmatpush1.bf16.msra.mxu0 %v8331_v17  ;;  %5705 = vmatprep.subr.bf16.mxu1 %v8332_v57  ;;  %v8352_v17 = vld [vmem:[%s11352_s9 + $0x10] ss:$8 sps:$4 sm:$0xff]  }
 0xce6   :  { %5748 = vmatprep.subr.bf16.mxu0 %v8743_v0  ;;  %v8353_v57 = vld [vmem:[%s11353_s10 + $0x10] ss:$8 sps:$4 sm:$0xff]  }
 0xce8   :  { %5706 = vmatpush1.bf16.msra.mxu1 %v8333_v59  ;;  %v8354_v59 = vld [vmem:[%s11352_s9 + $0x24] ss:$8 sps:$4 sm:$0xff]  }
 0xce9   :  { %5749 = vmatpush1.bf16.msra.mxu0 %v8334_v14  ;;  %5707 = vmatprep.subr.bf16.mxu1 %v8335_v19  ;;  %v8355_v14 = vld [vmem:[%s11353_s10 + $0x24] ss:$8 sps:$4 sm:$0xff]   ;;  %v8356_v19 = vld [vmem:[%s11352_s9 + $0x20] ss:$8 sps:$4 sm:$0xff]  }
 0xcea   :  { %5750 = vmatprep.subr.bf16.mxu0 %v8743_v0 }
 0xcec   :  { %5708 = vmatpush1.bf16.msra.mxu1 %v8336_v35  ;;  %v8357_v35 = vld [vmem:[%s11353_s10 + $0x20] ss:$8 sps:$4 sm:$0xff]  }
 0xced   :  { %5751 = vmatpush1.bf16.msra.mxu0 %v8337_v18  ;;  %5709 = vmatprep.subr.bf16.mxu1 %v8338_v20  ;;  %v8358_v18 = vld [vmem:[%s11352_s9 + $0x34] ss:$8 sps:$4 sm:$0xff]  }
 0xcee   :  { %5752 = vmatprep.subr.bf16.mxu0 %v8743_v0  ;;  %v8359_v20 = vld [vmem:[%s11353_s10 + $0x34] ss:$8 sps:$4 sm:$0xff]  }
 0xcf0   :  { %5710 = vmatpush1.bf16.msra.mxu1 %v8339_v21  ;;  %v8360_v21 = vld [vmem:[%s11352_s9 + $0x30] ss:$8 sps:$4 sm:$0xff]  }
 0xcf1   :  { %5753 = vmatpush1.bf16.msra.mxu0 %v8340_v22  ;;  %5711 = vmatprep.subr.bf16.mxu1 %v8341_v25  ;;  %v8361_v22 = vld [vmem:[%s11353_s10 + $0x30] ss:$8 sps:$4 sm:$0xff]   ;;  %v8362_v25 = vld [vmem:[%s11352_s9 + $0x44] ss:$8 sps:$4 sm:$0xff]  }
 0xcf2   :  { %5754 = vmatprep.subr.bf16.mxu0 %v8743_v0 }
 0xcf4   :  { %5712 = vmatpush1.bf16.msra.mxu1 %v8342_v56  ;;  %v8363_v56 = vld [vmem:[%s11353_s10 + $0x44] ss:$8 sps:$4 sm:$0xff]  }
 0xcf5   :  { %5755 = vmatpush1.bf16.msra.mxu0 %v8343_v26  ;;  %v8364_v26 = vld [vmem:[%s11352_s9 + $0x40] ss:$8 sps:$4 sm:$0xff]  }
 0xcf6   :  { %7333 = vmatprep.subr.bf16.mxu0 %v8744_v41 }
 0xcf7   :  { %5720 = vmatmul.mubr.bf16.vlgmr.msra.gmra.mrb[80].mxu1 %v5681_v27 }
 0xcf8   :  { %5763 = vmatmul.mubr.bf16.vlgmr.msra.gmra.mrb[80].mxu0 %v5681_v27  ;;  %5833 = vmatprep.mubr.bf16.mxu1 %v8743_v0  ;;  %v8365_v27 = vld [vmem:[%s11353_s10 + $0x40] ss:$8 sps:$4 sm:$0xff]  }
 0xcf9   :  { %7335 = vmatprep.mubr.msk.bf16.mxu0 %vm8745_vm8, %v8744_v41 }
 0xd62   :  { %v5586_v29 = vpop.f32.mrb[72].mxu0 }
 0xd63   :  { %v5588_v30 = vpop.f32.mrb[73].mxu0 }
 0xd64   :  { %v5589_v33 = vpop.f32.mrb[74].mxu0  ;;  %v8367_v30 = vld [vmem:[%s11353_s10 + $0x54] ss:$8 sps:$4 sm:$0xff]  }
 0xd65   :  { %v5591_v45 = vpop.f32.mrb[75].mxu0 }
 0xd66   :  { %v8369_v45 = vld [vmem:[%s11353_s10 + $0x50] ss:$8 sps:$4 sm:$0xff]  }
 0xd96   :  { %v5672_v23 = vpop.f32.mrb[76].mxu0 }
 0xd97   :  { %v5673_v31 = vadd.f32 %v5672_v23, %v5586_v29  ;;  %v5674_v28 = vpop.f32.mrb[77].mxu0  ;;  %v8366_v29 = vld [vmem:[%s11352_s9 + $0x54] ss:$8 sps:$4 sm:$0xff]   ;;  %v8370_v23 = vld [vmem:[%s11352_s9 + $0x64] ss:$8 sps:$4 sm:$0xff]  }
 0xd98   :  { %v5675_v32 = vpop.f32.mrb[78].mxu0  ;;  %v8372_v28 = vld [vmem:[%s11352_s9 + $0x60] ss:$8 sps:$4 sm:$0xff]  }
 0xd99   :  { %v5676_v34 = vadd.f32 %v5675_v32, %v5589_v33  ;;  %v5677_v36 = vpop.f32.mrb[79].mxu0  ;;  %v8368_v33 = vld [vmem:[%s11352_s9 + $0x50] ss:$8 sps:$4 sm:$0xff]   ;;  %v8373_v32 = vld [vmem:[%s11353_s10 + $0x60] ss:$8 sps:$4 sm:$0xff]  }
 0xd9a   :  { %v8375_v36 = vld [vmem:[%s11353_s10 + $0x74] ss:$8 sps:$4 sm:$0xff]  }
 0xdca   :  { %v5721_v61 = vpop.f32.mrb[80].mxu1 }
 0xdcb   :  { %v5777_v37 = vadd.f32 %v5721_v61, %v9763_v1  ;;  %v5764_v38 = vpop.f32.mrb[80].mxu0  ;;  %v5723_v39 = vpop.f32.mrb[81].mxu1  ;;  %v8376_v61 = vld [vmem:[%s11352_s9 + $0x70] ss:$8 sps:$4 sm:$0xff]  }
 0xdcc   :  { %v5773_v40 = vadd.f32 %v5764_v38, %v5673_v31  ;;  %v5778_v42 = vadd.f32 %v5723_v39, %v9767_v2  ;;  %v5766_v43 = vpop.f32.mrb[81].mxu0  ;;  %v5725_v46 = vpop.f32.mrb[82].mxu1  ;;  %v8371_v31 = vld [vmem:[%s11353_s10 + $0x64] ss:$8 sps:$4 sm:$0xff]  }
 0xdcd   :  { %v5780_v47 = vadd.f32 %v5725_v46, %v9763_v1  ;;  %v5767_v48 = vpop.f32.mrb[82].mxu0  ;;  %v5727_v13 = vpop.f32.mrb[83].mxu1  ;;  %v5783_v62 = vmax.f32 %v5777_v37, 0.0  ;;  %v8377_v37 = vld [vmem:[%s11353_s10 + $0x70] ss:$8 sps:$4 sm:$0xff]  }
 0xdce   :  { %v5779_v49 = vadd.f32 %v5773_v40, %v9771_v3  ;;  %v5776_v53 = vadd.f32 %v5767_v48, %v5676_v34  ;;  %v5781_v58 = vadd.f32 %v5727_v13, %v9767_v2  ;;  %v5769_v55 = vpop.f32.mrb[83].mxu0  ;;  %v5784_v44 = vmax.f32 %v5778_v42, 0.0  ;;  %v8344_v2 = vld [vmem:[%s11350_s7] sm:$0x7]  ;;  %v8374_v34 = vld [vmem:[%s11352_s9 + $0x74] ss:$8 sps:$4 sm:$0xff]  }
 0xdcf   :  { %v5786_v63 = vmax.f32 %v5780_v47, 0.0  ;;  %v8378_v38 = vld [vmem:[%s11352_s9 + $0x84] ss:$8 sps:$4 sm:$0xff]   ;;  %v8380_v40 = vld [vmem:[%s11352_s9 + $0x80] ss:$8 sps:$4 sm:$0xff]  }
 0xdd0   :  { %v5782_v4 = vadd.f32 %v5776_v53, %v9771_v3  ;;  %v5787_v6 = vmax.f32 %v5781_v58, 0.0  ;;  %v5785_v8 = vmax.f32 %v5779_v49, 0.0  ;;  %v8345_v3 = vld [vmem:[%s11352_s9 + $0x4] ss:$8 sps:$4 sm:$0xff]   ;;  %v8381_v42 = vld [vmem:[%s11353_s10 + $0x80] ss:$8 sps:$4 sm:$0xff]  }
 0xdd1   :  { %v5789_v7 = vpack.c.bf16 %v5786_v63, %v5783_v62  ;;  %v8379_v39 = vld [vmem:[%s11353_s10 + $0x84] ss:$8 sps:$4 sm:$0xff]   ;;  %v8382_v43 = vld [vmem:[%s11352_s9 + $0x94] ss:$8 sps:$4 sm:$0xff]   ;;  %v8384_v47 = vld [vmem:[%s11352_s9 + $0x90] ss:$8 sps:$4 sm:$0xff]  }
 0xdd2   :  { %v5788_v9 = vmax.f32 %v5782_v4, 0.0  ;;  %v5790_v10 = vpack.c.bf16 %v5787_v6, %v5784_v44  ;;  %v8383_v46 = vld [vmem:[%s11353_s10 + $0x94] ss:$8 sps:$4 sm:$0xff]   ;;  %v8385_v48 = vld [vmem:[%s11353_s10 + $0x90] ss:$8 sps:$4 sm:$0xff]  }
 0xdd3   :  { %v5793_v11 = vand.u32 %v5789_v7, %v9781_v24  ;;  %v8386_v13 = vld [vmem:[%s11352_s9 + $0xa4] ss:$8 sps:$4 sm:$0xff]   ;;  %v8388_v53 = vld [vmem:[%s11352_s9 + $0xa0] ss:$8 sps:$4 sm:$0xff]   ;;  %v8390_v55 = vld [vmem:[%s11352_s9 + $0xb4] ss:$8 sps:$4 sm:$0xff]  }
 0xdd4   :  { %v5791_v51 = vpack.c.bf16 %v5788_v9, %v5785_v8  ;;  %v5796_v1 = vand.u32 %v5790_v10, %v9781_v24  ;;  %v8387_v49 = vld [vmem:[%s11353_s10 + $0xa4] ss:$8 sps:$4 sm:$0xff]   ;;  %v8389_v58 = vld [vmem:[%s11353_s10 + $0xa0] ss:$8 sps:$4 sm:$0xff]   ;;  %v8391_v62 = vld [vmem:[%s11353_s10 + $0xb4] ss:$8 sps:$4 sm:$0xff]  }
 0xdd5   :  { %v8392_v63 = vld [vmem:[%s11352_s9 + $0xb0] ss:$8 sps:$4 sm:$0xff]   ;;  %v8394_v4 = vld [vmem:[%s11352_s9 + $0xc4] ss:$8 sps:$4 sm:$0xff]   ;;  %v8396_v7 = vld [vmem:[%s11352_s9 + $0xc0] ss:$8 sps:$4 sm:$0xff]  }
 0xdd6   :  { %v5799_v12 = vand.u32 %v5791_v51, %v9781_v24  ;;  %5801 = vmatprep.subr.bf16.mxu1 %v5796_v1  ;;  %v8346_v24 = vld [vmem:[%s11353_s10 + $0x4] ss:$8 sps:$4 sm:$0xff]   ;;  %v8393_v44 = vld [vmem:[%s11353_s10 + $0xb0] ss:$8 sps:$4 sm:$0xff]   ;;  %v8397_v8 = vld [vmem:[%s11353_s10 + $0xc0] ss:$8 sps:$4 sm:$0xff]  }
 0xdd7   :  { %5802 = vmatpush1.bf16.msra.mxu1 %v5793_v11  ;;  %v8395_v6 = vld [vmem:[%s11353_s10 + $0xc4] ss:$8 sps:$4 sm:$0xff]   ;;  %v8398_v9 = vld [vmem:[%s11352_s9 + $0xd4] ss:$8 sps:$4 sm:$0xff]   ;;  %v8400_v51 = vld [vmem:[%s11352_s9 + $0xd0] ss:$8 sps:$4 sm:$0xff]  }
 0xdd8   :  { %7334 = vmatpush3.bf16.msra.mxu0 %v5799_v12  ;;  %5882 = vmatprep.subr.bf16.mxu1 %v5796_v1  ;;  %v8399_v10 = vld [vmem:[%s11353_s10 + $0xd4] ss:$8 sps:$4 sm:$0xff]   ;;  %v8401_v1 = vld [vmem:[%s11353_s10 + $0xd0] ss:$8 sps:$4 sm:$0xff]  }
 0xdd9   :  { %7339 = vmatprep.subr.bf16.mxu0 %v8744_v41 }
 0xdda   :  { %7141 = vmatmul.mubr.msk.bf16.vlgmr.msra.gmra.mrb[84].mxu1 %vm3139_vm9, %v8344_v2 }
 0xddb   :  { %7336 = vmatmul.mubr.msk.bf16.vlgmr.msra.gmra.mrb[84].mxu0 %vm3139_vm9, %v8344_v2  ;;  %5883 = vmatpush1.bf16.msra.mxu1 %v5793_v11  ;;  %v8402_v11 = vld [vmem:[%s11352_s9 + $0xe4] ss:$8 sps:$4 sm:$0xff]   ;;  %v8404_v2 = vld [vmem:[%s11352_s9 + $0xe0] ss:$8 sps:$4 sm:$0xff]  }
 0xddc   :  { %7340 = vmatpush3.bf16.msra.mxu0 %v5799_v12  ;;  %5914 = vmatprep.mubr.bf16.mxu1 %v8743_v0  ;;  %v8403_v12 = vld [vmem:[%s11353_s10 + $0xe4] ss:$8 sps:$4 sm:$0xff]  }
 0xddd   :  { %7341 = vmatprep.mubr.msk.bf16.mxu0 %vm8745_vm8, %v8744_v41  ;;  %5972 = vmatprep.subr.bf16.mxu1 %v8345_v3  ;;  %v8405_v3 = vld [vmem:[%s11353_s10 + $0xe0] ss:$8 sps:$4 sm:$0xff]  }
 0xdde   :  { %6054 = vmatprep.subr.bf16.mxu0 %v8346_v24  ;;  %v8406_v24 = vld [vmem:[%s11352_s9 + $0xf4] ss:$8 sps:$4 sm:$0xff]  }
 0xde2   :  { %7143 = vmatmul.mubr.msk.bf16.vlgmr.msra.gmra.mrb[88].mxu1 %vm3139_vm9, %v8347_v54 }
 0xde3   :  { %7342 = vmatmul.mubr.msk.bf16.vlgmr.msra.gmra.mrb[88].mxu0 %vm3139_vm9, %v8347_v54  ;;  %5973 = vmatpush1.bf16.msra.mxu1 %v8348_v15  ;;  %v8407_v54 = vld [vmem:[%s11353_s10 + $0xf4] ss:$8 sps:$4 sm:$0xff]   ;;  %v8408_v15 = vld [vmem:[%s11352_s9 + $0xf0] ss:$8 sps:$4 sm:$0xff]  }
 0xde4   :  { %6055 = vmatpush1.bf16.msra.mxu0 %v8349_v50  ;;  %5974 = vmatprep.subr.bf16.mxu1 %v8350_v52  ;;  %v8409_v50 = vld [vmem:[%s11353_s10 + $0xf0] ss:$8 sps:$4 sm:$0xff]   ;;  %v8410_v52 = vld [vmem:[%s11352_s9 + $0x104] ss:$8 sps:$4 sm:$0xff]  }
 0xde5   :  { %6056 = vmatprep.subr.bf16.mxu0 %v8351_v16  ;;  %v8411_v16 = vld [vmem:[%s11353_s10 + $0x104] ss:$8 sps:$4 sm:$0xff]  }
 0xde7   :  { %5975 = vmatpush1.bf16.msra.mxu1 %v8352_v17 }
 0xde8   :  { %6057 = vmatpush1.bf16.msra.mxu0 %v8353_v57  ;;  %5976 = vmatprep.subr.bf16.mxu1 %v8354_v59 }
 0xde9   :  { %6058 = vmatprep.subr.bf16.mxu0 %v8355_v14 }
 0xdeb   :  { %5977 = vmatpush1.bf16.msra.mxu1 %v8356_v19 }
 0xdec   :  { %6059 = vmatpush1.bf16.msra.mxu0 %v8357_v35  ;;  %5978 = vmatprep.subr.bf16.mxu1 %v8358_v18 }
 0xded   :  { %6060 = vmatprep.subr.bf16.mxu0 %v8359_v20 }
 0xdef   :  { %5979 = vmatpush1.bf16.msra.mxu1 %v8360_v21 }
 0xdf0   :  { %6061 = vmatpush1.bf16.msra.mxu0 %v8361_v22  ;;  %5980 = vmatprep.subr.bf16.mxu1 %v8362_v25 }
 0xdf1   :  { %6062 = vmatprep.subr.bf16.mxu0 %v8363_v56 }
 0xdf3   :  { %5981 = vmatpush1.bf16.msra.mxu1 %v8364_v26 }
 0xdf4   :  { %6063 = vmatpush1.bf16.msra.mxu0 %v8365_v27  ;;  %5982 = vmatprep.subr.bf16.mxu1 %v8366_v29 }
 0xdf5   :  { %6064 = vmatprep.subr.bf16.mxu0 %v8367_v30 }
 0xdf7   :  { %5983 = vmatpush1.bf16.msra.mxu1 %v8368_v33 }
 0xdf8   :  { %6065 = vmatpush1.bf16.msra.mxu0 %v8369_v45  ;;  %5984 = vmatprep.subr.bf16.mxu1 %v8370_v23 }
 0xdf9   :  { %6066 = vmatprep.subr.bf16.mxu0 %v8371_v31 }
 0xdfb   :  { %5985 = vmatpush1.bf16.msra.mxu1 %v8372_v28 }
 0xdfc   :  { %6067 = vmatpush1.bf16.msra.mxu0 %v8373_v32  ;;  %5986 = vmatprep.subr.bf16.mxu1 %v8374_v34  ;;  %v8412_v32 = vld [vmem:[%s11352_s9 + $0x100] ss:$8 sps:$4 sm:$0xff]  }
 0xdfd   :  { %6068 = vmatprep.subr.bf16.mxu0 %v8375_v36  ;;  %v8413_v34 = vld [vmem:[%s11353_s10 + $0x100] ss:$8 sps:$4 sm:$0xff]   ;;  %v8414_v36 = vld [vmem:[%s11352_s9 + $0x114] ss:$8 sps:$4 sm:$0xff]  }
 0xdff   :  { %5987 = vmatpush1.bf16.msra.mxu1 %v8376_v61  ;;  %v8415_v61 = vld [vmem:[%s11353_s10 + $0x114] ss:$8 sps:$4 sm:$0xff]  }
 0xe00   :  { %6069 = vmatpush1.bf16.msra.mxu0 %v8377_v37  ;;  %5988 = vmatprep.subr.bf16.mxu1 %v8378_v38  ;;  %v8416_v37 = vld [vmem:[%s11352_s9 + $0x110] ss:$8 sps:$4 sm:$0xff]  }
 0xe01   :  { %6070 = vmatprep.subr.bf16.mxu0 %v8379_v39  ;;  %v8417_v38 = vld [vmem:[%s11353_s10 + $0x110] ss:$8 sps:$4 sm:$0xff]   ;;  %v8418_v39 = vld [vmem:[%s11352_s9 + $0x124] ss:$8 sps:$4 sm:$0xff]  }
 0xe03   :  { %5989 = vmatpush1.bf16.msra.mxu1 %v8380_v40  ;;  %v8419_v40 = vld [vmem:[%s11353_s10 + $0x124] ss:$8 sps:$4 sm:$0xff]  }
 0xe04   :  { %6071 = vmatpush1.bf16.msra.mxu0 %v8381_v42  ;;  %5990 = vmatprep.subr.bf16.mxu1 %v8382_v43  ;;  %v8420_v42 = vld [vmem:[%s11352_s9 + $0x120] ss:$8 sps:$4 sm:$0xff]  }
 0xe05   :  { %6072 = vmatprep.subr.bf16.mxu0 %v8383_v46  ;;  %v8421_v43 = vld [vmem:[%s11353_s10 + $0x120] ss:$8 sps:$4 sm:$0xff]   ;;  %v8422_v46 = vld [vmem:[%s11352_s9 + $0x134] ss:$8 sps:$4 sm:$0xff]  }
 0xe07   :  { %5991 = vmatpush1.bf16.msra.mxu1 %v8384_v47  ;;  %v8423_v47 = vld [vmem:[%s11353_s10 + $0x134] ss:$8 sps:$4 sm:$0xff]  }
 0xe08   :  { %6073 = vmatpush1.bf16.msra.mxu0 %v8385_v48  ;;  %5992 = vmatprep.subr.bf16.mxu1 %v8386_v13  ;;  %v8424_v48 = vld [vmem:[%s11352_s9 + $0x130] ss:$8 sps:$4 sm:$0xff]  }
 0xe09   :  { %6074 = vmatprep.subr.bf16.mxu0 %v8387_v49  ;;  %v8425_v13 = vld [vmem:[%s11353_s10 + $0x130] ss:$8 sps:$4 sm:$0xff]   ;;  %v8426_v49 = vld [vmem:[%s11352_s9 + $0x144] ss:$8 sps:$4 sm:$0xff]  }
 0xe0b   :  { %5993 = vmatpush1.bf16.msra.mxu1 %v8388_v53  ;;  %v8427_v53 = vld [vmem:[%s11353_s10 + $0x144] ss:$8 sps:$4 sm:$0xff]  }
 0xe0c   :  { %6075 = vmatpush1.bf16.msra.mxu0 %v8389_v58  ;;  %5994 = vmatprep.subr.bf16.mxu1 %v8390_v55  ;;  %v8428_v58 = vld [vmem:[%s11352_s9 + $0x140] ss:$8 sps:$4 sm:$0xff]  }
 0xe0d   :  { %6076 = vmatprep.subr.bf16.mxu0 %v8391_v62  ;;  %v8429_v55 = vld [vmem:[%s11353_s10 + $0x140] ss:$8 sps:$4 sm:$0xff]   ;;  %v8430_v62 = vld [vmem:[%s11352_s9 + $0x154] ss:$8 sps:$4 sm:$0xff]  }
 0xe0f   :  { %5995 = vmatpush1.bf16.msra.mxu1 %v8392_v63  ;;  %v8431_v63 = vld [vmem:[%s11353_s10 + $0x154] ss:$8 sps:$4 sm:$0xff]  }
 0xe10   :  { %6077 = vmatpush1.bf16.msra.mxu0 %v8393_v44  ;;  %5996 = vmatprep.subr.bf16.mxu1 %v8394_v4  ;;  %v8432_v44 = vld [vmem:[%s11352_s9 + $0x150] ss:$8 sps:$4 sm:$0xff]  }
 0xe11   :  { %6078 = vmatprep.subr.bf16.mxu0 %v8395_v6  ;;  %v8433_v4 = vld [vmem:[%s11353_s10 + $0x150] ss:$8 sps:$4 sm:$0xff]  }
 0xe13   :  { %5997 = vmatpush1.bf16.msra.mxu1 %v8396_v7  ;;  %v8434_v7 = vld [vmem:[#allocation5] sm:$0xff]  }
 0xe14   :  { %6079 = vmatpush1.bf16.msra.mxu0 %v8397_v8  ;;  %5998 = vmatprep.subr.bf16.mxu1 %v8398_v9  ;;  %v8435_v8 = vld [vmem:[#allocation5 + $0x50] sm:$0xff]   ;;  %v8436_v9 = vld [vmem:[#allocation5 + $0x8] sm:$0xff]  }
 0xe15   :  { %6080 = vmatprep.subr.bf16.mxu0 %v8399_v10  ;;  %v8437_v10 = vld [vmem:[#allocation5 + $0x58] sm:$0xff]  }
 0xe17   :  { %5999 = vmatpush1.bf16.msra.mxu1 %v8400_v51  ;;  %v8438_v51 = vld [vmem:[#allocation5 + $0x10] sm:$0xff]  }
 0xe18   :  { %6081 = vmatpush1.bf16.msra.mxu0 %v8401_v1  ;;  %6000 = vmatprep.subr.bf16.mxu1 %v8402_v11  ;;  %v8439_v1 = vld [vmem:[#allocation5 + $0x60] sm:$0xff]   ;;  %v8440_v11 = vld [vmem:[#allocation5 + $0x18] sm:$0xff]  }
 0xe19   :  { %6082 = vmatprep.subr.bf16.mxu0 %v8403_v12  ;;  %v8441_v12 = vld [vmem:[#allocation5 + $0x68] sm:$0xff]  }
 0xe1b   :  { %6001 = vmatpush1.bf16.msra.mxu1 %v8404_v2  ;;  %v8442_v2 = vld [vmem:[#allocation5 + $0x20] sm:$0xff]  }
 0xe1c   :  { %6083 = vmatpush1.bf16.msra.mxu0 %v8405_v3  ;;  %6002 = vmatprep.subr.bf16.mxu1 %v8406_v24  ;;  %v8443_v3 = vld [vmem:[#allocation5 + $0x70] sm:$0xff]   ;;  %v8444_v24 = vld [vmem:[#allocation5 + $0x28] sm:$0xff]  }
 0xe1d   :  { %6084 = vmatprep.subr.bf16.mxu0 %v8407_v54  ;;  %v8445_v54 = vld [vmem:[#allocation5 + $0x78] sm:$0xff]  }
 0xe1f   :  { %6003 = vmatpush1.bf16.msra.mxu1 %v8408_v15  ;;  %v8446_v15 = vld [vmem:[#allocation5 + $0x30] sm:$0xff]  }
 0xe20   :  { %6085 = vmatpush1.bf16.msra.mxu0 %v8409_v50  ;;  %6013 = vmatprep.subr.bf16.mxu1 %v8410_v52  ;;  %v8447_v50 = vld [vmem:[#allocation5 + $0x80] sm:$0xff]   ;;  %v8448_v52 = vld [vmem:[#allocation5 + $0x38] sm:$0xff]  }
 0xe21   :  { %6095 = vmatprep.subr.bf16.mxu0 %v8411_v16  ;;  %v8449_v16 = vld [vmem:[#allocation5 + $0x88] sm:$0xff]  }
 0xead   :  { %v5835_v17 = vpop.f32.mrb[84].mxu1 }
 0xeae   :  { %v5837_v57 = vpop.f32.mrb[85].mxu1  ;;  %v5876_v59 = vpop.f32.mrb[84].mxu0 }
 0xeaf   :  { %v5839_v14 = vpop.f32.mrb[86].mxu1  ;;  %v7337_v19 = vpop.f32.mrb[85].mxu0 }
 0xeb0   :  { %v5840_v35 = vpop.f32.mrb[87].mxu1  ;;  %v5879_v18 = vpop.f32.mrb[86].mxu0  ;;  %v8453_v14 = vld [vmem:[#allocation5 + $0x98] sm:$0xff]  }
 0xeb1   :  { %v7338_v20 = vpop.f32.mrb[87].mxu0 }
 0xeb5   :  { %v5916_v21 = vpop.f32.mrb[88].mxu1 }
 0xeb6   :  { %v5963_v22 = vmax.f32 %v5835_v17, %v5916_v21  ;;  %v5918_v25 = vpop.f32.mrb[89].mxu1  ;;  %v5957_v56 = vpop.f32.mrb[88].mxu0  ;;  %v8450_v17 = vld [vmem:[#allocation5 + $0x40] sm:$0xff]  }
 0xeb7   :  { %v5964_v26 = vmax.f32 %v5837_v57, %v5918_v25  ;;  %v5920_v27 = vpop.f32.mrb[90].mxu1  ;;  %v5965_v29 = vmax.f32 %v5876_v59, %v5957_v56  ;;  %v7343_v30 = vpop.f32.mrb[89].mxu0  ;;  %v8451_v57 = vld [vmem:[#allocation5 + $0x90] sm:$0xff]   ;;  %v8452_v59 = vld [vmem:[#allocation5 + $0x48] sm:$0xff]  }
 0xeb8   :  { %v5921_v33 = vpop.f32.mrb[91].mxu1  ;;  %v5960_v45 = vpop.f32.mrb[90].mxu0  ;;  %v5966_v28 = vpack.c.bf16 %v5963_v22, %v5963_v22 }
 0xeb9   :  { %v5967_v23 = vpack.c.bf16 %v5964_v26, %v5964_v26  ;;  %v7344_v31 = vpop.f32.mrb[91].mxu0  ;;  %v5968_v6 = vpack.c.bf16 %v5965_v29, %v5965_v29 }
 0xebb   :  { %6004 = vmatprep.mubr.bf16.mxu1 %v5967_v23  ;;  %6086 = vmatprep.mubr.bf16.mxu0 %v5967_v23 }
 0xebc   :  { %6005 = vmatmul.mubr.bf16.vlgmr.msra.gmra.mrb[92].mxu1 %v5966_v28  ;;  %6087 = vmatmul.mubr.bf16.vlgmr.msra.gmra.mrb[92].mxu0 %v5966_v28 }
 0xebd   :  { %6014 = vmatpush1.bf16.msra.mxu1 %v8412_v32  ;;  %6096 = vmatpush1.bf16.msra.mxu0 %v8413_v34  ;;  %v8454_v32 = vld [vmem:[#allocation7 + $0x30] sm:$0xff]  }
 0xebe   :  { %6015 = vmatprep.subr.bf16.mxu1 %v8414_v36  ;;  %6097 = vmatprep.subr.bf16.mxu0 %v8415_v61 }
 0xebf   :  { %6045 = vmatprep.mubr.bf16.mxu1 %v8743_v0  ;;  %6127 = vmatprep.mubr.bf16.mxu0 %v8743_v0 }
 0xec1   :  { %6016 = vmatpush1.bf16.msra.mxu1 %v8416_v37  ;;  %6098 = vmatpush1.bf16.msra.mxu0 %v8417_v38  ;;  %v8455_v38 = vld [vmem:[#allocation7 + $0x38] sm:$0xff]  }
 0xec2   :  { %6017 = vmatprep.subr.bf16.mxu1 %v8418_v39  ;;  %6099 = vmatprep.subr.bf16.mxu0 %v8419_v40  ;;  %v8456_v39 = vld [vmem:[#allocation5 + $0xa0] sm:$0xff]   ;;  %v8457_v40 = vld [vmem:[#allocation7 + $0x40] sm:$0xff]  }
 0xec5   :  { %6018 = vmatpush1.bf16.msra.mxu1 %v8420_v42  ;;  %6100 = vmatpush1.bf16.msra.mxu0 %v8421_v43  ;;  %v8458_v42 = vld [vmem:[#allocation5 + $0xa8] sm:$0xff]   ;;  %v8459_v43 = vld [vmem:[#allocation7 + $0x48] sm:$0xff]  }
 0xec6   :  { %6019 = vmatprep.subr.bf16.mxu1 %v8422_v46  ;;  %6101 = vmatprep.subr.bf16.mxu0 %v8423_v47  ;;  %v8460_v46 = vld [vmem:[#allocation5 + $0xb0] sm:$0xff]   ;;  %v8461_v47 = vld [vmem:[#allocation7 + $0x50] sm:$0xff]  }
 0xec9   :  { %6020 = vmatpush1.bf16.msra.mxu1 %v8424_v48  ;;  %6102 = vmatpush1.bf16.msra.mxu0 %v8425_v13  ;;  %v8462_v48 = vld [vmem:[#allocation5 + $0xb8] sm:$0xff]   ;;  %v8463_v13 = vld [vmem:[#allocation7 + $0x58] sm:$0xff]  }
 0xeca   :  { %6021 = vmatprep.subr.bf16.mxu1 %v8426_v49  ;;  %6103 = vmatprep.subr.bf16.mxu0 %v8427_v53  ;;  %v8464_v49 = vld [vmem:[#allocation5 + $0xc0] sm:$0xff]   ;;  %v8465_v53 = vld [vmem:[#allocation5 + $0xc8] sm:$0xff]  }
 0xecd   :  { %6022 = vmatpush1.bf16.msra.mxu1 %v8428_v58  ;;  %6104 = vmatpush1.bf16.msra.mxu0 %v8429_v55  ;;  %v8466_v58 = vld [vmem:[#allocation5 + $0xd0] sm:$0xff]   ;;  %v8467_v55 = vld [vmem:[#allocation5 + $0xd8] sm:$0xff]  }
 0xece   :  { %6023 = vmatprep.subr.bf16.mxu1 %v8430_v62  ;;  %6105 = vmatprep.subr.bf16.mxu0 %v8431_v63  ;;  %v8468_v62 = vld [vmem:[#allocation5 + $0xe0] sm:$0xff]   ;;  %v8469_v63 = vld [vmem:[#allocation5 + $0xe8] sm:$0xff]  }
 0xed1   :  { %6024 = vmatpush1.bf16.msra.mxu1 %v8432_v44  ;;  %6106 = vmatpush1.bf16.msra.mxu0 %v8433_v4  ;;  %v8470_v4 = vld [vmem:[#allocation7 + $0x60] sm:$0xff]  }
 0xed2   :  { %6200 = vmatprep.subr.bf16.mxu0 %v8743_v0  ;;  %6158 = vmatprep.subr.bf16.mxu1 %v8743_v0 }
 0xed4   :  { %7145 = vmatmul.mubr.msk.bf16.vlgmr.msra.gmra.mrb[92].mxu1 %vm3545_vm10, %v5968_v6  ;;  %7146 = vmatmul.mubr.msk.bf16.vlgmr.msra.gmra.mrb[92].mxu0 %vm3545_vm10, %v5968_v6  ;;  %v8471_v6 = vld [vmem:[#allocation7 + $0x68] sm:$0xff]  }
 0xed5   :  { %6201 = vmatpush1.bf16.msra.mxu0 %v8434_v7  ;;  %6159 = vmatpush1.bf16.msra.mxu1 %v8435_v8  ;;  %v8472_v7 = vld [vmem:[#allocation7 + $0x70] sm:$0xff]   ;;  %v8474_v8 = vld [vmem:[#allocation7 + $0x80] sm:$0xff]  }
 0xed6   :  { %6202 = vmatprep.subr.bf16.mxu0 %v8743_v0  ;;  %6160 = vmatprep.subr.bf16.mxu1 %v8743_v0 }
 0xed9   :  { %6203 = vmatpush1.bf16.msra.mxu0 %v8436_v9  ;;  %6161 = vmatpush1.bf16.msra.mxu1 %v8437_v10  ;;  %v8475_v9 = vld [vmem:[#allocation7 + $0x88] sm:$0xff]  }
 0xeda   :  { %6204 = vmatprep.subr.bf16.mxu0 %v8743_v0  ;;  %6162 = vmatprep.subr.bf16.mxu1 %v8743_v0 }
 0xedd   :  { %6205 = vmatpush1.bf16.msra.mxu0 %v8438_v51  ;;  %6163 = vmatpush1.bf16.msra.mxu1 %v8439_v1 }
 0xede   :  { %6206 = vmatprep.subr.bf16.mxu0 %v8743_v0  ;;  %6164 = vmatprep.subr.bf16.mxu1 %v8743_v0 }
 0xee1   :  { %6207 = vmatpush1.bf16.msra.mxu0 %v8440_v11  ;;  %6165 = vmatpush1.bf16.msra.mxu1 %v8441_v12 }
 0xee2   :  { %6208 = vmatprep.subr.bf16.mxu0 %v8743_v0  ;;  %6166 = vmatprep.subr.bf16.mxu1 %v8743_v0 }
 0xee5   :  { %6209 = vmatpush1.bf16.msra.mxu0 %v8442_v2  ;;  %6167 = vmatpush1.bf16.msra.mxu1 %v8443_v3 }
 0xee6   :  { %6210 = vmatprep.subr.bf16.mxu0 %v8743_v0  ;;  %6168 = vmatprep.subr.bf16.mxu1 %v8743_v0 }
 0xee9   :  { %6211 = vmatpush1.bf16.msra.mxu0 %v8444_v24  ;;  %6169 = vmatpush1.bf16.msra.mxu1 %v8445_v54 }
 0xeea   :  { %6212 = vmatprep.subr.bf16.mxu0 %v8743_v0  ;;  %6170 = vmatprep.subr.bf16.mxu1 %v8743_v0 }
 0xeed   :  { %6213 = vmatpush1.bf16.msra.mxu0 %v8446_v15  ;;  %6171 = vmatpush1.bf16.msra.mxu1 %v8447_v50 }
 0xeee   :  { %6214 = vmatprep.subr.bf16.mxu0 %v8743_v0  ;;  %6172 = vmatprep.subr.bf16.mxu1 %v8743_v0 }
 0xef1   :  { %6215 = vmatpush1.bf16.msra.mxu0 %v8448_v52  ;;  %6173 = vmatpush1.bf16.msra.mxu1 %v8449_v16 }
 0xef2   :  { %6216 = vmatprep.subr.bf16.mxu0 %v8743_v0  ;;  %6174 = vmatprep.subr.bf16.mxu1 %v8743_v0 }
 0xef5   :  { %6217 = vmatpush1.bf16.msra.mxu0 %v8450_v17  ;;  %6175 = vmatpush1.bf16.msra.mxu1 %v8451_v57  ;;  %v8476_v17 = vld [vmem:[%s11360_s17] ss:$0 sm:$0xff] }
 0xef6   :  { %6218 = vmatprep.subr.bf16.mxu0 %v8743_v0  ;;  %6176 = vmatprep.subr.bf16.mxu1 %v8743_v0 }
 0xef9   :  { %6219 = vmatpush1.bf16.msra.mxu0 %v8452_v59  ;;  %6177 = vmatpush1.bf16.msra.mxu1 %v8453_v14 }
 0xefa   :  { %6248 = vmatprep.subr.bf16.mxu1 %v8743_v0  ;;  %7345 = vmatprep.subr.bf16.mxu0 %v8744_v41 }
 0xfa7   :  { %v6047_v19 = vpop.f32.mrb[92].mxu1  ;;  %v6129_v35 = vpop.f32.mrb[92].mxu0 }
 0xfa8   :  { %v6136_v18 = vmax.f32 %v6047_v19, %v6129_v35  ;;  %v6049_v20 = vpop.f32.mrb[93].mxu1  ;;  %v6131_v21 = vpop.f32.mrb[93].mxu0 }
 0xfa9   :  { %v6137_v22 = vmax.f32 %v6049_v20, %v6131_v21  ;;  %v6051_v25 = vpop.f32.mrb[94].mxu1  ;;  %v6133_v56 = vpop.f32.mrb[94].mxu0  ;;  %v8477_v20 = vld [vmem:[#allocation7] sm:$0xff]   ;;  %v8478_v21 = vld [vmem:[#allocation8] sm:$0xff]  }
 0xfaa   :  { %v11241_v26 = vpack.c.bf16 %v6136_v18, %v6136_v18  ;;  %v6052_v27 = vpop.f32.mrb[95].mxu1  ;;  %v6134_v29 = vpop.f32.mrb[95].mxu0  ;;  %v8480_v25 = vld [vmem:[#allocation8 + $0x8] sm:$0xff]   ;;  %v8481_v56 = vld [vmem:[#allocation7 + $0x10] sm:$0xff]  }
 0xfab   :  { %v6139_v30 = vpack.c.bf16 %v6137_v22, %v6137_v22  ;;  %v8479_v22 = vld [vmem:[#allocation7 + $0x8] sm:$0xff]   ;;  %v8483_v27 = vld [vmem:[#allocation7 + $0x18] sm:$0xff]  }
 0xfac   :  { %v6143_v33 = vshll.u32 %v11241_v26, 16  ;;  %v6141_v34 = vshrl.u32 %v11241_v26, 16  ;;  %v6242_v44 = vrot.slane %v11241_v26, 1  ;;  %v8484_v29 = vld [vmem:[#allocation8 + $0x18] sm:$0xff]  }
 0xfad   :  { %v6150_v45 = vshll.u32 %v6139_v30, 16  ;;  %7148 = vmatprep.mubr.msk.bf16.mxu0 %vm1755_vm6, %v6139_v30  ;;  %v6148_v31 = vshrl.u32 %v6139_v30, 16  ;;  %v6243_v37 = vrot.slane %v6139_v30, 1  ;;  %v8485_v30 = vld [vmem:[#allocation7 + $0x20] sm:$0xff]  }
 0xfae   :  { %6233 = vmatmul.mubr.bf16.vlgmr.msra.gmra.mrb[96].mxu0 %v11241_v26  ;;  %v6145_v23 = vrot.slane %v6143_v33, 1  ;;  %v8482_v26 = vld [vmem:[#allocation8 + $0x10] sm:$0xff]   ;;  %v8486_v33 = vld [vmem:[#allocation8 + $0x20] sm:$0xff]  }
 0xfaf   :  { %v6152_v28 = vrot.slane %v6150_v45, 1  ;;  %7346 = vmatpush3.bf16.msra.mxu0 %v8454_v32  ;;  %7357 = vmatprep.mubr.msk.bf16.mxu0 %vm8745_vm8, %v8744_v41  ;;  %v8487_v45 = vld [vmem:[#allocation7 + $0x28] sm:$0xff]   ;;  %v8492_v32 = vld [vmem:[%s11356_s13 + $0x20] sm:$0xff]  }
 0xfb0   :  { %7347 = vmatprep.subr.bf16.mxu0 %v8744_v41  ;;  %v6146_v61 = vor.u32 %v6145_v23, %v6141_v34  ;;  %v8488_v23 = vld [vmem:[%s11356_s13] sm:$0xff]   ;;  %v8493_v34 = vld [vmem:[%s11356_s13 + $0x28] sm:$0xff]  }
 0xfb1   :  { %v6153_v36 = vor.u32 %v6152_v28, %v6148_v31  ;;  %v8489_v31 = vld [vmem:[%s11356_s13 + $0x8] sm:$0xff]   ;;  %v8491_v28 = vld [vmem:[%s11356_s13 + $0x18] sm:$0xff]  }
 0xfb3   :  { %7147 = vmatprep.mubr.msk.bf16.mxu1 %vm1755_vm6, %v6153_v36  ;;  %7348 = vmatpush3.bf16.msra.mxu0 %v8455_v38  ;;  %v8494_v36 = vld [vmem:[%s11356_s13 + $0x30] sm:$0xff]  }
 0xfb4   :  { %6191 = vmatmul.mubr.bf16.vlgmr.msra.gmra.mrb[96].mxu1 %v6146_v61  ;;  %7349 = vmatprep.subr.bf16.mxu0 %v8744_v41 }
 0xfb5   :  { %6249 = vmatpush1.bf16.msra.mxu1 %v8456_v39  ;;  %7149 = vmatprep.mubr.msk.bf16.mxu1 %vm1755_vm6, %v6243_v37 }
 0xfb6   :  { %6250 = vmatprep.subr.bf16.mxu1 %v8743_v0 }
 0xfb7   :  { %7350 = vmatpush3.bf16.msra.mxu0 %v8457_v40 }
 0xfb8   :  { %7351 = vmatprep.subr.bf16.mxu0 %v8744_v41 }
 0xfb9   :  { %6251 = vmatpush1.bf16.msra.mxu1 %v8458_v42 }
 0xfba   :  { %6252 = vmatprep.subr.bf16.mxu1 %v8743_v0 }
 0xfbb   :  { %7352 = vmatpush3.bf16.msra.mxu0 %v8459_v43 }
 0xfbc   :  { %7353 = vmatprep.subr.bf16.mxu0 %v8744_v41 }
 0xfbd   :  { %6253 = vmatpush1.bf16.msra.mxu1 %v8460_v46 }
 0xfbe   :  { %6254 = vmatprep.subr.bf16.mxu1 %v8743_v0 }
 0xfbf   :  { %7354 = vmatpush3.bf16.msra.mxu0 %v8461_v47 }
 0xfc0   :  { %7355 = vmatprep.subr.bf16.mxu0 %v8744_v41 }
 0xfc1   :  { %6255 = vmatpush1.bf16.msra.mxu1 %v8462_v48 }
 0xfc2   :  { %6256 = vmatprep.subr.bf16.mxu1 %v8743_v0 }
 0xfc3   :  { %7356 = vmatpush3.bf16.msra.mxu0 %v8463_v13 }
 0xfc4   :  { %7361 = vmatprep.subr.bf16.mxu0 %v8744_v41 }
 0xfc5   :  { %6257 = vmatpush1.bf16.msra.mxu1 %v8464_v49 }
 0xfc6   :  { %6258 = vmatprep.subr.bf16.mxu1 %v8743_v0 }
 0xfc9   :  { %6259 = vmatpush1.bf16.msra.mxu1 %v8465_v53 }
 0xfca   :  { %6260 = vmatprep.subr.bf16.mxu1 %v8743_v0 }
 0xfcd   :  { %6261 = vmatpush1.bf16.msra.mxu1 %v8466_v58 }
 0xfce   :  { %6262 = vmatprep.subr.bf16.mxu1 %v8743_v0 }
 0xfd1   :  { %6263 = vmatpush1.bf16.msra.mxu1 %v8467_v55  ;;  %v8495_v55 = vld [vmem:[#allocation13] sm:$0x1] }
 0xfd2   :  { %6264 = vmatprep.subr.bf16.mxu1 %v8743_v0 }
 0xfd5   :  { %6265 = vmatpush1.bf16.msra.mxu1 %v8468_v62 }
 0xfd6   :  { %6266 = vmatprep.subr.bf16.mxu1 %v8743_v0  ;;  %v8473_v0 = vld [vmem:[#allocation7 + $0x78] sm:$0xff]  }
 0xfd9   :  { %6267 = vmatpush1.bf16.msra.mxu1 %v8469_v63 }
 0xfda   :  { %7377 = vmatprep.subr.bf16.mxu1 %v8744_v41 }
 0xfdc   :  { %6281 = vmatmul.mubr.bf16.vlgmr.msra.gmra.mrb[100].mxu1 %v6242_v44  ;;  %v8496_v44 = vld [vmem:[#allocation14] sm:$0x1] }
 0xfdd   :  { %7378 = vmatpush3.bf16.msra.mxu1 %v8470_v4  ;;  %7389 = vmatprep.mubr.msk.bf16.mxu1 %vm8745_vm8, %v8744_v41 }
 0xfde   :  { %7379 = vmatprep.subr.bf16.mxu1 %v8744_v41 }
 0xfe1   :  { %7380 = vmatpush3.bf16.msra.mxu1 %v8471_v6 }
 0xfe2   :  { %7381 = vmatprep.subr.bf16.mxu1 %v8744_v41 }
 0xfe5   :  { %7382 = vmatpush3.bf16.msra.mxu1 %v8472_v7 }
 0xfe6   :  { %7383 = vmatprep.subr.bf16.mxu1 %v8744_v41 }
 0xfe9   :  { %7384 = vmatpush3.bf16.msra.mxu1 %v8473_v0 }
 0xfea   :  { %7385 = vmatprep.subr.bf16.mxu1 %v8744_v41 }
 0xfed   :  { %7386 = vmatpush3.bf16.msra.mxu1 %v8474_v8 }
 0xfee   :  { %7387 = vmatprep.subr.bf16.mxu1 %v8744_v41 }
 0xff1   :  { %7388 = vmatpush3.bf16.msra.mxu1 %v8475_v9 }
 0xff2   :  { %7413 = vmatprep.subr.bf16.mxu1 %v8744_v41 }
0x1081   :  { %v6234_v10 = vpop.f32.mrb[96].mxu0 }
0x1082   :  { %v6236_v51 = vpop.f32.mrb[97].mxu0 }
0x1083   :  { %v6237_v1 = vpop.f32.mrb[98].mxu0  ;;  %v8497_v51 = vld [vmem:[#allocation16] sm:$0x1] }
0x1084   :  { %v6238_v11 = vpop.f32.mrb[99].mxu0 }
0x1087   :  { %v6192_v12 = vpop.f32.mrb[96].mxu1 }
0x1088   :  { %v6235_v2 = vadd.f32 %v6234_v10, %v6192_v12  ;;  %v6194_v3 = vpop.f32.mrb[97].mxu1 }
0x1089   :  { %v6195_v24 = vpop.f32.mrb[98].mxu1 }
0x108a   :  { %v6196_v54 = vpop.f32.mrb[99].mxu1 }
0x10af   :  { %v6282_v15 = vpop.f32.mrb[100].mxu1 }
0x10b0   :  { %v6288_v50 = vadd.f32 %v6282_v15, %v6235_v2  ;;  %v6284_v52 = vpop.f32.mrb[101].mxu1 }
0x10b1   :  { %v6285_v16 = vpop.f32.mrb[102].mxu1 }
0x10b2   :  { %v6289_v57 = vadd.f32 %v8476_v17, %v6288_v50  ;;  %v6286_v59 = vpop.f32.mrb[103].mxu1 }
0x10b4   :  { %v6290_v14 = vmax.f32 %v6289_v57, 0.0 }
0x10b6   :  { %v6291_v19 = vpack.c.bf16 %v6290_v14, %v6290_v14 }
0x10b8   :  { %v6293_v35 = vshrl.u32 %v6291_v19, 16  ;;  %v6381_v18 = vrot.slane %v6291_v19, 1 }
0x10ba   :  { %7358 = vmatmul.mubr.msk.bf16.vlgmr.msra.gmra.mrb[100].mxu0 %vm3545_vm10, %v6293_v35  ;;  %7390 = vmatmul.mubr.msk.bf16.vlgmr.msra.gmra.mrb[104].mxu1 %vm3545_vm10, %v6381_v18 }
0x10bb   :  { %7362 = vmatpush3.bf16.msra.mxu0 %v8477_v20  ;;  %7373 = vmatprep.mubr.msk.bf16.mxu0 %vm8745_vm8, %v8744_v41 }
0x10bc   :  { %7363 = vmatprep.subr.bf16.mxu0 %v8744_v41  ;;  %7414 = vmatpush3.bf16.msra.mxu1 %v8478_v21 }
0x10bd   :  { %7415 = vmatprep.subr.bf16.mxu1 %v8744_v41  ;;  %7425 = vmatprep.mubr.msk.bf16.mxu1 %vm8745_vm8, %v8744_v41 }
0x10bf   :  { %7364 = vmatpush3.bf16.msra.mxu0 %v8479_v22 }
0x10c0   :  { %7365 = vmatprep.subr.bf16.mxu0 %v8744_v41  ;;  %7416 = vmatpush3.bf16.msra.mxu1 %v8480_v25 }
0x10c1   :  { %7417 = vmatprep.subr.bf16.mxu1 %v8744_v41 }
0x10c3   :  { %7366 = vmatpush3.bf16.msra.mxu0 %v8481_v56 }
0x10c4   :  { %7367 = vmatprep.subr.bf16.mxu0 %v8744_v41  ;;  %7418 = vmatpush3.bf16.msra.mxu1 %v8482_v26 }
0x10c5   :  { %7419 = vmatprep.subr.bf16.mxu1 %v8744_v41 }
0x10c7   :  { %7368 = vmatpush3.bf16.msra.mxu0 %v8483_v27 }
0x10c8   :  { %7369 = vmatprep.subr.bf16.mxu0 %v8744_v41  ;;  %7420 = vmatpush3.bf16.msra.mxu1 %v8484_v29 }
0x10c9   :  { %7421 = vmatprep.subr.bf16.mxu1 %v8744_v41 }
0x10cb   :  { %7370 = vmatpush3.bf16.msra.mxu0 %v8485_v30 }
0x10cc   :  { %7371 = vmatprep.subr.bf16.mxu0 %v8744_v41  ;;  %7422 = vmatpush3.bf16.msra.mxu1 %v8486_v33 }
0x10cd   :  { %7423 = vmatprep.subr.bf16.mxu1 %v8744_v41 }
0x10cf   :  { %7372 = vmatpush3.bf16.msra.mxu0 %v8487_v45 }
0x10d0   :  { %7393 = vmatprep.subr.bf16.mxu0 %v8744_v41  ;;  %7424 = vmatpush3.bf16.msra.mxu1 %v10256_v5  ;;  %v8490_v5 = vld [vmem:[%s11356_s13 + $0x10] sm:$0xff]   ;;  %s8747_s13 = smov [#allocation17]  }
0x10d1   :  { %s6524_s2 = sshll.u32 %s8747_s13, 4  ;;  %s6525_s2 = int_to_ptr.vmem [resolvable:$true] %s6524_s2 }
0x10d2   :  { %7374 = vmatmul.mubr.msk.bf16.vlgmr.msra.gmra.mrb[104].mxu0 %vm3545_vm10, %v6291_v19  ;;  %s8696_s12 = scalar_lea.vmem %s6525_s2, 32  ;;  %p8701_p3 = scmp.lt.s32.totalorder %s6525_s2, %s6525_s2 }
0x10d3   :  { %7394 = vmatpush3.bf16.msra.mxu0 %v8488_v23  ;;  %7409 = vmatprep.mubr.msk.bf16.mxu0 %vm8745_vm8, %v8744_v41  ;;  %p8697_p2 = scmp.ne.s32.totalorder %s6525_s2, %s8696_s12  ;;  %p8702_p4 = scmp.lt.s32.totalorder %s8696_s12, %s8696_s12 }
0x10d4   :  { %7395 = vmatprep.subr.bf16.mxu0 %v8744_v41 }
0x10d5   :  { %p8703_p5 = por %p8702_p4, %p8701_p3 }
0x10d7   :  { %7396 = vmatpush3.bf16.msra.mxu0 %v8489_v31  ;;  %p8704_p6 = pnand %p8703_p5, %p8697_p2 }
0x10d8   :  { %7397 = vmatprep.subr.bf16.mxu0 %v8744_v41 }
0x10db   :  { %7398 = vmatpush3.bf16.msra.mxu0 %v8490_v5 }
0x10dc   :  { %7399 = vmatprep.subr.bf16.mxu0 %v8744_v41 }
0x10df   :  { %7400 = vmatpush3.bf16.msra.mxu0 %v8491_v28 }
0x10e0   :  { %7401 = vmatprep.subr.bf16.mxu0 %v8744_v41 }
0x10e3   :  { %7402 = vmatpush3.bf16.msra.mxu0 %v8492_v32 }
0x10e4   :  { %7403 = vmatprep.subr.bf16.mxu0 %v8744_v41 }
0x10e7   :  { %7404 = vmatpush3.bf16.msra.mxu0 %v8493_v34 }
0x10e8   :  { %7405 = vmatprep.subr.bf16.mxu0 %v8744_v41 }
0x10eb   :  { %7406 = vmatpush3.bf16.msra.mxu0 %v8494_v36 }
0x10ec   :  { %7407 = vmatprep.subr.bf16.mxu0 %v8744_v41 }
0x10ef   :  { %7408 = vmatpush3.bf16.msra.mxu0 %v10168_v60 }
0x118d   :  { %v6332_v61 = vpop.f32.mrb[100].mxu0  ;;  %v6419_v37 = vpop.f32.mrb[104].mxu1 }
0x118e   :  { %v7359_v38 = vpop.f32.mrb[101].mxu0  ;;  %v7391_v39 = vpop.f32.mrb[105].mxu1 }
0x118f   :  { %v6335_v40 = vpop.f32.mrb[102].mxu0  ;;  %v6422_v42 = vpop.f32.mrb[106].mxu1 }
0x1190   :  { %v7360_v43 = vpop.f32.mrb[103].mxu0  ;;  %v7392_v46 = vpop.f32.mrb[107].mxu1 }
0x11a5   :  { %v6374_v47 = vpop.f32.mrb[104].mxu0 }
0x11a6   :  { %v6375_v48 = vadd.f32 %v6374_v47, %v6332_v61  ;;  %v7375_v13 = vpop.f32.mrb[105].mxu0 }
0x11a7   :  { %v6377_v49 = vpop.f32.mrb[106].mxu0 }
0x11a8   :  { %v6425_v53 = vadd.f32 %v6419_v37, %v6375_v48  ;;  %v7376_v58 = vpop.f32.mrb[107].mxu0 }
0x11aa   :  { %v6426_v62 = vadd.f32 %v8495_v55, %v6425_v53 }
0x11ac   :  { %v6427_v63 = vmax.f32 %v6426_v62, 0.0 }
0x11ae   :  { %v6428_v41 = vpack.c.bf16 %v6427_v63, %v6427_v63 }
0x11b0   :  { %7410 = vmatmul.mubr.msk.bf16.vlgmr.msra.gmra.mrb[108].mxu0 %vm4565_vm12, %v6428_v41 }
0x1283   :  { %v6466_v60 = vpop.f32.mrb[108].mxu0 }
0x1284   :  { %v6467_v4 = vadd.f32 %v8496_v44, %v6466_v60  ;;  %v7411_v6 = vpop.f32.mrb[109].mxu0 }
0x1285   :  { %v6469_v7 = vpop.f32.mrb[110].mxu0 }
0x1286   :  { %v6472_v0 = vmax.f32 %v6467_v4, 0.0  ;;  %v7412_v8 = vpop.f32.mrb[111].mxu0 }
0x1288   :  { %v6473_v9 = vpack.c.bf16 %v6472_v0, %v6472_v0 }
0x128a   :  { %7426 = vmatmul.mubr.msk.bf16.vlgmr.msra.gmra.mrb[108].mxu1 %vm4648_vm14, %v6473_v9 }
0x135d   :  { %v6511_v10 = vpop.f32.mrb[108].mxu1 }
0x135e   :  { %v6512_v1 = vadd.f32 %v8497_v51, %v6511_v10  ;;  %v7427_v11 = vpop.f32.mrb[109].mxu1 }
0x135f   :  { %v6514_v12 = vpop.f32.mrb[110].mxu1 }
0x1360   :  { %6517 = vst [vmem:[#allocation17 + $0x1] sm:$0x1] %v6512_v1  ;;  %v7428_v2 = vpop.f32.mrb[111].mxu1 }
0x1361   :  { %8707 = shalt.err (!%p8704_p6)
}
0x1362   :  { %s11385_s25 = sld [smem:[#allocation30_spill]] }
0x1368   :  { %s8708_s27 = scalar_lea.hbm %s11385_s25, 32 }
0x1369   :  { %p8709_p7 = scmp.ne.s32.totalorder %s11385_s25, %s8708_s27  ;;  %p8712_p8 = scmp.lt.u32.totalorder %s8708_s27, %s11385_s25 }
0x136b   :  { %p8714_p9 = pnand %p8712_p8, %p8709_p7 }
0x136d   :  { %8717 = shalt.err (!%p8714_p9)
}
0x136e   :  { %6527 = dma.vmem_to_hbm [thread:$0]  %s6525_s2, 32, %s11385_s25, [#allocation4]  }
0x136f   :  { %8728 = dma.done.wait [#allocation4], 32  }
0x1370   :  { %8729 = vsyncadd [#allocation4], 4294967264 }
0x1371   :  { %6531 = vsyncpa [#allocation3], 1 }
0x1372   :  { %6532 = vsyncpa [#allocation6], 1 }
0x1373   :  { %6533 = vsyncpa [#allocation9], 1 }
0x1374   :  { %6534 = vsyncpa [#allocation12], 1 }
0x1375   :  { %6535 = vsyncpa [#allocation15], 1 }
0x1376   :  { %6536 = vsyncpa [#allocation4], 1 }

</bundles_post_ra>
